<compile_context>
chip_gen: v6e
topology: v6e:2x2x1
jax: 0.10.0
libtpu: 0.0.40
codegen_flags: <defaults>
</compile_context>

<pallas_src>
import jax
import jax.numpy as jnp
from jax.experimental import pallas as pl
from jax.experimental.pallas import tpu as pltpu

# ---------------- small synthetic configuration ----------------
B = 2                       # batch
IMG = 16                    # imageSize (small)
PATCH = 8                   # patch size
C_IN = 3                    # RGB
CPP = C_IN * PATCH * PATCH  # flattened patch dim = 192
N_PATCH = (IMG // PATCH) ** 2           # 4
TV = N_PATCH + 1                        # real visual tokens (cls + patches) = 5
VSEQ = 8                                # visual tokens padded to a sublane multiple
V_WIDTH = 32                            # visionWidth
V_DEPTH = 2                             # ViT depth
V_HEADS = 4                             # ViT heads

T_TXT = 8                               # text sequence length (<= 40)
HIDDEN = 32                             # med_config.hidden_size
T_HEADS = 4
T_LAYERS = 2
INTER = 64                              # intermediate_size
VOCAB = 64
MAX_POS = 40
PAD_ID = 0
BOS_ID = 1
PROMPT_LEN = 4                          # len(tokenizer('a picture of ').input_ids) - 1
LABEL_SMOOTH = 0.1                      # BLIP BertLMHeadModel label smoothing
NEG_INF = -1e9

SLAB32_W = 32                           # width of the "narrow" matrix slab
SLABW_W = 128                           # width of the "wide" matrix slab
VEC_W = 128                             # width of the vector slab
TXT_ROWS = 16                           # rows of the packed per-example text slab

F32 = jnp.float32
BF16 = jnp.bfloat16


# ==================== packed-parameter layout (static plans) ====================
def _make_plan(entries):
    plan, off = {}, 0
    for key, rows, cols in entries:
        plan[key] = (off, rows, cols)
        off += rows
    return plan, off


def _w32_entries():
    e = [("patch_w", CPP, V_WIDTH), ("vit_pos", VSEQ, V_WIDTH)]
    for l in range(V_DEPTH):
        e += [(f"v_proj_w_{l}", V_WIDTH, V_WIDTH),
              (f"v_fc2_w_{l}", 4 * V_WIDTH, V_WIDTH)]
    e += [("word_emb", VOCAB, HIDDEN), ("pos_emb", T_TXT, HIDDEN)]
    for l in range(T_LAYERS):
        e += [(f"sa_o_w_{l}", HIDDEN, HIDDEN), (f"ca_q_w_{l}", HIDDEN, HIDDEN),
              (f"ca_o_w_{l}", HIDDEN, HIDDEN), (f"ff2_w_{l}", INTER, HIDDEN)]
    e += [("cls_tf_w", HIDDEN, HIDDEN)]
    return e


def _wide_entries():
    e = []
    for l in range(V_DEPTH):
        e += [(f"v_qkv_w_{l}", V_WIDTH, 3 * V_WIDTH),
              (f"v_fc1_w_{l}", V_WIDTH, 4 * V_WIDTH)]
    for l in range(T_LAYERS):
        e += [(f"sa_qkv_w_{l}", HIDDEN, 3 * HIDDEN),
              (f"ca_kv_w_{l}", V_WIDTH, 2 * HIDDEN),
              (f"ff1_w_{l}", HIDDEN, INTER)]
    return e


def _vec_entries():
    e = [("patch_b", 1, V_WIDTH), ("cls_tok", 1, V_WIDTH)]
    for l in range(V_DEPTH):
        e += [(f"v_ln1_g_{l}", 1, V_WIDTH), (f"v_ln1_b_{l}", 1, V_WIDTH),
              (f"v_qkv_b_{l}", 1, 3 * V_WIDTH), (f"v_proj_b_{l}", 1, V_WIDTH),
              (f"v_ln2_g_{l}", 1, V_WIDTH), (f"v_ln2_b_{l}", 1, V_WIDTH),
              (f"v_fc1_b_{l}", 1, 4 * V_WIDTH), (f"v_fc2_b_{l}", 1, V_WIDTH)]
    e += [("v_norm_g", 1, V_WIDTH), ("v_norm_b", 1, V_WIDTH),
          ("tok_type_emb", 1, HIDDEN), ("emb_ln_g", 1, HIDDEN), ("emb_ln_b", 1, HIDDEN)]
    for l in range(T_LAYERS):
        e += [(f"sa_qkv_b_{l}", 1, 3 * HIDDEN), (f"sa_o_b_{l}", 1, HIDDEN),
              (f"sa_ln_g_{l}", 1, HIDDEN), (f"sa_ln_b_{l}", 1, HIDDEN),
              (f"ca_q_b_{l}", 1, HIDDEN), (f"ca_kv_b_{l}", 1, 2 * HIDDEN),
              (f"ca_o_b_{l}", 1, HIDDEN), (f"ca_ln_g_{l}", 1, HIDDEN),
              (f"ca_ln_b_{l}", 1, HIDDEN), (f"ff1_b_{l}", 1, INTER),
              (f"ff2_b_{l}", 1, HIDDEN), (f"ff_ln_g_{l}", 1, HIDDEN),
              (f"ff_ln_b_{l}", 1, HIDDEN)]
    e += [("cls_tf_b", 1, HIDDEN), ("cls_ln_g", 1, HIDDEN),
          ("cls_ln_b", 1, HIDDEN), ("lm_bias", 1, VOCAB)]
    return e


W32_PLAN, W32_ROWS = _make_plan(_w32_entries())
WIDE_PLAN, WIDE_ROWS = _make_plan(_wide_entries())
VEC_PLAN, _VEC_RAW_ROWS = _make_plan(_vec_entries())
VEC_ROWS = ((_VEC_RAW_ROWS + 7) // 8) * 8


# ==================== in-kernel helpers (operate on VMEM values) ====================
def _mat32(ref, key):
    off, rows, _ = W32_PLAN[key]
    return ref[off:off + rows, :]                 # (rows, 32) bf16


def _matw(ref, key):
    off, rows, cols = WIDE_PLAN[key]
    return ref[off:off + rows, 0:cols]            # (rows, cols) bf16, lane-aligned slice


def _vecp(ref, key):
    off, _, cols = VEC_PLAN[key]
    return ref[off:off + 1, 0:cols].astype(F32)   # (1, cols) f32


def _dense(x, w_bf16, b_f32):
    # bf16 x bf16 MXU matmul with f32 accumulation; bias add in f32.
    return jnp.dot(x.astype(BF16), w_bf16, preferred_element_type=F32) + b_f32


def _gelu(x):
    # TODO(synk): tanh approximation of GELU (torch default is exact erf).
    return jax.nn.gelu(x, approximate=True)


def _ln(x, g, b, eps):
    mu = jnp.mean(x, axis=-1, keepdims=True)
    var = jnp.mean(jnp.square(x - mu), axis=-1, keepdims=True)
    return (x - mu) * jax.lax.rsqrt(var + eps) * g + b


def _mha(q2, k2, v2, w_o, b_o, tq, tk, heads, mask_add):
    """Head-batched multi-head attention for a single example.

    q2: (tq, D), k2/v2: (tk, D), w_o: (D, D_out) bf16, b_o: (1, D_out) f32,
    mask_add: additive mask of shape (1, tq, tk).
    Heads are gathered into the batch dim of two 3-D einsums (one score, one
    PV contraction); the softmax normalization uses an EUP reciprocal folded
    into the per-head outputs; head merge + output projection is a fused
    per-head matmul accumulation (no concatenate of the merged heads needed).
    """
    d = q2.shape[1]
    hd = d // heads
    scale = hd ** -0.5
    q = jnp.concatenate([q2[:, h * hd:(h + 1) * hd].reshape(1, tq, hd)
                         for h in range(heads)], axis=0)          # (H, tq, hd)
    k = jnp.concatenate([k2[:, h * hd:(h + 1) * hd].reshape(1, tk, hd)
                         for h in range(heads)], axis=0)          # (H, tk, hd)
    v = jnp.concatenate([v2[:, h * hd:(h + 1) * hd].reshape(1, tk, hd)
                         for h in range(heads)], axis=0)          # (H, tk, hd)
    s = jnp.einsum("hqd,hkd->hqk", q, k, preferred_element_type=F32) * scale
    s = s + mask_add
    s = s - jnp.max(s, axis=-1, keepdims=True)
    p = jnp.exp(s)
    inv = pl.reciprocal(jnp.sum(p, axis=-1, keepdims=True), approx=True)
    o = jnp.einsum("hqk,hkd->hqd", p, v, preferred_element_type=F32) * inv
    out = b_o                                                      # (1, D_out) -> broadcasts
    for h in range(heads):
        out = out + jnp.dot(o[h].astype(BF16), w_o[h * hd:(h + 1) * hd, :],
                            preferred_element_type=F32)
    return out


# ==================== the fused per-example forward kernel ====================
def _blip_forward_kernel(patches_ref, text_ref, w32_ref, wide_ref, vec_ref, out_ref):
    m32 = lambda k: _mat32(w32_ref, k)
    mw = lambda k: _matw(wide_ref, k)
    vp = lambda k: _vecp(vec_ref, k)

    # ---------------- ViT visual encoder (pre-norm, timm style) ----------------
    patches = patches_ref[0]                                       # (VSEQ, CPP); rows 0 and >=TV zero
    x = _dense(patches, m32("patch_w"), vp("patch_b"))             # (VSEQ, V_WIDTH)
    is_cls = jax.lax.broadcasted_iota(jnp.int32, (VSEQ, V_WIDTH), 0) == 0
    x = jnp.where(is_cls, jnp.broadcast_to(vp("cls_tok"), (VSEQ, V_WIDTH)), x)
    x = x + m32("vit_pos").astype(F32)                             # cls token + pos embed

    # additive key mask hiding the padded visual positions (>= TV)
    vk = jax.lax.broadcasted_iota(jnp.int32, (1, VSEQ, VSEQ), 2)
    vit_mask = (vk >= TV).astype(F32) * NEG_INF                    # (1, VSEQ, VSEQ)

    for l in range(V_DEPTH):
        h = _ln(x, vp(f"v_ln1_g_{l}"), vp(f"v_ln1_b_{l}"), 1e-6)
        qkv = _dense(h, mw(f"v_qkv_w_{l}"), vp(f"v_qkv_b_{l}"))    # fused QKV projection
        attn = _mha(qkv[:, :V_WIDTH], qkv[:, V_WIDTH:2 * V_WIDTH], qkv[:, 2 * V_WIDTH:],
                    m32(f"v_proj_w_{l}"), vp(f"v_proj_b_{l}"),
                    VSEQ, VSEQ, V_HEADS, vit_mask)
        x = x + attn
        h = _ln(x, vp(f"v_ln2_g_{l}"), vp(f"v_ln2_b_{l}"), 1e-6)
        h = _gelu(_dense(h, mw(f"v_fc1_w_{l}"), vp(f"v_fc1_b_{l}")))
        h = _dense(h, m32(f"v_fc2_w_{l}"), vp(f"v_fc2_b_{l}"))
        x = x + h

    img = _ln(x, vp("v_norm_g"), vp("v_norm_b"), 1e-6)             # (VSEQ, V_WIDTH)

    # imageAtts = ones over the TV real tokens -> only the pads are masked
    ck = jax.lax.broadcasted_iota(jnp.int32, (1, T_TXT, VSEQ), 2)
    cross_mask = (ck >= TV).astype(F32) * NEG_INF                  # (1, T, VSEQ)

    # ---------------- BERT embeddings (word + pos + token_type, LN) ----------------
    tx = text_ref[0]                                               # (TXT_ROWS, 128) f32
    ids_col = tx[0:T_TXT, 0:1].astype(jnp.int32)                   # (T, 1)
    lbl_col = tx[0:T_TXT, 1:2].astype(jnp.int32)                   # (T, 1) shifted labels (clamped)
    valid_col = tx[0:T_TXT, 2:3]                                   # (T, 1) f32
    amask_row = tx[T_TXT:T_TXT + 1, 0:T_TXT]                       # (1, T) f32 padding mask

    vocab_iota = jax.lax.broadcasted_iota(jnp.int32, (T_TXT, VOCAB), 1)
    word_emb = m32("word_emb")                                     # (VOCAB, HIDDEN) bf16
    word_oh = (vocab_iota == ids_col).astype(BF16)                 # in-kernel gather via iota one-hot
    t = jnp.dot(word_oh, word_emb, preferred_element_type=F32)     # (T, HIDDEN)
    t = t + vp("tok_type_emb") + m32("pos_emb").astype(F32)        # token_type_id == 0
    xt = _ln(t, vp("emb_ln_g"), vp("emb_ln_b"), 1e-12)

    # causal * padding additive self-attention mask, built in-kernel
    qi = jax.lax.broadcasted_iota(jnp.int32, (1, T_TXT, T_TXT), 1)
    ki = jax.lax.broadcasted_iota(jnp.int32, (1, T_TXT, T_TXT), 2)
    causal = (qi >= ki).astype(F32)
    self_mask = (1.0 - causal * amask_row.reshape(1, 1, T_TXT)) * NEG_INF   # (1, T, T)

    # ---------------- BERT-LM decoder layers (post-LN) ----------------
    for l in range(T_LAYERS):
        qkv = _dense(xt, mw(f"sa_qkv_w_{l}"), vp(f"sa_qkv_b_{l}"))
        sa = _mha(qkv[:, :HIDDEN], qkv[:, HIDDEN:2 * HIDDEN], qkv[:, 2 * HIDDEN:],
                  m32(f"sa_o_w_{l}"), vp(f"sa_o_b_{l}"),
                  T_TXT, T_TXT, T_HEADS, self_mask)
        xt = _ln(xt + sa, vp(f"sa_ln_g_{l}"), vp(f"sa_ln_b_{l}"), 1e-12)

        q2 = _dense(xt, m32(f"ca_q_w_{l}"), vp(f"ca_q_b_{l}"))
        kv = _dense(img, mw(f"ca_kv_w_{l}"), vp(f"ca_kv_b_{l}"))   # fused cross K/V
        ca = _mha(q2, kv[:, :HIDDEN], kv[:, HIDDEN:],
                  m32(f"ca_o_w_{l}"), vp(f"ca_o_b_{l}"),
                  T_TXT, VSEQ, T_HEADS, cross_mask)
        xt = _ln(xt + ca, vp(f"ca_ln_g_{l}"), vp(f"ca_ln_b_{l}"), 1e-12)

        h = _gelu(_dense(xt, mw(f"ff1_w_{l}"), vp(f"ff1_b_{l}")))
        h = _dense(h, m32(f"ff2_w_{l}"), vp(f"ff2_b_{l}"))
        xt = _ln(xt + h, vp(f"ff_ln_g_{l}"), vp(f"ff_ln_b_{l}"), 1e-12)

    # ---------------- LM head (transform + LN, decoder tied to word embeddings) ----------------
    h = _gelu(_dense(xt, m32("cls_tf_w"), vp("cls_tf_b")))
    h = _ln(h, vp("cls_ln_g"), vp("cls_ln_b"), 1e-12)
    # contract hidden dims of both operands: no transposed embedding copy in HBM
    logits = jax.lax.dot_general(h.astype(BF16), word_emb, (((1,), (1,)), ((), ())),
                                 preferred_element_type=F32) + vp("lm_bias")   # (T, VOCAB)

    # ---------------- shifted, label-smoothed cross-entropy (per-example partials) ----------------
    m = jnp.max(logits, axis=-1, keepdims=True)
    lse = jnp.log(jnp.sum(jnp.exp(logits - m), axis=-1, keepdims=True)) + m
    tgt = jnp.sum((vocab_iota == lbl_col).astype(F32) * logits, axis=-1, keepdims=True)
    mean_logit = jnp.mean(logits, axis=-1, keepdims=True)
    nll = lse - (1.0 - LABEL_SMOOTH) * tgt - LABEL_SMOOTH * mean_logit
    total = jnp.sum(nll * valid_col, axis=0, keepdims=True)        # (1, 1)
    count = jnp.sum(valid_col, axis=0, keepdims=True)              # (1, 1)

    r = jax.lax.broadcasted_iota(jnp.int32, (8, 128), 0)
    c = jax.lax.broadcasted_iota(jnp.int32, (8, 128), 1)
    out_tile = (jnp.where((r == 0) & (c == 0), total, 0.0)
                + jnp.where((r == 0) & (c == 1), count, 0.0))
    out_ref[...] = out_tile.reshape(1, 8, 128)


# ==================== host-side parameter packing ====================
def _get_raw(p, key):
    if key == "vit_pos":
        return p["pos"]
    if key == "cls_tok":
        return p["cls"]
    if key == "pos_emb":
        return p["pos_emb"][:T_TXT]          # only the first T_TXT positions are used
    base, _, suf = key.rpartition("_")
    if suf.isdigit() and base in p and p[base].ndim == 3:
        return p[base][int(suf)]
    return p[key]


def _pack_slab(p, plan, total_rows, width):
    slab = jnp.zeros((total_rows, width), F32)
    for key, (off, rows, cols) in plan.items():
        a = _get_raw(p, key).reshape(rows, cols).astype(F32)
        slab = slab.at[off:off + rows, :cols].set(a)
    return slab.astype(BF16)


def pack_params(p):
    """Pack the ~50 raw parameter arrays into 3 lane-dense bf16 slabs."""
    w32 = _pack_slab(p, W32_PLAN, W32_ROWS, SLAB32_W)
    wide = _pack_slab(p, WIDE_PLAN, WIDE_ROWS, SLABW_W)
    vecs = _pack_slab(p, VEC_PLAN, VEC_ROWS, VEC_W)
    return (w32, wide, vecs)


# ==================== host-side wrapper ====================
def blip_decoder_forward(packed, image, input_ids, attention_mask):
    """Pallas port of BLIP_Decoder.forward -> scalar LM loss."""
    w32_slab, wide_slab, vec_slab = packed
    bsz = image.shape[0]

    # patch extraction NCHW -> (B, N_PATCH, C*P*P); row 0 is the CLS slot and
    # rows >= TV are padding (both zero) so everything is one lane-dense slab.
    x = image.reshape(bsz, C_IN, IMG // PATCH, PATCH, IMG // PATCH, PATCH)
    x = x.transpose(0, 2, 4, 1, 3, 5).reshape(bsz, N_PATCH, CPP)
    patches = jnp.pad(x, ((0, 0), (1, VSEQ - 1 - N_PATCH), (0, 0)))          # (B, VSEQ, CPP)

    # text.input_ids[:, 0] = bos ; decoder targets (-100 on pad and prompt)
    ids = input_ids.astype(jnp.int32).at[:, 0].set(BOS_ID)
    labels = jnp.where(ids == PAD_ID, -100, ids)
    labels = labels.at[:, :PROMPT_LEN].set(-100)
    labels_next = jnp.concatenate(
        [labels[:, 1:], jnp.full((bsz, 1), -100, jnp.int32)], axis=1)
    valid = (labels_next != -100).astype(F32)
    lbl = jnp.maximum(labels_next, 0).astype(F32)

    # one packed (B, TXT_ROWS, 128) slab: rows 0..T-1 -> lanes [id, label, valid],
    # row T -> attention_mask along lanes.
    per_pos = jnp.stack([ids.astype(F32), lbl, valid], axis=-1)              # (B, T, 3)
    per_pos = jnp.pad(per_pos, ((0, 0), (0, 0), (0, 128 - 3)))
    amask_row = jnp.pad(attention_mask.astype(F32)[:, None, :],
                        ((0, 0), (0, 0), (0, 128 - T_TXT)))
    text_slab = jnp.concatenate(
        [per_pos, amask_row,
         jnp.zeros((bsz, TXT_ROWS - T_TXT - 1, 128), F32)], axis=1)          # (B, 16, 128)

    grid_spec = pltpu.PrefetchScalarGridSpec(
        num_scalar_prefetch=0,
        grid=(bsz,),
        in_specs=[
            pl.BlockSpec((1, VSEQ, CPP), lambda b: (b, 0, 0)),
            pl.BlockSpec((1, TXT_ROWS, 128), lambda b: (b, 0, 0)),
            # parameter slabs: constant block index -> DMA'd once, resident
            pl.BlockSpec((W32_ROWS, SLAB32_W), lambda b: (0, 0)),
            pl.BlockSpec((WIDE_ROWS, SLABW_W), lambda b: (0, 0)),
            pl.BlockSpec((VEC_ROWS, VEC_W), lambda b: (0, 0)),
        ],
        out_specs=pl.BlockSpec((1, 8, 128), lambda b: (b, 0, 0)),
    )
    parts = pl.pallas_call(
        _blip_forward_kernel,
        out_shape=jax.ShapeDtypeStruct((bsz, 8, 128), F32),
        grid_spec=grid_spec,
        compiler_params=pltpu.CompilerParams(
            dimension_semantics=("parallel",),        # batch across cores on v7x
            vmem_limit_bytes=32 * 1024 * 1024),
    )(patches, text_slab, w32_slab, wide_slab, vec_slab)

    total = jnp.sum(parts[:, 0, 0])
    count = jnp.maximum(jnp.sum(parts[:, 0, 1]), 1.0)
    return total / count


# ==================== deterministic parameter init ====================
def init_params(key):
    ks = iter(jax.random.split(key, 64))

    def nrm(shape):
        return jax.random.normal(next(ks), shape, F32) * 0.02

    p = {}
    # ViT
    p["patch_w"] = nrm((CPP, V_WIDTH))
    p["patch_b"] = jnp.zeros((1, V_WIDTH), F32)
    p["cls"] = nrm((1, V_WIDTH))
    p["pos"] = jnp.pad(nrm((TV, V_WIDTH)), ((0, VSEQ - TV), (0, 0)))   # pad pos rows are never used
    p["v_ln1_g"] = jnp.ones((V_DEPTH, 1, V_WIDTH), F32)
    p["v_ln1_b"] = jnp.zeros((V_DEPTH, 1, V_WIDTH), F32)
    p["v_qkv_w"] = nrm((V_DEPTH, V_WIDTH, 3 * V_WIDTH))
    p["v_qkv_b"] = jnp.zeros((V_DEPTH, 1, 3 * V_WIDTH), F32)
    p["v_proj_w"] = nrm((V_DEPTH, V_WIDTH, V_WIDTH))
    p["v_proj_b"] = jnp.zeros((V_DEPTH, 1, V_WIDTH), F32)
    p["v_ln2_g"] = jnp.ones((V_DEPTH, 1, V_WIDTH), F32)
    p["v_ln2_b"] = jnp.zeros((V_DEPTH, 1, V_WIDTH), F32)
    p["v_fc1_w"] = nrm((V_DEPTH, V_WIDTH, 4 * V_WIDTH))
    p["v_fc1_b"] = jnp.zeros((V_DEPTH, 1, 4 * V_WIDTH), F32)
    p["v_fc2_w"] = nrm((V_DEPTH, 4 * V_WIDTH, V_WIDTH))
    p["v_fc2_b"] = jnp.zeros((V_DEPTH, 1, V_WIDTH), F32)
    p["v_norm_g"] = jnp.ones((1, V_WIDTH), F32)
    p["v_norm_b"] = jnp.zeros((1, V_WIDTH), F32)
    # BERT embeddings
    p["word_emb"] = nrm((VOCAB, HIDDEN))
    p["pos_emb"] = nrm((MAX_POS, HIDDEN))
    p["tok_type_emb"] = nrm((1, HIDDEN))
    p["emb_ln_g"] = jnp.ones((1, HIDDEN), F32)
    p["emb_ln_b"] = jnp.zeros((1, HIDDEN), F32)
    # BERT layers (stacked)
    p["sa_qkv_w"] = nrm((T_LAYERS, HIDDEN, 3 * HIDDEN))
    p["sa_qkv_b"] = jnp.zeros((T_LAYERS, 1, 3 * HIDDEN), F32)
    p["sa_o_w"] = nrm((T_LAYERS, HIDDEN, HIDDEN))
    p["sa_o_b"] = jnp.zeros((T_LAYERS, 1, HIDDEN), F32)
    p["sa_ln_g"] = jnp.ones((T_LAYERS, 1, HIDDEN), F32)
    p["sa_ln_b"] = jnp.zeros((T_LAYERS, 1, HIDDEN), F32)
    p["ca_q_w"] = nrm((T_LAYERS, HIDDEN, HIDDEN))
    p["ca_q_b"] = jnp.zeros((T_LAYERS, 1, HIDDEN), F32)
    p["ca_kv_w"] = nrm((T_LAYERS, V_WIDTH, 2 * HIDDEN))            # encoder_width = vision_width
    p["ca_kv_b"] = jnp.zeros((T_LAYERS, 1, 2 * HIDDEN), F32)
    p["ca_o_w"] = nrm((T_LAYERS, HIDDEN, HIDDEN))
    p["ca_o_b"] = jnp.zeros((T_LAYERS, 1, HIDDEN), F32)
    p["ca_ln_g"] = jnp.ones((T_LAYERS, 1, HIDDEN), F32)
    p["ca_ln_b"] = jnp.zeros((T_LAYERS, 1, HIDDEN), F32)
    p["ff1_w"] = nrm((T_LAYERS, HIDDEN, INTER))
    p["ff1_b"] = jnp.zeros((T_LAYERS, 1, INTER), F32)
    p["ff2_w"] = nrm((T_LAYERS, INTER, HIDDEN))
    p["ff2_b"] = jnp.zeros((T_LAYERS, 1, HIDDEN), F32)
    p["ff_ln_g"] = jnp.ones((T_LAYERS, 1, HIDDEN), F32)
    p["ff_ln_b"] = jnp.zeros((T_LAYERS, 1, HIDDEN), F32)
    # LM head
    p["cls_tf_w"] = nrm((HIDDEN, HIDDEN))
    p["cls_tf_b"] = jnp.zeros((1, HIDDEN), F32)
    p["cls_ln_g"] = jnp.ones((1, HIDDEN), F32)
    p["cls_ln_b"] = jnp.zeros((1, HIDDEN), F32)
    p["lm_bias"] = jnp.zeros((1, VOCAB), F32)
    return p


if __name__ == "__main__":
    key = jax.random.PRNGKey(0)
    pkey, ikey, tkey = jax.random.split(key, 3)

    params = init_params(pkey)
    packed = pack_params(params)                    # pack once, outside jit
    image = jax.random.normal(ikey, (B, C_IN, IMG, IMG), F32)

    # synthetic "tokenized caption": ids in [5, VOCAB), second sample padded.
    # BOS is set before deriving the attention mask so they can never disagree.
    # TODO(synk): real BertTokenizer string handling cannot be a kernel.
    input_ids = jax.random.randint(tkey, (B, T_TXT), 5, VOCAB, dtype=jnp.int32)
    input_ids = input_ids.at[:, 0].set(BOS_ID)
    input_ids = input_ids.at[1, -2:].set(PAD_ID)
    attention_mask = (input_ids != PAD_ID).astype(jnp.int32)

    loss = jax.jit(blip_decoder_forward)(packed, image, input_ids, attention_mask)
    jax.block_until_ready(loss)
    assert loss.shape == () and bool(jnp.isfinite(loss))
    print("KERNEL_OK")
</pallas_src>

<mosaic_0001>
module attributes {stable_mosaic.version = 11 : i64} {
  func.func @_blip_forward_kernel(%arg0: i32, %arg1: memref<1x8x192xf32, #tpu.memory_space<vmem>>, %arg2: memref<1x16x128xf32, #tpu.memory_space<vmem>>, %arg3: memref<944x32xbf16, #tpu.memory_space<vmem>>, %arg4: memref<320x128xbf16, #tpu.memory_space<vmem>>, %arg5: memref<56x128xbf16, #tpu.memory_space<vmem>>, %arg6: memref<1x8x128xf32, #tpu.memory_space<vmem>>) attributes {dimension_semantics = [#tpu.dimension_semantics<parallel>], iteration_bounds = array<i64: 2>, scalar_prefetch = 0 : i64, scratch_operands = 0 : i64, tpu.core_type = #tpu.core_type<tc>, window_params = [{transform_indices = @transform_0, window_bounds = array<i64: 1, 8, 192>}, {transform_indices = @transform_1, window_bounds = array<i64: 1, 16, 128>}, {pipeline_mode = #tpu.pipeline_mode<synchronous>, transform_indices = @transform_2, window_bounds = array<i64: 944, 32>}, {pipeline_mode = #tpu.pipeline_mode<synchronous>, transform_indices = @transform_3, window_bounds = array<i64: 320, 128>}, {pipeline_mode = #tpu.pipeline_mode<synchronous>, transform_indices = @transform_4, window_bounds = array<i64: 56, 128>}, {transform_indices = @transform_5, window_bounds = array<i64: 1, 8, 128>}]} {
    %c0 = arith.constant 0 : index
    %c0_0 = arith.constant 0 : index
    %c0_1 = arith.constant 0 : index
    %0 = vector.load %arg1[%c0, %c0_0, %c0_1] : memref<1x8x192xf32, #tpu.memory_space<vmem>>, vector<1x8x192xf32>
    %1 = vector.shape_cast %0 : vector<1x8x192xf32> to vector<8x192xf32>
    %c0_2 = arith.constant 0 : index
    %c0_3 = arith.constant 0 : index
    %2 = vector.load %arg3[%c0_2, %c0_3] : memref<944x32xbf16, #tpu.memory_space<vmem>>, vector<192x32xbf16>
    %c0_4 = arith.constant 0 : index
    %c0_5 = arith.constant 0 : index
    %3 = vector.load %arg5[%c0_4, %c0_5] : memref<56x128xbf16, #tpu.memory_space<vmem>>, vector<1x32xbf16>
    %4 = arith.extf %3 : vector<1x32xbf16> to vector<1x32xf32>
    %5 = arith.truncf %1 : vector<8x192xf32> to vector<8x192xbf16>
    %cst = arith.constant dense<0.000000e+00> : vector<8x32xf32>
    %6 = tpu.matmul %5, %2, %cst {dimension_numbers = #tpu.dot_dimension_numbers<[1], [0], [0], [1], [0, 0, 1, 1], [], []>} : vector<8x192xbf16>, vector<192x32xbf16>, vector<8x32xf32> -> vector<8x32xf32>
    %7 = vector.broadcast %4 : vector<1x32xf32> to vector<8x32xf32>
    %8 = arith.addf %6, %7 : vector<8x32xf32>
    %9 = tpu.iota {dimensions = array<i32: 0>} : vector<8x32xi32>
    %c0_i32 = arith.constant 0 : i32
    %10 = vector.broadcast %c0_i32 : i32 to vector<8x32xi32>
    %11 = arith.cmpi eq, %9, %10 : vector<8x32xi32>
    %c1 = arith.constant 1 : index
    %c0_6 = arith.constant 0 : index
    %12 = vector.load %arg5[%c1, %c0_6] : memref<56x128xbf16, #tpu.memory_space<vmem>>, vector<1x32xbf16>
    %13 = arith.extf %12 : vector<1x32xbf16> to vector<1x32xf32>
    %14 = vector.shape_cast %13 : vector<1x32xf32> to vector<1x32xf32>
    %15 = vector.broadcast %14 : vector<1x32xf32> to vector<8x32xf32>
    %16 = arith.select %11, %15, %8 : vector<8x32xi1>, vector<8x32xf32>
    %c192 = arith.constant 192 : index
    %c0_7 = arith.constant 0 : index
    %17 = vector.load %arg3[%c192, %c0_7] : memref<944x32xbf16, #tpu.memory_space<vmem>>, vector<8x32xbf16>
    %18 = arith.extf %17 : vector<8x32xbf16> to vector<8x32xf32>
    %19 = arith.addf %16, %18 : vector<8x32xf32>
    %20 = tpu.iota {dimensions = array<i32: 2>} : vector<1x8x8xi32>
    %c5_i32 = arith.constant 5 : i32
    %21 = vector.broadcast %c5_i32 : i32 to vector<1x8x8xi32>
    %22 = arith.cmpi sge, %20, %21 : vector<1x8x8xi32>
    %23 = arith.extui %22 : vector<1x8x8xi1> to vector<1x8x8xi32>
    %24 = arith.sitofp %23 : vector<1x8x8xi32> to vector<1x8x8xf32>
    %cst_8 = arith.constant -1.000000e+09 : f32
    %25 = vector.broadcast %cst_8 : f32 to vector<1x8x8xf32>
    %26 = arith.mulf %24, %25 : vector<1x8x8xf32>
    %c2 = arith.constant 2 : index
    %c0_9 = arith.constant 0 : index
    %27 = vector.load %arg5[%c2, %c0_9] : memref<56x128xbf16, #tpu.memory_space<vmem>>, vector<1x32xbf16>
    %28 = arith.extf %27 : vector<1x32xbf16> to vector<1x32xf32>
    %c3 = arith.constant 3 : index
    %c0_10 = arith.constant 0 : index
    %29 = vector.load %arg5[%c3, %c0_10] : memref<56x128xbf16, #tpu.memory_space<vmem>>, vector<1x32xbf16>
    %30 = arith.extf %29 : vector<1x32xbf16> to vector<1x32xf32>
    %cst_11 = arith.constant dense<0.000000e+00> : vector<8xf32>
    %31 = vector.multi_reduction <add>, %19, %cst_11 [1] : vector<8x32xf32> to vector<8xf32>
    %32 = vector.shape_cast %31 : vector<8xf32> to vector<8x1xf32>
    %cst_12 = arith.constant 3.200000e+01 : f32
    %33 = vector.broadcast %cst_12 : f32 to vector<8x1xf32>
    %34 = arith.divf %32, %33 : vector<8x1xf32>
    %35 = vector.broadcast %34 : vector<8x1xf32> to vector<8x32xf32>
    %36 = arith.subf %19, %35 : vector<8x32xf32>
    %37 = arith.mulf %36, %36 : vector<8x32xf32>
    %cst_13 = arith.constant dense<0.000000e+00> : vector<8xf32>
    %38 = vector.multi_reduction <add>, %37, %cst_13 [1] : vector<8x32xf32> to vector<8xf32>
    %39 = vector.shape_cast %38 : vector<8xf32> to vector<8x1xf32>
    %cst_14 = arith.constant 3.200000e+01 : f32
    %40 = vector.broadcast %cst_14 : f32 to vector<8x1xf32>
    %41 = arith.divf %39, %40 : vector<8x1xf32>
    %42 = vector.broadcast %34 : vector<8x1xf32> to vector<8x32xf32>
    %43 = arith.subf %19, %42 : vector<8x32xf32>
    %cst_15 = arith.constant 9.99999997E-7 : f32
    %44 = vector.broadcast %cst_15 : f32 to vector<8x1xf32>
    %45 = arith.addf %41, %44 : vector<8x1xf32>
    %46 = math.rsqrt %45 : vector<8x1xf32>
    %47 = vector.broadcast %46 : vector<8x1xf32> to vector<8x32xf32>
    %48 = arith.mulf %43, %47 : vector<8x32xf32>
    %49 = vector.broadcast %28 : vector<1x32xf32> to vector<8x32xf32>
    %50 = arith.mulf %48, %49 : vector<8x32xf32>
    %51 = vector.broadcast %30 : vector<1x32xf32> to vector<8x32xf32>
    %52 = arith.addf %50, %51 : vector<8x32xf32>
    %c0_16 = arith.constant 0 : index
    %c0_17 = arith.constant 0 : index
    %53 = vector.load %arg4[%c0_16, %c0_17] : memref<320x128xbf16, #tpu.memory_space<vmem>>, vector<32x96xbf16>
    %c4 = arith.constant 4 : index
    %c0_18 = arith.constant 0 : index
    %54 = vector.load %arg5[%c4, %c0_18] : memref<56x128xbf16, #tpu.memory_space<vmem>>, vector<1x96xbf16>
    %55 = arith.extf %54 : vector<1x96xbf16> to vector<1x96xf32>
    %56 = arith.truncf %52 : vector<8x32xf32> to vector<8x32xbf16>
    %cst_19 = arith.constant dense<0.000000e+00> : vector<8x96xf32>
    %57 = tpu.matmul %56, %53, %cst_19 {dimension_numbers = #tpu.dot_dimension_numbers<[1], [0], [0], [1], [0, 0, 1, 1], [], []>} : vector<8x32xbf16>, vector<32x96xbf16>, vector<8x96xf32> -> vector<8x96xf32>
    %58 = vector.broadcast %55 : vector<1x96xf32> to vector<8x96xf32>
    %59 = arith.addf %57, %58 : vector<8x96xf32>
    %60 = vector.extract_strided_slice %59 {offsets = [0, 0], sizes = [8, 32], strides = [1, 1]} : vector<8x96xf32> to vector<8x32xf32>
    %61 = vector.extract_strided_slice %59 {offsets = [0, 32], sizes = [8, 32], strides = [1, 1]} : vector<8x96xf32> to vector<8x32xf32>
    %62 = vector.extract_strided_slice %59 {offsets = [0, 64], sizes = [8, 32], strides = [1, 1]} : vector<8x96xf32> to vector<8x32xf32>
    %c200 = arith.constant 200 : index
    %c0_20 = arith.constant 0 : index
    %63 = vector.load %arg3[%c200, %c0_20] : memref<944x32xbf16, #tpu.memory_space<vmem>>, vector<32x32xbf16>
    %c5 = arith.constant 5 : index
    %c0_21 = arith.constant 0 : index
    %64 = vector.load %arg5[%c5, %c0_21] : memref<56x128xbf16, #tpu.memory_space<vmem>>, vector<1x32xbf16>
    %65 = arith.extf %64 : vector<1x32xbf16> to vector<1x32xf32>
    %66 = vector.extract_strided_slice %60 {offsets = [0, 0], sizes = [8, 8], strides = [1, 1]} : vector<8x32xf32> to vector<8x8xf32>
    %67 = vector.shape_cast %66 : vector<8x8xf32> to vector<1x8x8xf32>
    %68 = vector.extract_strided_slice %60 {offsets = [0, 8], sizes = [8, 8], strides = [1, 1]} : vector<8x32xf32> to vector<8x8xf32>
    %69 = vector.shape_cast %68 : vector<8x8xf32> to vector<1x8x8xf32>
    %70 = vector.extract_strided_slice %60 {offsets = [0, 16], sizes = [8, 8], strides = [1, 1]} : vector<8x32xf32> to vector<8x8xf32>
    %71 = vector.shape_cast %70 : vector<8x8xf32> to vector<1x8x8xf32>
    %72 = vector.extract_strided_slice %60 {offsets = [0, 24], sizes = [8, 8], strides = [1, 1]} : vector<8x32xf32> to vector<8x8xf32>
    %73 = vector.shape_cast %72 : vector<8x8xf32> to vector<1x8x8xf32>
    %74 = tpu.concatenate %67, %69, %71, %73 in 0 : vector<1x8x8xf32>, vector<1x8x8xf32>, vector<1x8x8xf32>, vector<1x8x8xf32> -> vector<4x8x8xf32>
    %75 = vector.extract_strided_slice %61 {offsets = [0, 0], sizes = [8, 8], strides = [1, 1]} : vector<8x32xf32> to vector<8x8xf32>
    %76 = vector.shape_cast %75 : vector<8x8xf32> to vector<1x8x8xf32>
    %77 = vector.extract_strided_slice %61 {offsets = [0, 8], sizes = [8, 8], strides = [1, 1]} : vector<8x32xf32> to vector<8x8xf32>
    %78 = vector.shape_cast %77 : vector<8x8xf32> to vector<1x8x8xf32>
    %79 = vector.extract_strided_slice %61 {offsets = [0, 16], sizes = [8, 8], strides = [1, 1]} : vector<8x32xf32> to vector<8x8xf32>
    %80 = vector.shape_cast %79 : vector<8x8xf32> to vector<1x8x8xf32>
    %81 = vector.extract_strided_slice %61 {offsets = [0, 24], sizes = [8, 8], strides = [1, 1]} : vector<8x32xf32> to vector<8x8xf32>
    %82 = vector.shape_cast %81 : vector<8x8xf32> to vector<1x8x8xf32>
    %83 = tpu.concatenate %76, %78, %80, %82 in 0 : vector<1x8x8xf32>, vector<1x8x8xf32>, vector<1x8x8xf32>, vector<1x8x8xf32> -> vector<4x8x8xf32>
    %84 = vector.extract_strided_slice %62 {offsets = [0, 0], sizes = [8, 8], strides = [1, 1]} : vector<8x32xf32> to vector<8x8xf32>
    %85 = vector.shape_cast %84 : vector<8x8xf32> to vector<1x8x8xf32>
    %86 = vector.extract_strided_slice %62 {offsets = [0, 8], sizes = [8, 8], strides = [1, 1]} : vector<8x32xf32> to vector<8x8xf32>
    %87 = vector.shape_cast %86 : vector<8x8xf32> to vector<1x8x8xf32>
    %88 = vector.extract_strided_slice %62 {offsets = [0, 16], sizes = [8, 8], strides = [1, 1]} : vector<8x32xf32> to vector<8x8xf32>
    %89 = vector.shape_cast %88 : vector<8x8xf32> to vector<1x8x8xf32>
    %90 = vector.extract_strided_slice %62 {offsets = [0, 24], sizes = [8, 8], strides = [1, 1]} : vector<8x32xf32> to vector<8x8xf32>
    %91 = vector.shape_cast %90 : vector<8x8xf32> to vector<1x8x8xf32>
    %92 = tpu.concatenate %85, %87, %89, %91 in 0 : vector<1x8x8xf32>, vector<1x8x8xf32>, vector<1x8x8xf32>, vector<1x8x8xf32> -> vector<4x8x8xf32>
    "tpu.trace_start"() <{level = 10 : i32, message = "hqd,hkd->hqk"}> : () -> ()
    %cst_22 = arith.constant dense<0.000000e+00> : vector<4x8x8xf32>
    %93 = tpu.matmul %74, %83, %cst_22 {dimension_numbers = #tpu.dot_dimension_numbers<[2], [2], [1], [1], [0, 0, 0, 1, 1, 1], [0], [0]>} : vector<4x8x8xf32>, vector<4x8x8xf32>, vector<4x8x8xf32> -> vector<4x8x8xf32>
    "tpu.trace_stop"() : () -> ()
    %cst_23 = arith.constant 0.353553385 : f32
    %94 = vector.broadcast %cst_23 : f32 to vector<4x8x8xf32>
    %95 = arith.mulf %93, %94 : vector<4x8x8xf32>
    %96 = vector.broadcast %26 : vector<1x8x8xf32> to vector<4x8x8xf32>
    %97 = arith.addf %95, %96 : vector<4x8x8xf32>
    %cst_24 = arith.constant dense<0xFF800000> : vector<4x8xf32>
    %98 = vector.multi_reduction <maximumf>, %97, %cst_24 [2] : vector<4x8x8xf32> to vector<4x8xf32>
    %99 = vector.shape_cast %98 : vector<4x8xf32> to vector<4x8x1xf32>
    %100 = vector.broadcast %99 : vector<4x8x1xf32> to vector<4x8x8xf32>
    %101 = arith.subf %97, %100 : vector<4x8x8xf32>
    %102 = math.exp %101 : vector<4x8x8xf32>
    %cst_25 = arith.constant dense<0.000000e+00> : vector<4x8xf32>
    %103 = vector.multi_reduction <add>, %102, %cst_25 [2] : vector<4x8x8xf32> to vector<4x8xf32>
    %104 = vector.shape_cast %103 : vector<4x8xf32> to vector<4x8x1xf32>
    %105 = tpu.reciprocal %104 {approx = true} : vector<4x8x1xf32> -> vector<4x8x1xf32>
    "tpu.trace_start"() <{level = 10 : i32, message = "hqk,hkd->hqd"}> : () -> ()
    %cst_26 = arith.constant dense<0.000000e+00> : vector<4x8x8xf32>
    %106 = tpu.matmul %102, %92, %cst_26 {dimension_numbers = #tpu.dot_dimension_numbers<[2], [1], [1], [2], [0, 0, 0, 1, 1, 2], [0], [0]>} : vector<4x8x8xf32>, vector<4x8x8xf32>, vector<4x8x8xf32> -> vector<4x8x8xf32>
    "tpu.trace_stop"() : () -> ()
    %107 = vector.broadcast %105 : vector<4x8x1xf32> to vector<4x8x8xf32>
    %108 = arith.mulf %106, %107 : vector<4x8x8xf32>
    %109 = vector.extract_strided_slice %108 {offsets = [0, 0, 0], sizes = [1, 8, 8], strides = [1, 1, 1]} : vector<4x8x8xf32> to vector<1x8x8xf32>
    %110 = vector.shape_cast %109 : vector<1x8x8xf32> to vector<8x8xf32>
    %111 = arith.truncf %110 : vector<8x8xf32> to vector<8x8xbf16>
    %112 = vector.extract_strided_slice %63 {offsets = [0, 0], sizes = [8, 32], strides = [1, 1]} : vector<32x32xbf16> to vector<8x32xbf16>
    %cst_27 = arith.constant dense<0.000000e+00> : vector<8x32xf32>
    %113 = tpu.matmul %111, %112, %cst_27 {dimension_numbers = #tpu.dot_dimension_numbers<[1], [0], [0], [1], [0, 0, 1, 1], [], []>} : vector<8x8xbf16>, vector<8x32xbf16>, vector<8x32xf32> -> vector<8x32xf32>
    %114 = vector.broadcast %65 : vector<1x32xf32> to vector<8x32xf32>
    %115 = arith.addf %114, %113 : vector<8x32xf32>
    %116 = vector.extract_strided_slice %108 {offsets = [1, 0, 0], sizes = [1, 8, 8], strides = [1, 1, 1]} : vector<4x8x8xf32> to vector<1x8x8xf32>
    %117 = vector.shape_cast %116 : vector<1x8x8xf32> to vector<8x8xf32>
    %118 = arith.truncf %117 : vector<8x8xf32> to vector<8x8xbf16>
    %119 = vector.extract_strided_slice %63 {offsets = [8, 0], sizes = [8, 32], strides = [1, 1]} : vector<32x32xbf16> to vector<8x32xbf16>
    %cst_28 = arith.constant dense<0.000000e+00> : vector<8x32xf32>
    %120 = tpu.matmul %118, %119, %cst_28 {dimension_numbers = #tpu.dot_dimension_numbers<[1], [0], [0], [1], [0, 0, 1, 1], [], []>} : vector<8x8xbf16>, vector<8x32xbf16>, vector<8x32xf32> -> vector<8x32xf32>
    %121 = arith.addf %115, %120 : vector<8x32xf32>
    %122 = vector.extract_strided_slice %108 {offsets = [2, 0, 0], sizes = [1, 8, 8], strides = [1, 1, 1]} : vector<4x8x8xf32> to vector<1x8x8xf32>
    %123 = vector.shape_cast %122 : vector<1x8x8xf32> to vector<8x8xf32>
    %124 = arith.truncf %123 : vector<8x8xf32> to vector<8x8xbf16>
    %125 = vector.extract_strided_slice %63 {offsets = [16, 0], sizes = [8, 32], strides = [1, 1]} : vector<32x32xbf16> to vector<8x32xbf16>
    %cst_29 = arith.constant dense<0.000000e+00> : vector<8x32xf32>
    %126 = tpu.matmul %124, %125, %cst_29 {dimension_numbers = #tpu.dot_dimension_numbers<[1], [0], [0], [1], [0, 0, 1, 1], [], []>} : vector<8x8xbf16>, vector<8x32xbf16>, vector<8x32xf32> -> vector<8x32xf32>
    %127 = arith.addf %121, %126 : vector<8x32xf32>
    %128 = vector.extract_strided_slice %108 {offsets = [3, 0, 0], sizes = [1, 8, 8], strides = [1, 1, 1]} : vector<4x8x8xf32> to vector<1x8x8xf32>
    %129 = vector.shape_cast %128 : vector<1x8x8xf32> to vector<8x8xf32>
    %130 = arith.truncf %129 : vector<8x8xf32> to vector<8x8xbf16>
    %131 = vector.extract_strided_slice %63 {offsets = [24, 0], sizes = [8, 32], strides = [1, 1]} : vector<32x32xbf16> to vector<8x32xbf16>
    %cst_30 = arith.constant dense<0.000000e+00> : vector<8x32xf32>
    %132 = tpu.matmul %130, %131, %cst_30 {dimension_numbers = #tpu.dot_dimension_numbers<[1], [0], [0], [1], [0, 0, 1, 1], [], []>} : vector<8x8xbf16>, vector<8x32xbf16>, vector<8x32xf32> -> vector<8x32xf32>
    %133 = arith.addf %127, %132 : vector<8x32xf32>
    %134 = arith.addf %19, %133 : vector<8x32xf32>
    %c6 = arith.constant 6 : index
    %c0_31 = arith.constant 0 : index
    %135 = vector.load %arg5[%c6, %c0_31] : memref<56x128xbf16, #tpu.memory_space<vmem>>, vector<1x32xbf16>
    %136 = arith.extf %135 : vector<1x32xbf16> to vector<1x32xf32>
    %c7 = arith.constant 7 : index
    %c0_32 = arith.constant 0 : index
    %137 = vector.load %arg5[%c7, %c0_32] : memref<56x128xbf16, #tpu.memory_space<vmem>>, vector<1x32xbf16>
    %138 = arith.extf %137 : vector<1x32xbf16> to vector<1x32xf32>
    %cst_33 = arith.constant dense<0.000000e+00> : vector<8xf32>
    %139 = vector.multi_reduction <add>, %134, %cst_33 [1] : vector<8x32xf32> to vector<8xf32>
    %140 = vector.shape_cast %139 : vector<8xf32> to vector<8x1xf32>
    %cst_34 = arith.constant 3.200000e+01 : f32
    %141 = vector.broadcast %cst_34 : f32 to vector<8x1xf32>
    %142 = arith.divf %140, %141 : vector<8x1xf32>
    %143 = vector.broadcast %142 : vector<8x1xf32> to vector<8x32xf32>
    %144 = arith.subf %134, %143 : vector<8x32xf32>
    %145 = arith.mulf %144, %144 : vector<8x32xf32>
    %cst_35 = arith.constant dense<0.000000e+00> : vector<8xf32>
    %146 = vector.multi_reduction <add>, %145, %cst_35 [1] : vector<8x32xf32> to vector<8xf32>
    %147 = vector.shape_cast %146 : vector<8xf32> to vector<8x1xf32>
    %cst_36 = arith.constant 3.200000e+01 : f32
    %148 = vector.broadcast %cst_36 : f32 to vector<8x1xf32>
    %149 = arith.divf %147, %148 : vector<8x1xf32>
    %150 = vector.broadcast %142 : vector<8x1xf32> to vector<8x32xf32>
    %151 = arith.subf %134, %150 : vector<8x32xf32>
    %cst_37 = arith.constant 9.99999997E-7 : f32
    %152 = vector.broadcast %cst_37 : f32 to vector<8x1xf32>
    %153 = arith.addf %149, %152 : vector<8x1xf32>
    %154 = math.rsqrt %153 : vector<8x1xf32>
    %155 = vector.broadcast %154 : vector<8x1xf32> to vector<8x32xf32>
    %156 = arith.mulf %151, %155 : vector<8x32xf32>
    %157 = vector.broadcast %136 : vector<1x32xf32> to vector<8x32xf32>
    %158 = arith.mulf %156, %157 : vector<8x32xf32>
    %159 = vector.broadcast %138 : vector<1x32xf32> to vector<8x32xf32>
    %160 = arith.addf %158, %159 : vector<8x32xf32>
    %c32 = arith.constant 32 : index
    %c0_38 = arith.constant 0 : index
    %161 = vector.load %arg4[%c32, %c0_38] : memref<320x128xbf16, #tpu.memory_space<vmem>>, vector<32x128xbf16>
    %c8 = arith.constant 8 : index
    %c0_39 = arith.constant 0 : index
    %162 = vector.load %arg5[%c8, %c0_39] : memref<56x128xbf16, #tpu.memory_space<vmem>>, vector<1x128xbf16>
    %163 = arith.extf %162 : vector<1x128xbf16> to vector<1x128xf32>
    %164 = arith.truncf %160 : vector<8x32xf32> to vector<8x32xbf16>
    %cst_40 = arith.constant dense<0.000000e+00> : vector<8x128xf32>
    %165 = tpu.matmul %164, %161, %cst_40 {dimension_numbers = #tpu.dot_dimension_numbers<[1], [0], [0], [1], [0, 0, 1, 1], [], []>} : vector<8x32xbf16>, vector<32x128xbf16>, vector<8x128xf32> -> vector<8x128xf32>
    %166 = vector.broadcast %163 : vector<1x128xf32> to vector<8x128xf32>
    %167 = arith.addf %165, %166 : vector<8x128xf32>
    %168 = arith.mulf %167, %167 : vector<8x128xf32>
    %169 = arith.mulf %167, %168 : vector<8x128xf32>
    %cst_41 = arith.constant 4.471500e-02 : f32
    %170 = vector.broadcast %cst_41 : f32 to vector<8x128xf32>
    %171 = arith.mulf %170, %169 : vector<8x128xf32>
    %172 = arith.addf %167, %171 : vector<8x128xf32>
    %cst_42 = arith.constant 0.797884583 : f32
    %173 = vector.broadcast %cst_42 : f32 to vector<8x128xf32>
    %174 = arith.mulf %173, %172 : vector<8x128xf32>
    %175 = math.tanh %174 : vector<8x128xf32>
    %cst_43 = arith.constant 1.000000e+00 : f32
    %176 = vector.broadcast %cst_43 : f32 to vector<8x128xf32>
    %177 = arith.addf %176, %175 : vector<8x128xf32>
    %cst_44 = arith.constant 5.000000e-01 : f32
    %178 = vector.broadcast %cst_44 : f32 to vector<8x128xf32>
    %179 = arith.mulf %178, %177 : vector<8x128xf32>
    %180 = arith.mulf %167, %179 : vector<8x128xf32>
    %c232 = arith.constant 232 : index
    %c0_45 = arith.constant 0 : index
    %181 = vector.load %arg3[%c232, %c0_45] : memref<944x32xbf16, #tpu.memory_space<vmem>>, vector<128x32xbf16>
    %c9 = arith.constant 9 : index
    %c0_46 = arith.constant 0 : index
    %182 = vector.load %arg5[%c9, %c0_46] : memref<56x128xbf16, #tpu.memory_space<vmem>>, vector<1x32xbf16>
    %183 = arith.extf %182 : vector<1x32xbf16> to vector<1x32xf32>
    %184 = arith.truncf %180 : vector<8x128xf32> to vector<8x128xbf16>
    %cst_47 = arith.constant dense<0.000000e+00> : vector<8x32xf32>
    %185 = tpu.matmul %184, %181, %cst_47 {dimension_numbers = #tpu.dot_dimension_numbers<[1], [0], [0], [1], [0, 0, 1, 1], [], []>} : vector<8x128xbf16>, vector<128x32xbf16>, vector<8x32xf32> -> vector<8x32xf32>
    %186 = vector.broadcast %183 : vector<1x32xf32> to vector<8x32xf32>
    %187 = arith.addf %185, %186 : vector<8x32xf32>
    %188 = arith.addf %134, %187 : vector<8x32xf32>
    %c10 = arith.constant 10 : index
    %c0_48 = arith.constant 0 : index
    %189 = vector.load %arg5[%c10, %c0_48] : memref<56x128xbf16, #tpu.memory_space<vmem>>, vector<1x32xbf16>
    %190 = arith.extf %189 : vector<1x32xbf16> to vector<1x32xf32>
    %c11 = arith.constant 11 : index
    %c0_49 = arith.constant 0 : index
    %191 = vector.load %arg5[%c11, %c0_49] : memref<56x128xbf16, #tpu.memory_space<vmem>>, vector<1x32xbf16>
    %192 = arith.extf %191 : vector<1x32xbf16> to vector<1x32xf32>
    %cst_50 = arith.constant dense<0.000000e+00> : vector<8xf32>
    %193 = vector.multi_reduction <add>, %188, %cst_50 [1] : vector<8x32xf32> to vector<8xf32>
    %194 = vector.shape_cast %193 : vector<8xf32> to vector<8x1xf32>
    %cst_51 = arith.constant 3.200000e+01 : f32
    %195 = vector.broadcast %cst_51 : f32 to vector<8x1xf32>
    %196 = arith.divf %194, %195 : vector<8x1xf32>
    %197 = vector.broadcast %196 : vector<8x1xf32> to vector<8x32xf32>
    %198 = arith.subf %188, %197 : vector<8x32xf32>
    %199 = arith.mulf %198, %198 : vector<8x32xf32>
    %cst_52 = arith.constant dense<0.000000e+00> : vector<8xf32>
    %200 = vector.multi_reduction <add>, %199, %cst_52 [1] : vector<8x32xf32> to vector<8xf32>
    %201 = vector.shape_cast %200 : vector<8xf32> to vector<8x1xf32>
    %cst_53 = arith.constant 3.200000e+01 : f32
    %202 = vector.broadcast %cst_53 : f32 to vector<8x1xf32>
    %203 = arith.divf %201, %202 : vector<8x1xf32>
    %204 = vector.broadcast %196 : vector<8x1xf32> to vector<8x32xf32>
    %205 = arith.subf %188, %204 : vector<8x32xf32>
    %cst_54 = arith.constant 9.99999997E-7 : f32
    %206 = vector.broadcast %cst_54 : f32 to vector<8x1xf32>
    %207 = arith.addf %203, %206 : vector<8x1xf32>
    %208 = math.rsqrt %207 : vector<8x1xf32>
    %209 = vector.broadcast %208 : vector<8x1xf32> to vector<8x32xf32>
    %210 = arith.mulf %205, %209 : vector<8x32xf32>
    %211 = vector.broadcast %190 : vector<1x32xf32> to vector<8x32xf32>
    %212 = arith.mulf %210, %211 : vector<8x32xf32>
    %213 = vector.broadcast %192 : vector<1x32xf32> to vector<8x32xf32>
    %214 = arith.addf %212, %213 : vector<8x32xf32>
    %c64 = arith.constant 64 : index
    %c0_55 = arith.constant 0 : index
    %215 = vector.load %arg4[%c64, %c0_55] : memref<320x128xbf16, #tpu.memory_space<vmem>>, vector<32x96xbf16>
    %c12 = arith.constant 12 : index
    %c0_56 = arith.constant 0 : index
    %216 = vector.load %arg5[%c12, %c0_56] : memref<56x128xbf16, #tpu.memory_space<vmem>>, vector<1x96xbf16>
    %217 = arith.extf %216 : vector<1x96xbf16> to vector<1x96xf32>
    %218 = arith.truncf %214 : vector<8x32xf32> to vector<8x32xbf16>
    %cst_57 = arith.constant dense<0.000000e+00> : vector<8x96xf32>
    %219 = tpu.matmul %218, %215, %cst_57 {dimension_numbers = #tpu.dot_dimension_numbers<[1], [0], [0], [1], [0, 0, 1, 1], [], []>} : vector<8x32xbf16>, vector<32x96xbf16>, vector<8x96xf32> -> vector<8x96xf32>
    %220 = vector.broadcast %217 : vector<1x96xf32> to vector<8x96xf32>
    %221 = arith.addf %219, %220 : vector<8x96xf32>
    %222 = vector.extract_strided_slice %221 {offsets = [0, 0], sizes = [8, 32], strides = [1, 1]} : vector<8x96xf32> to vector<8x32xf32>
    %223 = vector.extract_strided_slice %221 {offsets = [0, 32], sizes = [8, 32], strides = [1, 1]} : vector<8x96xf32> to vector<8x32xf32>
    %224 = vector.extract_strided_slice %221 {offsets = [0, 64], sizes = [8, 32], strides = [1, 1]} : vector<8x96xf32> to vector<8x32xf32>
    %c360 = arith.constant 360 : index
    %c0_58 = arith.constant 0 : index
    %225 = vector.load %arg3[%c360, %c0_58] : memref<944x32xbf16, #tpu.memory_space<vmem>>, vector<32x32xbf16>
    %c13 = arith.constant 13 : index
    %c0_59 = arith.constant 0 : index
    %226 = vector.load %arg5[%c13, %c0_59] : memref<56x128xbf16, #tpu.memory_space<vmem>>, vector<1x32xbf16>
    %227 = arith.extf %226 : vector<1x32xbf16> to vector<1x32xf32>
    %228 = vector.extract_strided_slice %222 {offsets = [0, 0], sizes = [8, 8], strides = [1, 1]} : vector<8x32xf32> to vector<8x8xf32>
    %229 = vector.shape_cast %228 : vector<8x8xf32> to vector<1x8x8xf32>
    %230 = vector.extract_strided_slice %222 {offsets = [0, 8], sizes = [8, 8], strides = [1, 1]} : vector<8x32xf32> to vector<8x8xf32>
    %231 = vector.shape_cast %230 : vector<8x8xf32> to vector<1x8x8xf32>
    %232 = vector.extract_strided_slice %222 {offsets = [0, 16], sizes = [8, 8], strides = [1, 1]} : vector<8x32xf32> to vector<8x8xf32>
    %233 = vector.shape_cast %232 : vector<8x8xf32> to vector<1x8x8xf32>
    %234 = vector.extract_strided_slice %222 {offsets = [0, 24], sizes = [8, 8], strides = [1, 1]} : vector<8x32xf32> to vector<8x8xf32>
    %235 = vector.shape_cast %234 : vector<8x8xf32> to vector<1x8x8xf32>
    %236 = tpu.concatenate %229, %231, %233, %235 in 0 : vector<1x8x8xf32>, vector<1x8x8xf32>, vector<1x8x8xf32>, vector<1x8x8xf32> -> vector<4x8x8xf32>
    %237 = vector.extract_strided_slice %223 {offsets = [0, 0], sizes = [8, 8], strides = [1, 1]} : vector<8x32xf32> to vector<8x8xf32>
    %238 = vector.shape_cast %237 : vector<8x8xf32> to vector<1x8x8xf32>
    %239 = vector.extract_strided_slice %223 {offsets = [0, 8], sizes = [8, 8], strides = [1, 1]} : vector<8x32xf32> to vector<8x8xf32>
    %240 = vector.shape_cast %239 : vector<8x8xf32> to vector<1x8x8xf32>
    %241 = vector.extract_strided_slice %223 {offsets = [0, 16], sizes = [8, 8], strides = [1, 1]} : vector<8x32xf32> to vector<8x8xf32>
    %242 = vector.shape_cast %241 : vector<8x8xf32> to vector<1x8x8xf32>
    %243 = vector.extract_strided_slice %223 {offsets = [0, 24], sizes = [8, 8], strides = [1, 1]} : vector<8x32xf32> to vector<8x8xf32>
    %244 = vector.shape_cast %243 : vector<8x8xf32> to vector<1x8x8xf32>
    %245 = tpu.concatenate %238, %240, %242, %244 in 0 : vector<1x8x8xf32>, vector<1x8x8xf32>, vector<1x8x8xf32>, vector<1x8x8xf32> -> vector<4x8x8xf32>
    %246 = vector.extract_strided_slice %224 {offsets = [0, 0], sizes = [8, 8], strides = [1, 1]} : vector<8x32xf32> to vector<8x8xf32>
    %247 = vector.shape_cast %246 : vector<8x8xf32> to vector<1x8x8xf32>
    %248 = vector.extract_strided_slice %224 {offsets = [0, 8], sizes = [8, 8], strides = [1, 1]} : vector<8x32xf32> to vector<8x8xf32>
    %249 = vector.shape_cast %248 : vector<8x8xf32> to vector<1x8x8xf32>
    %250 = vector.extract_strided_slice %224 {offsets = [0, 16], sizes = [8, 8], strides = [1, 1]} : vector<8x32xf32> to vector<8x8xf32>
    %251 = vector.shape_cast %250 : vector<8x8xf32> to vector<1x8x8xf32>
    %252 = vector.extract_strided_slice %224 {offsets = [0, 24], sizes = [8, 8], strides = [1, 1]} : vector<8x32xf32> to vector<8x8xf32>
    %253 = vector.shape_cast %252 : vector<8x8xf32> to vector<1x8x8xf32>
    %254 = tpu.concatenate %247, %249, %251, %253 in 0 : vector<1x8x8xf32>, vector<1x8x8xf32>, vector<1x8x8xf32>, vector<1x8x8xf32> -> vector<4x8x8xf32>
    "tpu.trace_start"() <{level = 10 : i32, message = "hqd,hkd->hqk"}> : () -> ()
    %cst_60 = arith.constant dense<0.000000e+00> : vector<4x8x8xf32>
    %255 = tpu.matmul %236, %245, %cst_60 {dimension_numbers = #tpu.dot_dimension_numbers<[2], [2], [1], [1], [0, 0, 0, 1, 1, 1], [0], [0]>} : vector<4x8x8xf32>, vector<4x8x8xf32>, vector<4x8x8xf32> -> vector<4x8x8xf32>
    "tpu.trace_stop"() : () -> ()
    %cst_61 = arith.constant 0.353553385 : f32
    %256 = vector.broadcast %cst_61 : f32 to vector<4x8x8xf32>
    %257 = arith.mulf %255, %256 : vector<4x8x8xf32>
    %258 = vector.broadcast %26 : vector<1x8x8xf32> to vector<4x8x8xf32>
    %259 = arith.addf %257, %258 : vector<4x8x8xf32>
    %cst_62 = arith.constant dense<0xFF800000> : vector<4x8xf32>
    %260 = vector.multi_reduction <maximumf>, %259, %cst_62 [2] : vector<4x8x8xf32> to vector<4x8xf32>
    %261 = vector.shape_cast %260 : vector<4x8xf32> to vector<4x8x1xf32>
    %262 = vector.broadcast %261 : vector<4x8x1xf32> to vector<4x8x8xf32>
    %263 = arith.subf %259, %262 : vector<4x8x8xf32>
    %264 = math.exp %263 : vector<4x8x8xf32>
    %cst_63 = arith.constant dense<0.000000e+00> : vector<4x8xf32>
    %265 = vector.multi_reduction <add>, %264, %cst_63 [2] : vector<4x8x8xf32> to vector<4x8xf32>
    %266 = vector.shape_cast %265 : vector<4x8xf32> to vector<4x8x1xf32>
    %267 = tpu.reciprocal %266 {approx = true} : vector<4x8x1xf32> -> vector<4x8x1xf32>
    "tpu.trace_start"() <{level = 10 : i32, message = "hqk,hkd->hqd"}> : () -> ()
    %cst_64 = arith.constant dense<0.000000e+00> : vector<4x8x8xf32>
    %268 = tpu.matmul %264, %254, %cst_64 {dimension_numbers = #tpu.dot_dimension_numbers<[2], [1], [1], [2], [0, 0, 0, 1, 1, 2], [0], [0]>} : vector<4x8x8xf32>, vector<4x8x8xf32>, vector<4x8x8xf32> -> vector<4x8x8xf32>
    "tpu.trace_stop"() : () -> ()
    %269 = vector.broadcast %267 : vector<4x8x1xf32> to vector<4x8x8xf32>
    %270 = arith.mulf %268, %269 : vector<4x8x8xf32>
    %271 = vector.extract_strided_slice %270 {offsets = [0, 0, 0], sizes = [1, 8, 8], strides = [1, 1, 1]} : vector<4x8x8xf32> to vector<1x8x8xf32>
    %272 = vector.shape_cast %271 : vector<1x8x8xf32> to vector<8x8xf32>
    %273 = arith.truncf %272 : vector<8x8xf32> to vector<8x8xbf16>
    %274 = vector.extract_strided_slice %225 {offsets = [0, 0], sizes = [8, 32], strides = [1, 1]} : vector<32x32xbf16> to vector<8x32xbf16>
    %cst_65 = arith.constant dense<0.000000e+00> : vector<8x32xf32>
    %275 = tpu.matmul %273, %274, %cst_65 {dimension_numbers = #tpu.dot_dimension_numbers<[1], [0], [0], [1], [0, 0, 1, 1], [], []>} : vector<8x8xbf16>, vector<8x32xbf16>, vector<8x32xf32> -> vector<8x32xf32>
    %276 = vector.broadcast %227 : vector<1x32xf32> to vector<8x32xf32>
    %277 = arith.addf %276, %275 : vector<8x32xf32>
    %278 = vector.extract_strided_slice %270 {offsets = [1, 0, 0], sizes = [1, 8, 8], strides = [1, 1, 1]} : vector<4x8x8xf32> to vector<1x8x8xf32>
    %279 = vector.shape_cast %278 : vector<1x8x8xf32> to vector<8x8xf32>
    %280 = arith.truncf %279 : vector<8x8xf32> to vector<8x8xbf16>
    %281 = vector.extract_strided_slice %225 {offsets = [8, 0], sizes = [8, 32], strides = [1, 1]} : vector<32x32xbf16> to vector<8x32xbf16>
    %cst_66 = arith.constant dense<0.000000e+00> : vector<8x32xf32>
    %282 = tpu.matmul %280, %281, %cst_66 {dimension_numbers = #tpu.dot_dimension_numbers<[1], [0], [0], [1], [0, 0, 1, 1], [], []>} : vector<8x8xbf16>, vector<8x32xbf16>, vector<8x32xf32> -> vector<8x32xf32>
    %283 = arith.addf %277, %282 : vector<8x32xf32>
    %284 = vector.extract_strided_slice %270 {offsets = [2, 0, 0], sizes = [1, 8, 8], strides = [1, 1, 1]} : vector<4x8x8xf32> to vector<1x8x8xf32>
    %285 = vector.shape_cast %284 : vector<1x8x8xf32> to vector<8x8xf32>
    %286 = arith.truncf %285 : vector<8x8xf32> to vector<8x8xbf16>
    %287 = vector.extract_strided_slice %225 {offsets = [16, 0], sizes = [8, 32], strides = [1, 1]} : vector<32x32xbf16> to vector<8x32xbf16>
    %cst_67 = arith.constant dense<0.000000e+00> : vector<8x32xf32>
    %288 = tpu.matmul %286, %287, %cst_67 {dimension_numbers = #tpu.dot_dimension_numbers<[1], [0], [0], [1], [0, 0, 1, 1], [], []>} : vector<8x8xbf16>, vector<8x32xbf16>, vector<8x32xf32> -> vector<8x32xf32>
    %289 = arith.addf %283, %288 : vector<8x32xf32>
    %290 = vector.extract_strided_slice %270 {offsets = [3, 0, 0], sizes = [1, 8, 8], strides = [1, 1, 1]} : vector<4x8x8xf32> to vector<1x8x8xf32>
    %291 = vector.shape_cast %290 : vector<1x8x8xf32> to vector<8x8xf32>
    %292 = arith.truncf %291 : vector<8x8xf32> to vector<8x8xbf16>
    %293 = vector.extract_strided_slice %225 {offsets = [24, 0], sizes = [8, 32], strides = [1, 1]} : vector<32x32xbf16> to vector<8x32xbf16>
    %cst_68 = arith.constant dense<0.000000e+00> : vector<8x32xf32>
    %294 = tpu.matmul %292, %293, %cst_68 {dimension_numbers = #tpu.dot_dimension_numbers<[1], [0], [0], [1], [0, 0, 1, 1], [], []>} : vector<8x8xbf16>, vector<8x32xbf16>, vector<8x32xf32> -> vector<8x32xf32>
    %295 = arith.addf %289, %294 : vector<8x32xf32>
    %296 = arith.addf %188, %295 : vector<8x32xf32>
    %c14 = arith.constant 14 : index
    %c0_69 = arith.constant 0 : index
    %297 = vector.load %arg5[%c14, %c0_69] : memref<56x128xbf16, #tpu.memory_space<vmem>>, vector<1x32xbf16>
    %298 = arith.extf %297 : vector<1x32xbf16> to vector<1x32xf32>
    %c15 = arith.constant 15 : index
    %c0_70 = arith.constant 0 : index
    %299 = vector.load %arg5[%c15, %c0_70] : memref<56x128xbf16, #tpu.memory_space<vmem>>, vector<1x32xbf16>
    %300 = arith.extf %299 : vector<1x32xbf16> to vector<1x32xf32>
    %cst_71 = arith.constant dense<0.000000e+00> : vector<8xf32>
    %301 = vector.multi_reduction <add>, %296, %cst_71 [1] : vector<8x32xf32> to vector<8xf32>
    %302 = vector.shape_cast %301 : vector<8xf32> to vector<8x1xf32>
    %cst_72 = arith.constant 3.200000e+01 : f32
    %303 = vector.broadcast %cst_72 : f32 to vector<8x1xf32>
    %304 = arith.divf %302, %303 : vector<8x1xf32>
    %305 = vector.broadcast %304 : vector<8x1xf32> to vector<8x32xf32>
    %306 = arith.subf %296, %305 : vector<8x32xf32>
    %307 = arith.mulf %306, %306 : vector<8x32xf32>
    %cst_73 = arith.constant dense<0.000000e+00> : vector<8xf32>
    %308 = vector.multi_reduction <add>, %307, %cst_73 [1] : vector<8x32xf32> to vector<8xf32>
    %309 = vector.shape_cast %308 : vector<8xf32> to vector<8x1xf32>
    %cst_74 = arith.constant 3.200000e+01 : f32
    %310 = vector.broadcast %cst_74 : f32 to vector<8x1xf32>
    %311 = arith.divf %309, %310 : vector<8x1xf32>
    %312 = vector.broadcast %304 : vector<8x1xf32> to vector<8x32xf32>
    %313 = arith.subf %296, %312 : vector<8x32xf32>
    %cst_75 = arith.constant 9.99999997E-7 : f32
    %314 = vector.broadcast %cst_75 : f32 to vector<8x1xf32>
    %315 = arith.addf %311, %314 : vector<8x1xf32>
    %316 = math.rsqrt %315 : vector<8x1xf32>
    %317 = vector.broadcast %316 : vector<8x1xf32> to vector<8x32xf32>
    %318 = arith.mulf %313, %317 : vector<8x32xf32>
    %319 = vector.broadcast %298 : vector<1x32xf32> to vector<8x32xf32>
    %320 = arith.mulf %318, %319 : vector<8x32xf32>
    %321 = vector.broadcast %300 : vector<1x32xf32> to vector<8x32xf32>
    %322 = arith.addf %320, %321 : vector<8x32xf32>
    %c96 = arith.constant 96 : index
    %c0_76 = arith.constant 0 : index
    %323 = vector.load %arg4[%c96, %c0_76] : memref<320x128xbf16, #tpu.memory_space<vmem>>, vector<32x128xbf16>
    %c16 = arith.constant 16 : index
    %c0_77 = arith.constant 0 : index
    %324 = vector.load %arg5[%c16, %c0_77] : memref<56x128xbf16, #tpu.memory_space<vmem>>, vector<1x128xbf16>
    %325 = arith.extf %324 : vector<1x128xbf16> to vector<1x128xf32>
    %326 = arith.truncf %322 : vector<8x32xf32> to vector<8x32xbf16>
    %cst_78 = arith.constant dense<0.000000e+00> : vector<8x128xf32>
    %327 = tpu.matmul %326, %323, %cst_78 {dimension_numbers = #tpu.dot_dimension_numbers<[1], [0], [0], [1], [0, 0, 1, 1], [], []>} : vector<8x32xbf16>, vector<32x128xbf16>, vector<8x128xf32> -> vector<8x128xf32>
    %328 = vector.broadcast %325 : vector<1x128xf32> to vector<8x128xf32>
    %329 = arith.addf %327, %328 : vector<8x128xf32>
    %330 = arith.mulf %329, %329 : vector<8x128xf32>
    %331 = arith.mulf %329, %330 : vector<8x128xf32>
    %cst_79 = arith.constant 4.471500e-02 : f32
    %332 = vector.broadcast %cst_79 : f32 to vector<8x128xf32>
    %333 = arith.mulf %332, %331 : vector<8x128xf32>
    %334 = arith.addf %329, %333 : vector<8x128xf32>
    %cst_80 = arith.constant 0.797884583 : f32
    %335 = vector.broadcast %cst_80 : f32 to vector<8x128xf32>
    %336 = arith.mulf %335, %334 : vector<8x128xf32>
    %337 = math.tanh %336 : vector<8x128xf32>
    %cst_81 = arith.constant 1.000000e+00 : f32
    %338 = vector.broadcast %cst_81 : f32 to vector<8x128xf32>
    %339 = arith.addf %338, %337 : vector<8x128xf32>
    %cst_82 = arith.constant 5.000000e-01 : f32
    %340 = vector.broadcast %cst_82 : f32 to vector<8x128xf32>
    %341 = arith.mulf %340, %339 : vector<8x128xf32>
    %342 = arith.mulf %329, %341 : vector<8x128xf32>
    %c392 = arith.constant 392 : index
    %c0_83 = arith.constant 0 : index
    %343 = vector.load %arg3[%c392, %c0_83] : memref<944x32xbf16, #tpu.memory_space<vmem>>, vector<128x32xbf16>
    %c17 = arith.constant 17 : index
    %c0_84 = arith.constant 0 : index
    %344 = vector.load %arg5[%c17, %c0_84] : memref<56x128xbf16, #tpu.memory_space<vmem>>, vector<1x32xbf16>
    %345 = arith.extf %344 : vector<1x32xbf16> to vector<1x32xf32>
    %346 = arith.truncf %342 : vector<8x128xf32> to vector<8x128xbf16>
    %cst_85 = arith.constant dense<0.000000e+00> : vector<8x32xf32>
    %347 = tpu.matmul %346, %343, %cst_85 {dimension_numbers = #tpu.dot_dimension_numbers<[1], [0], [0], [1], [0, 0, 1, 1], [], []>} : vector<8x128xbf16>, vector<128x32xbf16>, vector<8x32xf32> -> vector<8x32xf32>
    %348 = vector.broadcast %345 : vector<1x32xf32> to vector<8x32xf32>
    %349 = arith.addf %347, %348 : vector<8x32xf32>
    %350 = arith.addf %296, %349 : vector<8x32xf32>
    %c18 = arith.constant 18 : index
    %c0_86 = arith.constant 0 : index
    %351 = vector.load %arg5[%c18, %c0_86] : memref<56x128xbf16, #tpu.memory_space<vmem>>, vector<1x32xbf16>
    %352 = arith.extf %351 : vector<1x32xbf16> to vector<1x32xf32>
    %c19 = arith.constant 19 : index
    %c0_87 = arith.constant 0 : index
    %353 = vector.load %arg5[%c19, %c0_87] : memref<56x128xbf16, #tpu.memory_space<vmem>>, vector<1x32xbf16>
    %354 = arith.extf %353 : vector<1x32xbf16> to vector<1x32xf32>
    %cst_88 = arith.constant dense<0.000000e+00> : vector<8xf32>
    %355 = vector.multi_reduction <add>, %350, %cst_88 [1] : vector<8x32xf32> to vector<8xf32>
    %356 = vector.shape_cast %355 : vector<8xf32> to vector<8x1xf32>
    %cst_89 = arith.constant 3.200000e+01 : f32
    %357 = vector.broadcast %cst_89 : f32 to vector<8x1xf32>
    %358 = arith.divf %356, %357 : vector<8x1xf32>
    %359 = vector.broadcast %358 : vector<8x1xf32> to vector<8x32xf32>
    %360 = arith.subf %350, %359 : vector<8x32xf32>
    %361 = arith.mulf %360, %360 : vector<8x32xf32>
    %cst_90 = arith.constant dense<0.000000e+00> : vector<8xf32>
    %362 = vector.multi_reduction <add>, %361, %cst_90 [1] : vector<8x32xf32> to vector<8xf32>
    %363 = vector.shape_cast %362 : vector<8xf32> to vector<8x1xf32>
    %cst_91 = arith.constant 3.200000e+01 : f32
    %364 = vector.broadcast %cst_91 : f32 to vector<8x1xf32>
    %365 = arith.divf %363, %364 : vector<8x1xf32>
    %366 = vector.broadcast %358 : vector<8x1xf32> to vector<8x32xf32>
    %367 = arith.subf %350, %366 : vector<8x32xf32>
    %cst_92 = arith.constant 9.99999997E-7 : f32
    %368 = vector.broadcast %cst_92 : f32 to vector<8x1xf32>
    %369 = arith.addf %365, %368 : vector<8x1xf32>
    %370 = math.rsqrt %369 : vector<8x1xf32>
    %371 = vector.broadcast %370 : vector<8x1xf32> to vector<8x32xf32>
    %372 = arith.mulf %367, %371 : vector<8x32xf32>
    %373 = vector.broadcast %352 : vector<1x32xf32> to vector<8x32xf32>
    %374 = arith.mulf %372, %373 : vector<8x32xf32>
    %375 = vector.broadcast %354 : vector<1x32xf32> to vector<8x32xf32>
    %376 = arith.addf %374, %375 : vector<8x32xf32>
    %377 = tpu.iota {dimensions = array<i32: 2>} : vector<1x8x8xi32>
    %c5_i32_93 = arith.constant 5 : i32
    %378 = vector.broadcast %c5_i32_93 : i32 to vector<1x8x8xi32>
    %379 = arith.cmpi sge, %377, %378 : vector<1x8x8xi32>
    %380 = arith.extui %379 : vector<1x8x8xi1> to vector<1x8x8xi32>
    %381 = arith.sitofp %380 : vector<1x8x8xi32> to vector<1x8x8xf32>
    %cst_94 = arith.constant -1.000000e+09 : f32
    %382 = vector.broadcast %cst_94 : f32 to vector<1x8x8xf32>
    %383 = arith.mulf %381, %382 : vector<1x8x8xf32>
    %c0_95 = arith.constant 0 : index
    %c0_96 = arith.constant 0 : index
    %c0_97 = arith.constant 0 : index
    %384 = vector.load %arg2[%c0_95, %c0_96, %c0_97] : memref<1x16x128xf32, #tpu.memory_space<vmem>>, vector<1x16x128xf32>
    %385 = vector.shape_cast %384 : vector<1x16x128xf32> to vector<16x128xf32>
    %386 = vector.extract_strided_slice %385 {offsets = [0, 0], sizes = [8, 1], strides = [1, 1]} : vector<16x128xf32> to vector<8x1xf32>
    %387 = arith.fptosi %386 : vector<8x1xf32> to vector<8x1xi32>
    %388 = vector.extract_strided_slice %385 {offsets = [0, 1], sizes = [8, 1], strides = [1, 1]} : vector<16x128xf32> to vector<8x1xf32>
    %389 = arith.fptosi %388 : vector<8x1xf32> to vector<8x1xi32>
    %390 = vector.extract_strided_slice %385 {offsets = [0, 2], sizes = [8, 1], strides = [1, 1]} : vector<16x128xf32> to vector<8x1xf32>
    %391 = vector.extract_strided_slice %385 {offsets = [8, 0], sizes = [1, 8], strides = [1, 1]} : vector<16x128xf32> to vector<1x8xf32>
    %392 = tpu.iota {dimensions = array<i32: 1>} : vector<8x64xi32>
    %c520 = arith.constant 520 : index
    %c0_98 = arith.constant 0 : index
    %393 = vector.load %arg3[%c520, %c0_98] : memref<944x32xbf16, #tpu.memory_space<vmem>>, vector<64x32xbf16>
    %394 = vector.broadcast %387 : vector<8x1xi32> to vector<8x64xi32>
    %395 = arith.cmpi eq, %392, %394 : vector<8x64xi32>
    %396 = arith.extui %395 : vector<8x64xi1> to vector<8x64xi32>
    %397 = arith.sitofp %396 : vector<8x64xi32> to vector<8x64xf32>
    %398 = arith.truncf %397 : vector<8x64xf32> to vector<8x64xbf16>
    %cst_99 = arith.constant dense<0.000000e+00> : vector<8x32xf32>
    %399 = tpu.matmul %398, %393, %cst_99 {dimension_numbers = #tpu.dot_dimension_numbers<[1], [0], [0], [1], [0, 0, 1, 1], [], []>} : vector<8x64xbf16>, vector<64x32xbf16>, vector<8x32xf32> -> vector<8x32xf32>
    %c20 = arith.constant 20 : index
    %c0_100 = arith.constant 0 : index
    %400 = vector.load %arg5[%c20, %c0_100] : memref<56x128xbf16, #tpu.memory_space<vmem>>, vector<1x32xbf16>
    %401 = arith.extf %400 : vector<1x32xbf16> to vector<1x32xf32>
    %402 = vector.broadcast %401 : vector<1x32xf32> to vector<8x32xf32>
    %403 = arith.addf %399, %402 : vector<8x32xf32>
    %c584 = arith.constant 584 : index
    %c0_101 = arith.constant 0 : index
    %404 = vector.load %arg3[%c584, %c0_101] : memref<944x32xbf16, #tpu.memory_space<vmem>>, vector<8x32xbf16>
    %405 = arith.extf %404 : vector<8x32xbf16> to vector<8x32xf32>
    %406 = arith.addf %403, %405 : vector<8x32xf32>
    %c21 = arith.constant 21 : index
    %c0_102 = arith.constant 0 : index
    %407 = vector.load %arg5[%c21, %c0_102] : memref<56x128xbf16, #tpu.memory_space<vmem>>, vector<1x32xbf16>
    %408 = arith.extf %407 : vector<1x32xbf16> to vector<1x32xf32>
    %c22 = arith.constant 22 : index
    %c0_103 = arith.constant 0 : index
    %409 = vector.load %arg5[%c22, %c0_103] : memref<56x128xbf16, #tpu.memory_space<vmem>>, vector<1x32xbf16>
    %410 = arith.extf %409 : vector<1x32xbf16> to vector<1x32xf32>
    %cst_104 = arith.constant dense<0.000000e+00> : vector<8xf32>
    %411 = vector.multi_reduction <add>, %406, %cst_104 [1] : vector<8x32xf32> to vector<8xf32>
    %412 = vector.shape_cast %411 : vector<8xf32> to vector<8x1xf32>
    %cst_105 = arith.constant 3.200000e+01 : f32
    %413 = vector.broadcast %cst_105 : f32 to vector<8x1xf32>
    %414 = arith.divf %412, %413 : vector<8x1xf32>
    %415 = vector.broadcast %414 : vector<8x1xf32> to vector<8x32xf32>
    %416 = arith.subf %406, %415 : vector<8x32xf32>
    %417 = arith.mulf %416, %416 : vector<8x32xf32>
    %cst_106 = arith.constant dense<0.000000e+00> : vector<8xf32>
    %418 = vector.multi_reduction <add>, %417, %cst_106 [1] : vector<8x32xf32> to vector<8xf32>
    %419 = vector.shape_cast %418 : vector<8xf32> to vector<8x1xf32>
    %cst_107 = arith.constant 3.200000e+01 : f32
    %420 = vector.broadcast %cst_107 : f32 to vector<8x1xf32>
    %421 = arith.divf %419, %420 : vector<8x1xf32>
    %422 = vector.broadcast %414 : vector<8x1xf32> to vector<8x32xf32>
    %423 = arith.subf %406, %422 : vector<8x32xf32>
    %cst_108 = arith.constant 9.99999996E-13 : f32
    %424 = vector.broadcast %cst_108 : f32 to vector<8x1xf32>
    %425 = arith.addf %421, %424 : vector<8x1xf32>
    %426 = math.rsqrt %425 : vector<8x1xf32>
    %427 = vector.broadcast %426 : vector<8x1xf32> to vector<8x32xf32>
    %428 = arith.mulf %423, %427 : vector<8x32xf32>
    %429 = vector.broadcast %408 : vector<1x32xf32> to vector<8x32xf32>
    %430 = arith.mulf %428, %429 : vector<8x32xf32>
    %431 = vector.broadcast %410 : vector<1x32xf32> to vector<8x32xf32>
    %432 = arith.addf %430, %431 : vector<8x32xf32>
    %433 = tpu.iota {dimensions = array<i32: 1>} : vector<1x8x8xi32>
    %434 = tpu.iota {dimensions = array<i32: 2>} : vector<1x8x8xi32>
    %435 = arith.cmpi sge, %433, %434 : vector<1x8x8xi32>
    %436 = arith.extui %435 : vector<1x8x8xi1> to vector<1x8x8xi32>
    %437 = arith.sitofp %436 : vector<1x8x8xi32> to vector<1x8x8xf32>
    %438 = vector.shape_cast %391 : vector<1x8xf32> to vector<1x1x8xf32>
    %439 = vector.broadcast %438 : vector<1x1x8xf32> to vector<1x8x8xf32>
    %440 = arith.mulf %437, %439 : vector<1x8x8xf32>
    %cst_109 = arith.constant 1.000000e+00 : f32
    %441 = vector.broadcast %cst_109 : f32 to vector<1x8x8xf32>
    %442 = arith.subf %441, %440 : vector<1x8x8xf32>
    %cst_110 = arith.constant -1.000000e+09 : f32
    %443 = vector.broadcast %cst_110 : f32 to vector<1x8x8xf32>
    %444 = arith.mulf %442, %443 : vector<1x8x8xf32>
    %c128 = arith.constant 128 : index
    %c0_111 = arith.constant 0 : index
    %445 = vector.load %arg4[%c128, %c0_111] : memref<320x128xbf16, #tpu.memory_space<vmem>>, vector<32x96xbf16>
    %c23 = arith.constant 23 : index
    %c0_112 = arith.constant 0 : index
    %446 = vector.load %arg5[%c23, %c0_112] : memref<56x128xbf16, #tpu.memory_space<vmem>>, vector<1x96xbf16>
    %447 = arith.extf %446 : vector<1x96xbf16> to vector<1x96xf32>
    %448 = arith.truncf %432 : vector<8x32xf32> to vector<8x32xbf16>
    %cst_113 = arith.constant dense<0.000000e+00> : vector<8x96xf32>
    %449 = tpu.matmul %448, %445, %cst_113 {dimension_numbers = #tpu.dot_dimension_numbers<[1], [0], [0], [1], [0, 0, 1, 1], [], []>} : vector<8x32xbf16>, vector<32x96xbf16>, vector<8x96xf32> -> vector<8x96xf32>
    %450 = vector.broadcast %447 : vector<1x96xf32> to vector<8x96xf32>
    %451 = arith.addf %449, %450 : vector<8x96xf32>
    %452 = vector.extract_strided_slice %451 {offsets = [0, 0], sizes = [8, 32], strides = [1, 1]} : vector<8x96xf32> to vector<8x32xf32>
    %453 = vector.extract_strided_slice %451 {offsets = [0, 32], sizes = [8, 32], strides = [1, 1]} : vector<8x96xf32> to vector<8x32xf32>
    %454 = vector.extract_strided_slice %451 {offsets = [0, 64], sizes = [8, 32], strides = [1, 1]} : vector<8x96xf32> to vector<8x32xf32>
    %c592 = arith.constant 592 : index
    %c0_114 = arith.constant 0 : index
    %455 = vector.load %arg3[%c592, %c0_114] : memref<944x32xbf16, #tpu.memory_space<vmem>>, vector<32x32xbf16>
    %c24 = arith.constant 24 : index
    %c0_115 = arith.constant 0 : index
    %456 = vector.load %arg5[%c24, %c0_115] : memref<56x128xbf16, #tpu.memory_space<vmem>>, vector<1x32xbf16>
    %457 = arith.extf %456 : vector<1x32xbf16> to vector<1x32xf32>
    %458 = vector.extract_strided_slice %452 {offsets = [0, 0], sizes = [8, 8], strides = [1, 1]} : vector<8x32xf32> to vector<8x8xf32>
    %459 = vector.shape_cast %458 : vector<8x8xf32> to vector<1x8x8xf32>
    %460 = vector.extract_strided_slice %452 {offsets = [0, 8], sizes = [8, 8], strides = [1, 1]} : vector<8x32xf32> to vector<8x8xf32>
    %461 = vector.shape_cast %460 : vector<8x8xf32> to vector<1x8x8xf32>
    %462 = vector.extract_strided_slice %452 {offsets = [0, 16], sizes = [8, 8], strides = [1, 1]} : vector<8x32xf32> to vector<8x8xf32>
    %463 = vector.shape_cast %462 : vector<8x8xf32> to vector<1x8x8xf32>
    %464 = vector.extract_strided_slice %452 {offsets = [0, 24], sizes = [8, 8], strides = [1, 1]} : vector<8x32xf32> to vector<8x8xf32>
    %465 = vector.shape_cast %464 : vector<8x8xf32> to vector<1x8x8xf32>
    %466 = tpu.concatenate %459, %461, %463, %465 in 0 : vector<1x8x8xf32>, vector<1x8x8xf32>, vector<1x8x8xf32>, vector<1x8x8xf32> -> vector<4x8x8xf32>
    %467 = vector.extract_strided_slice %453 {offsets = [0, 0], sizes = [8, 8], strides = [1, 1]} : vector<8x32xf32> to vector<8x8xf32>
    %468 = vector.shape_cast %467 : vector<8x8xf32> to vector<1x8x8xf32>
    %469 = vector.extract_strided_slice %453 {offsets = [0, 8], sizes = [8, 8], strides = [1, 1]} : vector<8x32xf32> to vector<8x8xf32>
    %470 = vector.shape_cast %469 : vector<8x8xf32> to vector<1x8x8xf32>
    %471 = vector.extract_strided_slice %453 {offsets = [0, 16], sizes = [8, 8], strides = [1, 1]} : vector<8x32xf32> to vector<8x8xf32>
    %472 = vector.shape_cast %471 : vector<8x8xf32> to vector<1x8x8xf32>
    %473 = vector.extract_strided_slice %453 {offsets = [0, 24], sizes = [8, 8], strides = [1, 1]} : vector<8x32xf32> to vector<8x8xf32>
    %474 = vector.shape_cast %473 : vector<8x8xf32> to vector<1x8x8xf32>
    %475 = tpu.concatenate %468, %470, %472, %474 in 0 : vector<1x8x8xf32>, vector<1x8x8xf32>, vector<1x8x8xf32>, vector<1x8x8xf32> -> vector<4x8x8xf32>
    %476 = vector.extract_strided_slice %454 {offsets = [0, 0], sizes = [8, 8], strides = [1, 1]} : vector<8x32xf32> to vector<8x8xf32>
    %477 = vector.shape_cast %476 : vector<8x8xf32> to vector<1x8x8xf32>
    %478 = vector.extract_strided_slice %454 {offsets = [0, 8], sizes = [8, 8], strides = [1, 1]} : vector<8x32xf32> to vector<8x8xf32>
    %479 = vector.shape_cast %478 : vector<8x8xf32> to vector<1x8x8xf32>
    %480 = vector.extract_strided_slice %454 {offsets = [0, 16], sizes = [8, 8], strides = [1, 1]} : vector<8x32xf32> to vector<8x8xf32>
    %481 = vector.shape_cast %480 : vector<8x8xf32> to vector<1x8x8xf32>
    %482 = vector.extract_strided_slice %454 {offsets = [0, 24], sizes = [8, 8], strides = [1, 1]} : vector<8x32xf32> to vector<8x8xf32>
    %483 = vector.shape_cast %482 : vector<8x8xf32> to vector<1x8x8xf32>
    %484 = tpu.concatenate %477, %479, %481, %483 in 0 : vector<1x8x8xf32>, vector<1x8x8xf32>, vector<1x8x8xf32>, vector<1x8x8xf32> -> vector<4x8x8xf32>
    "tpu.trace_start"() <{level = 10 : i32, message = "hqd,hkd->hqk"}> : () -> ()
    %cst_116 = arith.constant dense<0.000000e+00> : vector<4x8x8xf32>
    %485 = tpu.matmul %466, %475, %cst_116 {dimension_numbers = #tpu.dot_dimension_numbers<[2], [2], [1], [1], [0, 0, 0, 1, 1, 1], [0], [0]>} : vector<4x8x8xf32>, vector<4x8x8xf32>, vector<4x8x8xf32> -> vector<4x8x8xf32>
    "tpu.trace_stop"() : () -> ()
    %cst_117 = arith.constant 0.353553385 : f32
    %486 = vector.broadcast %cst_117 : f32 to vector<4x8x8xf32>
    %487 = arith.mulf %485, %486 : vector<4x8x8xf32>
    %488 = vector.broadcast %444 : vector<1x8x8xf32> to vector<4x8x8xf32>
    %489 = arith.addf %487, %488 : vector<4x8x8xf32>
    %cst_118 = arith.constant dense<0xFF800000> : vector<4x8xf32>
    %490 = vector.multi_reduction <maximumf>, %489, %cst_118 [2] : vector<4x8x8xf32> to vector<4x8xf32>
    %491 = vector.shape_cast %490 : vector<4x8xf32> to vector<4x8x1xf32>
    %492 = vector.broadcast %491 : vector<4x8x1xf32> to vector<4x8x8xf32>
    %493 = arith.subf %489, %492 : vector<4x8x8xf32>
    %494 = math.exp %493 : vector<4x8x8xf32>
    %cst_119 = arith.constant dense<0.000000e+00> : vector<4x8xf32>
    %495 = vector.multi_reduction <add>, %494, %cst_119 [2] : vector<4x8x8xf32> to vector<4x8xf32>
    %496 = vector.shape_cast %495 : vector<4x8xf32> to vector<4x8x1xf32>
    %497 = tpu.reciprocal %496 {approx = true} : vector<4x8x1xf32> -> vector<4x8x1xf32>
    "tpu.trace_start"() <{level = 10 : i32, message = "hqk,hkd->hqd"}> : () -> ()
    %cst_120 = arith.constant dense<0.000000e+00> : vector<4x8x8xf32>
    %498 = tpu.matmul %494, %484, %cst_120 {dimension_numbers = #tpu.dot_dimension_numbers<[2], [1], [1], [2], [0, 0, 0, 1, 1, 2], [0], [0]>} : vector<4x8x8xf32>, vector<4x8x8xf32>, vector<4x8x8xf32> -> vector<4x8x8xf32>
    "tpu.trace_stop"() : () -> ()
    %499 = vector.broadcast %497 : vector<4x8x1xf32> to vector<4x8x8xf32>
    %500 = arith.mulf %498, %499 : vector<4x8x8xf32>
    %501 = vector.extract_strided_slice %500 {offsets = [0, 0, 0], sizes = [1, 8, 8], strides = [1, 1, 1]} : vector<4x8x8xf32> to vector<1x8x8xf32>
    %502 = vector.shape_cast %501 : vector<1x8x8xf32> to vector<8x8xf32>
    %503 = arith.truncf %502 : vector<8x8xf32> to vector<8x8xbf16>
    %504 = vector.extract_strided_slice %455 {offsets = [0, 0], sizes = [8, 32], strides = [1, 1]} : vector<32x32xbf16> to vector<8x32xbf16>
    %cst_121 = arith.constant dense<0.000000e+00> : vector<8x32xf32>
    %505 = tpu.matmul %503, %504, %cst_121 {dimension_numbers = #tpu.dot_dimension_numbers<[1], [0], [0], [1], [0, 0, 1, 1], [], []>} : vector<8x8xbf16>, vector<8x32xbf16>, vector<8x32xf32> -> vector<8x32xf32>
    %506 = vector.broadcast %457 : vector<1x32xf32> to vector<8x32xf32>
    %507 = arith.addf %506, %505 : vector<8x32xf32>
    %508 = vector.extract_strided_slice %500 {offsets = [1, 0, 0], sizes = [1, 8, 8], strides = [1, 1, 1]} : vector<4x8x8xf32> to vector<1x8x8xf32>
    %509 = vector.shape_cast %508 : vector<1x8x8xf32> to vector<8x8xf32>
    %510 = arith.truncf %509 : vector<8x8xf32> to vector<8x8xbf16>
    %511 = vector.extract_strided_slice %455 {offsets = [8, 0], sizes = [8, 32], strides = [1, 1]} : vector<32x32xbf16> to vector<8x32xbf16>
    %cst_122 = arith.constant dense<0.000000e+00> : vector<8x32xf32>
    %512 = tpu.matmul %510, %511, %cst_122 {dimension_numbers = #tpu.dot_dimension_numbers<[1], [0], [0], [1], [0, 0, 1, 1], [], []>} : vector<8x8xbf16>, vector<8x32xbf16>, vector<8x32xf32> -> vector<8x32xf32>
    %513 = arith.addf %507, %512 : vector<8x32xf32>
    %514 = vector.extract_strided_slice %500 {offsets = [2, 0, 0], sizes = [1, 8, 8], strides = [1, 1, 1]} : vector<4x8x8xf32> to vector<1x8x8xf32>
    %515 = vector.shape_cast %514 : vector<1x8x8xf32> to vector<8x8xf32>
    %516 = arith.truncf %515 : vector<8x8xf32> to vector<8x8xbf16>
    %517 = vector.extract_strided_slice %455 {offsets = [16, 0], sizes = [8, 32], strides = [1, 1]} : vector<32x32xbf16> to vector<8x32xbf16>
    %cst_123 = arith.constant dense<0.000000e+00> : vector<8x32xf32>
    %518 = tpu.matmul %516, %517, %cst_123 {dimension_numbers = #tpu.dot_dimension_numbers<[1], [0], [0], [1], [0, 0, 1, 1], [], []>} : vector<8x8xbf16>, vector<8x32xbf16>, vector<8x32xf32> -> vector<8x32xf32>
    %519 = arith.addf %513, %518 : vector<8x32xf32>
    %520 = vector.extract_strided_slice %500 {offsets = [3, 0, 0], sizes = [1, 8, 8], strides = [1, 1, 1]} : vector<4x8x8xf32> to vector<1x8x8xf32>
    %521 = vector.shape_cast %520 : vector<1x8x8xf32> to vector<8x8xf32>
    %522 = arith.truncf %521 : vector<8x8xf32> to vector<8x8xbf16>
    %523 = vector.extract_strided_slice %455 {offsets = [24, 0], sizes = [8, 32], strides = [1, 1]} : vector<32x32xbf16> to vector<8x32xbf16>
    %cst_124 = arith.constant dense<0.000000e+00> : vector<8x32xf32>
    %524 = tpu.matmul %522, %523, %cst_124 {dimension_numbers = #tpu.dot_dimension_numbers<[1], [0], [0], [1], [0, 0, 1, 1], [], []>} : vector<8x8xbf16>, vector<8x32xbf16>, vector<8x32xf32> -> vector<8x32xf32>
    %525 = arith.addf %519, %524 : vector<8x32xf32>
    %526 = arith.addf %432, %525 : vector<8x32xf32>
    %c25 = arith.constant 25 : index
    %c0_125 = arith.constant 0 : index
    %527 = vector.load %arg5[%c25, %c0_125] : memref<56x128xbf16, #tpu.memory_space<vmem>>, vector<1x32xbf16>
    %528 = arith.extf %527 : vector<1x32xbf16> to vector<1x32xf32>
    %c26 = arith.constant 26 : index
    %c0_126 = arith.constant 0 : index
    %529 = vector.load %arg5[%c26, %c0_126] : memref<56x128xbf16, #tpu.memory_space<vmem>>, vector<1x32xbf16>
    %530 = arith.extf %529 : vector<1x32xbf16> to vector<1x32xf32>
    %cst_127 = arith.constant dense<0.000000e+00> : vector<8xf32>
    %531 = vector.multi_reduction <add>, %526, %cst_127 [1] : vector<8x32xf32> to vector<8xf32>
    %532 = vector.shape_cast %531 : vector<8xf32> to vector<8x1xf32>
    %cst_128 = arith.constant 3.200000e+01 : f32
    %533 = vector.broadcast %cst_128 : f32 to vector<8x1xf32>
    %534 = arith.divf %532, %533 : vector<8x1xf32>
    %535 = vector.broadcast %534 : vector<8x1xf32> to vector<8x32xf32>
    %536 = arith.subf %526, %535 : vector<8x32xf32>
    %537 = arith.mulf %536, %536 : vector<8x32xf32>
    %cst_129 = arith.constant dense<0.000000e+00> : vector<8xf32>
    %538 = vector.multi_reduction <add>, %537, %cst_129 [1] : vector<8x32xf32> to vector<8xf32>
    %539 = vector.shape_cast %538 : vector<8xf32> to vector<8x1xf32>
    %cst_130 = arith.constant 3.200000e+01 : f32
    %540 = vector.broadcast %cst_130 : f32 to vector<8x1xf32>
    %541 = arith.divf %539, %540 : vector<8x1xf32>
    %542 = vector.broadcast %534 : vector<8x1xf32> to vector<8x32xf32>
    %543 = arith.subf %526, %542 : vector<8x32xf32>
    %cst_131 = arith.constant 9.99999996E-13 : f32
    %544 = vector.broadcast %cst_131 : f32 to vector<8x1xf32>
    %545 = arith.addf %541, %544 : vector<8x1xf32>
    %546 = math.rsqrt %545 : vector<8x1xf32>
    %547 = vector.broadcast %546 : vector<8x1xf32> to vector<8x32xf32>
    %548 = arith.mulf %543, %547 : vector<8x32xf32>
    %549 = vector.broadcast %528 : vector<1x32xf32> to vector<8x32xf32>
    %550 = arith.mulf %548, %549 : vector<8x32xf32>
    %551 = vector.broadcast %530 : vector<1x32xf32> to vector<8x32xf32>
    %552 = arith.addf %550, %551 : vector<8x32xf32>
    %c624 = arith.constant 624 : index
    %c0_132 = arith.constant 0 : index
    %553 = vector.load %arg3[%c624, %c0_132] : memref<944x32xbf16, #tpu.memory_space<vmem>>, vector<32x32xbf16>
    %c27 = arith.constant 27 : index
    %c0_133 = arith.constant 0 : index
    %554 = vector.load %arg5[%c27, %c0_133] : memref<56x128xbf16, #tpu.memory_space<vmem>>, vector<1x32xbf16>
    %555 = arith.extf %554 : vector<1x32xbf16> to vector<1x32xf32>
    %556 = arith.truncf %552 : vector<8x32xf32> to vector<8x32xbf16>
    %cst_134 = arith.constant dense<0.000000e+00> : vector<8x32xf32>
    %557 = tpu.matmul %556, %553, %cst_134 {dimension_numbers = #tpu.dot_dimension_numbers<[1], [0], [0], [1], [0, 0, 1, 1], [], []>} : vector<8x32xbf16>, vector<32x32xbf16>, vector<8x32xf32> -> vector<8x32xf32>
    %558 = vector.broadcast %555 : vector<1x32xf32> to vector<8x32xf32>
    %559 = arith.addf %557, %558 : vector<8x32xf32>
    %c160 = arith.constant 160 : index
    %c0_135 = arith.constant 0 : index
    %560 = vector.load %arg4[%c160, %c0_135] : memref<320x128xbf16, #tpu.memory_space<vmem>>, vector<32x64xbf16>
    %c28 = arith.constant 28 : index
    %c0_136 = arith.constant 0 : index
    %561 = vector.load %arg5[%c28, %c0_136] : memref<56x128xbf16, #tpu.memory_space<vmem>>, vector<1x64xbf16>
    %562 = arith.extf %561 : vector<1x64xbf16> to vector<1x64xf32>
    %563 = arith.truncf %376 : vector<8x32xf32> to vector<8x32xbf16>
    %cst_137 = arith.constant dense<0.000000e+00> : vector<8x64xf32>
    %564 = tpu.matmul %563, %560, %cst_137 {dimension_numbers = #tpu.dot_dimension_numbers<[1], [0], [0], [1], [0, 0, 1, 1], [], []>} : vector<8x32xbf16>, vector<32x64xbf16>, vector<8x64xf32> -> vector<8x64xf32>
    %565 = vector.broadcast %562 : vector<1x64xf32> to vector<8x64xf32>
    %566 = arith.addf %564, %565 : vector<8x64xf32>
    %567 = vector.extract_strided_slice %566 {offsets = [0, 0], sizes = [8, 32], strides = [1, 1]} : vector<8x64xf32> to vector<8x32xf32>
    %568 = vector.extract_strided_slice %566 {offsets = [0, 32], sizes = [8, 32], strides = [1, 1]} : vector<8x64xf32> to vector<8x32xf32>
    %c656 = arith.constant 656 : index
    %c0_138 = arith.constant 0 : index
    %569 = vector.load %arg3[%c656, %c0_138] : memref<944x32xbf16, #tpu.memory_space<vmem>>, vector<32x32xbf16>
    %c29 = arith.constant 29 : index
    %c0_139 = arith.constant 0 : index
    %570 = vector.load %arg5[%c29, %c0_139] : memref<56x128xbf16, #tpu.memory_space<vmem>>, vector<1x32xbf16>
    %571 = arith.extf %570 : vector<1x32xbf16> to vector<1x32xf32>
    %572 = vector.extract_strided_slice %559 {offsets = [0, 0], sizes = [8, 8], strides = [1, 1]} : vector<8x32xf32> to vector<8x8xf32>
    %573 = vector.shape_cast %572 : vector<8x8xf32> to vector<1x8x8xf32>
    %574 = vector.extract_strided_slice %559 {offsets = [0, 8], sizes = [8, 8], strides = [1, 1]} : vector<8x32xf32> to vector<8x8xf32>
    %575 = vector.shape_cast %574 : vector<8x8xf32> to vector<1x8x8xf32>
    %576 = vector.extract_strided_slice %559 {offsets = [0, 16], sizes = [8, 8], strides = [1, 1]} : vector<8x32xf32> to vector<8x8xf32>
    %577 = vector.shape_cast %576 : vector<8x8xf32> to vector<1x8x8xf32>
    %578 = vector.extract_strided_slice %559 {offsets = [0, 24], sizes = [8, 8], strides = [1, 1]} : vector<8x32xf32> to vector<8x8xf32>
    %579 = vector.shape_cast %578 : vector<8x8xf32> to vector<1x8x8xf32>
    %580 = tpu.concatenate %573, %575, %577, %579 in 0 : vector<1x8x8xf32>, vector<1x8x8xf32>, vector<1x8x8xf32>, vector<1x8x8xf32> -> vector<4x8x8xf32>
    %581 = vector.extract_strided_slice %567 {offsets = [0, 0], sizes = [8, 8], strides = [1, 1]} : vector<8x32xf32> to vector<8x8xf32>
    %582 = vector.shape_cast %581 : vector<8x8xf32> to vector<1x8x8xf32>
    %583 = vector.extract_strided_slice %567 {offsets = [0, 8], sizes = [8, 8], strides = [1, 1]} : vector<8x32xf32> to vector<8x8xf32>
    %584 = vector.shape_cast %583 : vector<8x8xf32> to vector<1x8x8xf32>
    %585 = vector.extract_strided_slice %567 {offsets = [0, 16], sizes = [8, 8], strides = [1, 1]} : vector<8x32xf32> to vector<8x8xf32>
    %586 = vector.shape_cast %585 : vector<8x8xf32> to vector<1x8x8xf32>
    %587 = vector.extract_strided_slice %567 {offsets = [0, 24], sizes = [8, 8], strides = [1, 1]} : vector<8x32xf32> to vector<8x8xf32>
    %588 = vector.shape_cast %587 : vector<8x8xf32> to vector<1x8x8xf32>
    %589 = tpu.concatenate %582, %584, %586, %588 in 0 : vector<1x8x8xf32>, vector<1x8x8xf32>, vector<1x8x8xf32>, vector<1x8x8xf32> -> vector<4x8x8xf32>
    %590 = vector.extract_strided_slice %568 {offsets = [0, 0], sizes = [8, 8], strides = [1, 1]} : vector<8x32xf32> to vector<8x8xf32>
    %591 = vector.shape_cast %590 : vector<8x8xf32> to vector<1x8x8xf32>
    %592 = vector.extract_strided_slice %568 {offsets = [0, 8], sizes = [8, 8], strides = [1, 1]} : vector<8x32xf32> to vector<8x8xf32>
    %593 = vector.shape_cast %592 : vector<8x8xf32> to vector<1x8x8xf32>
    %594 = vector.extract_strided_slice %568 {offsets = [0, 16], sizes = [8, 8], strides = [1, 1]} : vector<8x32xf32> to vector<8x8xf32>
    %595 = vector.shape_cast %594 : vector<8x8xf32> to vector<1x8x8xf32>
    %596 = vector.extract_strided_slice %568 {offsets = [0, 24], sizes = [8, 8], strides = [1, 1]} : vector<8x32xf32> to vector<8x8xf32>
    %597 = vector.shape_cast %596 : vector<8x8xf32> to vector<1x8x8xf32>
    %598 = tpu.concatenate %591, %593, %595, %597 in 0 : vector<1x8x8xf32>, vector<1x8x8xf32>, vector<1x8x8xf32>, vector<1x8x8xf32> -> vector<4x8x8xf32>
    "tpu.trace_start"() <{level = 10 : i32, message = "hqd,hkd->hqk"}> : () -> ()
    %cst_140 = arith.constant dense<0.000000e+00> : vector<4x8x8xf32>
    %599 = tpu.matmul %580, %589, %cst_140 {dimension_numbers = #tpu.dot_dimension_numbers<[2], [2], [1], [1], [0, 0, 0, 1, 1, 1], [0], [0]>} : vector<4x8x8xf32>, vector<4x8x8xf32>, vector<4x8x8xf32> -> vector<4x8x8xf32>
    "tpu.trace_stop"() : () -> ()
    %cst_141 = arith.constant 0.353553385 : f32
    %600 = vector.broadcast %cst_141 : f32 to vector<4x8x8xf32>
    %601 = arith.mulf %599, %600 : vector<4x8x8xf32>
    %602 = vector.broadcast %383 : vector<1x8x8xf32> to vector<4x8x8xf32>
    %603 = arith.addf %601, %602 : vector<4x8x8xf32>
    %cst_142 = arith.constant dense<0xFF800000> : vector<4x8xf32>
    %604 = vector.multi_reduction <maximumf>, %603, %cst_142 [2] : vector<4x8x8xf32> to vector<4x8xf32>
    %605 = vector.shape_cast %604 : vector<4x8xf32> to vector<4x8x1xf32>
    %606 = vector.broadcast %605 : vector<4x8x1xf32> to vector<4x8x8xf32>
    %607 = arith.subf %603, %606 : vector<4x8x8xf32>
    %608 = math.exp %607 : vector<4x8x8xf32>
    %cst_143 = arith.constant dense<0.000000e+00> : vector<4x8xf32>
    %609 = vector.multi_reduction <add>, %608, %cst_143 [2] : vector<4x8x8xf32> to vector<4x8xf32>
    %610 = vector.shape_cast %609 : vector<4x8xf32> to vector<4x8x1xf32>
    %611 = tpu.reciprocal %610 {approx = true} : vector<4x8x1xf32> -> vector<4x8x1xf32>
    "tpu.trace_start"() <{level = 10 : i32, message = "hqk,hkd->hqd"}> : () -> ()
    %cst_144 = arith.constant dense<0.000000e+00> : vector<4x8x8xf32>
    %612 = tpu.matmul %608, %598, %cst_144 {dimension_numbers = #tpu.dot_dimension_numbers<[2], [1], [1], [2], [0, 0, 0, 1, 1, 2], [0], [0]>} : vector<4x8x8xf32>, vector<4x8x8xf32>, vector<4x8x8xf32> -> vector<4x8x8xf32>
    "tpu.trace_stop"() : () -> ()
    %613 = vector.broadcast %611 : vector<4x8x1xf32> to vector<4x8x8xf32>
    %614 = arith.mulf %612, %613 : vector<4x8x8xf32>
    %615 = vector.extract_strided_slice %614 {offsets = [0, 0, 0], sizes = [1, 8, 8], strides = [1, 1, 1]} : vector<4x8x8xf32> to vector<1x8x8xf32>
    %616 = vector.shape_cast %615 : vector<1x8x8xf32> to vector<8x8xf32>
    %617 = arith.truncf %616 : vector<8x8xf32> to vector<8x8xbf16>
    %618 = vector.extract_strided_slice %569 {offsets = [0, 0], sizes = [8, 32], strides = [1, 1]} : vector<32x32xbf16> to vector<8x32xbf16>
    %cst_145 = arith.constant dense<0.000000e+00> : vector<8x32xf32>
    %619 = tpu.matmul %617, %618, %cst_145 {dimension_numbers = #tpu.dot_dimension_numbers<[1], [0], [0], [1], [0, 0, 1, 1], [], []>} : vector<8x8xbf16>, vector<8x32xbf16>, vector<8x32xf32> -> vector<8x32xf32>
    %620 = vector.broadcast %571 : vector<1x32xf32> to vector<8x32xf32>
    %621 = arith.addf %620, %619 : vector<8x32xf32>
    %622 = vector.extract_strided_slice %614 {offsets = [1, 0, 0], sizes = [1, 8, 8], strides = [1, 1, 1]} : vector<4x8x8xf32> to vector<1x8x8xf32>
    %623 = vector.shape_cast %622 : vector<1x8x8xf32> to vector<8x8xf32>
    %624 = arith.truncf %623 : vector<8x8xf32> to vector<8x8xbf16>
    %625 = vector.extract_strided_slice %569 {offsets = [8, 0], sizes = [8, 32], strides = [1, 1]} : vector<32x32xbf16> to vector<8x32xbf16>
    %cst_146 = arith.constant dense<0.000000e+00> : vector<8x32xf32>
    %626 = tpu.matmul %624, %625, %cst_146 {dimension_numbers = #tpu.dot_dimension_numbers<[1], [0], [0], [1], [0, 0, 1, 1], [], []>} : vector<8x8xbf16>, vector<8x32xbf16>, vector<8x32xf32> -> vector<8x32xf32>
    %627 = arith.addf %621, %626 : vector<8x32xf32>
    %628 = vector.extract_strided_slice %614 {offsets = [2, 0, 0], sizes = [1, 8, 8], strides = [1, 1, 1]} : vector<4x8x8xf32> to vector<1x8x8xf32>
    %629 = vector.shape_cast %628 : vector<1x8x8xf32> to vector<8x8xf32>
    %630 = arith.truncf %629 : vector<8x8xf32> to vector<8x8xbf16>
    %631 = vector.extract_strided_slice %569 {offsets = [16, 0], sizes = [8, 32], strides = [1, 1]} : vector<32x32xbf16> to vector<8x32xbf16>
    %cst_147 = arith.constant dense<0.000000e+00> : vector<8x32xf32>
    %632 = tpu.matmul %630, %631, %cst_147 {dimension_numbers = #tpu.dot_dimension_numbers<[1], [0], [0], [1], [0, 0, 1, 1], [], []>} : vector<8x8xbf16>, vector<8x32xbf16>, vector<8x32xf32> -> vector<8x32xf32>
    %633 = arith.addf %627, %632 : vector<8x32xf32>
    %634 = vector.extract_strided_slice %614 {offsets = [3, 0, 0], sizes = [1, 8, 8], strides = [1, 1, 1]} : vector<4x8x8xf32> to vector<1x8x8xf32>
    %635 = vector.shape_cast %634 : vector<1x8x8xf32> to vector<8x8xf32>
    %636 = arith.truncf %635 : vector<8x8xf32> to vector<8x8xbf16>
    %637 = vector.extract_strided_slice %569 {offsets = [24, 0], sizes = [8, 32], strides = [1, 1]} : vector<32x32xbf16> to vector<8x32xbf16>
    %cst_148 = arith.constant dense<0.000000e+00> : vector<8x32xf32>
    %638 = tpu.matmul %636, %637, %cst_148 {dimension_numbers = #tpu.dot_dimension_numbers<[1], [0], [0], [1], [0, 0, 1, 1], [], []>} : vector<8x8xbf16>, vector<8x32xbf16>, vector<8x32xf32> -> vector<8x32xf32>
    %639 = arith.addf %633, %638 : vector<8x32xf32>
    %640 = arith.addf %552, %639 : vector<8x32xf32>
    %c30 = arith.constant 30 : index
    %c0_149 = arith.constant 0 : index
    %641 = vector.load %arg5[%c30, %c0_149] : memref<56x128xbf16, #tpu.memory_space<vmem>>, vector<1x32xbf16>
    %642 = arith.extf %641 : vector<1x32xbf16> to vector<1x32xf32>
    %c31 = arith.constant 31 : index
    %c0_150 = arith.constant 0 : index
    %643 = vector.load %arg5[%c31, %c0_150] : memref<56x128xbf16, #tpu.memory_space<vmem>>, vector<1x32xbf16>
    %644 = arith.extf %643 : vector<1x32xbf16> to vector<1x32xf32>
    %cst_151 = arith.constant dense<0.000000e+00> : vector<8xf32>
    %645 = vector.multi_reduction <add>, %640, %cst_151 [1] : vector<8x32xf32> to vector<8xf32>
    %646 = vector.shape_cast %645 : vector<8xf32> to vector<8x1xf32>
    %cst_152 = arith.constant 3.200000e+01 : f32
    %647 = vector.broadcast %cst_152 : f32 to vector<8x1xf32>
    %648 = arith.divf %646, %647 : vector<8x1xf32>
    %649 = vector.broadcast %648 : vector<8x1xf32> to vector<8x32xf32>
    %650 = arith.subf %640, %649 : vector<8x32xf32>
    %651 = arith.mulf %650, %650 : vector<8x32xf32>
    %cst_153 = arith.constant dense<0.000000e+00> : vector<8xf32>
    %652 = vector.multi_reduction <add>, %651, %cst_153 [1] : vector<8x32xf32> to vector<8xf32>
    %653 = vector.shape_cast %652 : vector<8xf32> to vector<8x1xf32>
    %cst_154 = arith.constant 3.200000e+01 : f32
    %654 = vector.broadcast %cst_154 : f32 to vector<8x1xf32>
    %655 = arith.divf %653, %654 : vector<8x1xf32>
    %656 = vector.broadcast %648 : vector<8x1xf32> to vector<8x32xf32>
    %657 = arith.subf %640, %656 : vector<8x32xf32>
    %cst_155 = arith.constant 9.99999996E-13 : f32
    %658 = vector.broadcast %cst_155 : f32 to vector<8x1xf32>
    %659 = arith.addf %655, %658 : vector<8x1xf32>
    %660 = math.rsqrt %659 : vector<8x1xf32>
    %661 = vector.broadcast %660 : vector<8x1xf32> to vector<8x32xf32>
    %662 = arith.mulf %657, %661 : vector<8x32xf32>
    %663 = vector.broadcast %642 : vector<1x32xf32> to vector<8x32xf32>
    %664 = arith.mulf %662, %663 : vector<8x32xf32>
    %665 = vector.broadcast %644 : vector<1x32xf32> to vector<8x32xf32>
    %666 = arith.addf %664, %665 : vector<8x32xf32>
    %c192_156 = arith.constant 192 : index
    %c0_157 = arith.constant 0 : index
    %667 = vector.load %arg4[%c192_156, %c0_157] : memref<320x128xbf16, #tpu.memory_space<vmem>>, vector<32x64xbf16>
    %c32_158 = arith.constant 32 : index
    %c0_159 = arith.constant 0 : index
    %668 = vector.load %arg5[%c32_158, %c0_159] : memref<56x128xbf16, #tpu.memory_space<vmem>>, vector<1x64xbf16>
    %669 = arith.extf %668 : vector<1x64xbf16> to vector<1x64xf32>
    %670 = arith.truncf %666 : vector<8x32xf32> to vector<8x32xbf16>
    %cst_160 = arith.constant dense<0.000000e+00> : vector<8x64xf32>
    %671 = tpu.matmul %670, %667, %cst_160 {dimension_numbers = #tpu.dot_dimension_numbers<[1], [0], [0], [1], [0, 0, 1, 1], [], []>} : vector<8x32xbf16>, vector<32x64xbf16>, vector<8x64xf32> -> vector<8x64xf32>
    %672 = vector.broadcast %669 : vector<1x64xf32> to vector<8x64xf32>
    %673 = arith.addf %671, %672 : vector<8x64xf32>
    %674 = arith.mulf %673, %673 : vector<8x64xf32>
    %675 = arith.mulf %673, %674 : vector<8x64xf32>
    %cst_161 = arith.constant 4.471500e-02 : f32
    %676 = vector.broadcast %cst_161 : f32 to vector<8x64xf32>
    %677 = arith.mulf %676, %675 : vector<8x64xf32>
    %678 = arith.addf %673, %677 : vector<8x64xf32>
    %cst_162 = arith.constant 0.797884583 : f32
    %679 = vector.broadcast %cst_162 : f32 to vector<8x64xf32>
    %680 = arith.mulf %679, %678 : vector<8x64xf32>
    %681 = math.tanh %680 : vector<8x64xf32>
    %cst_163 = arith.constant 1.000000e+00 : f32
    %682 = vector.broadcast %cst_163 : f32 to vector<8x64xf32>
    %683 = arith.addf %682, %681 : vector<8x64xf32>
    %cst_164 = arith.constant 5.000000e-01 : f32
    %684 = vector.broadcast %cst_164 : f32 to vector<8x64xf32>
    %685 = arith.mulf %684, %683 : vector<8x64xf32>
    %686 = arith.mulf %673, %685 : vector<8x64xf32>
    %c688 = arith.constant 688 : index
    %c0_165 = arith.constant 0 : index
    %687 = vector.load %arg3[%c688, %c0_165] : memref<944x32xbf16, #tpu.memory_space<vmem>>, vector<64x32xbf16>
    %c33 = arith.constant 33 : index
    %c0_166 = arith.constant 0 : index
    %688 = vector.load %arg5[%c33, %c0_166] : memref<56x128xbf16, #tpu.memory_space<vmem>>, vector<1x32xbf16>
    %689 = arith.extf %688 : vector<1x32xbf16> to vector<1x32xf32>
    %690 = arith.truncf %686 : vector<8x64xf32> to vector<8x64xbf16>
    %cst_167 = arith.constant dense<0.000000e+00> : vector<8x32xf32>
    %691 = tpu.matmul %690, %687, %cst_167 {dimension_numbers = #tpu.dot_dimension_numbers<[1], [0], [0], [1], [0, 0, 1, 1], [], []>} : vector<8x64xbf16>, vector<64x32xbf16>, vector<8x32xf32> -> vector<8x32xf32>
    %692 = vector.broadcast %689 : vector<1x32xf32> to vector<8x32xf32>
    %693 = arith.addf %691, %692 : vector<8x32xf32>
    %694 = arith.addf %666, %693 : vector<8x32xf32>
    %c34 = arith.constant 34 : index
    %c0_168 = arith.constant 0 : index
    %695 = vector.load %arg5[%c34, %c0_168] : memref<56x128xbf16, #tpu.memory_space<vmem>>, vector<1x32xbf16>
    %696 = arith.extf %695 : vector<1x32xbf16> to vector<1x32xf32>
    %c35 = arith.constant 35 : index
    %c0_169 = arith.constant 0 : index
    %697 = vector.load %arg5[%c35, %c0_169] : memref<56x128xbf16, #tpu.memory_space<vmem>>, vector<1x32xbf16>
    %698 = arith.extf %697 : vector<1x32xbf16> to vector<1x32xf32>
    %cst_170 = arith.constant dense<0.000000e+00> : vector<8xf32>
    %699 = vector.multi_reduction <add>, %694, %cst_170 [1] : vector<8x32xf32> to vector<8xf32>
    %700 = vector.shape_cast %699 : vector<8xf32> to vector<8x1xf32>
    %cst_171 = arith.constant 3.200000e+01 : f32
    %701 = vector.broadcast %cst_171 : f32 to vector<8x1xf32>
    %702 = arith.divf %700, %701 : vector<8x1xf32>
    %703 = vector.broadcast %702 : vector<8x1xf32> to vector<8x32xf32>
    %704 = arith.subf %694, %703 : vector<8x32xf32>
    %705 = arith.mulf %704, %704 : vector<8x32xf32>
    %cst_172 = arith.constant dense<0.000000e+00> : vector<8xf32>
    %706 = vector.multi_reduction <add>, %705, %cst_172 [1] : vector<8x32xf32> to vector<8xf32>
    %707 = vector.shape_cast %706 : vector<8xf32> to vector<8x1xf32>
    %cst_173 = arith.constant 3.200000e+01 : f32
    %708 = vector.broadcast %cst_173 : f32 to vector<8x1xf32>
    %709 = arith.divf %707, %708 : vector<8x1xf32>
    %710 = vector.broadcast %702 : vector<8x1xf32> to vector<8x32xf32>
    %711 = arith.subf %694, %710 : vector<8x32xf32>
    %cst_174 = arith.constant 9.99999996E-13 : f32
    %712 = vector.broadcast %cst_174 : f32 to vector<8x1xf32>
    %713 = arith.addf %709, %712 : vector<8x1xf32>
    %714 = math.rsqrt %713 : vector<8x1xf32>
    %715 = vector.broadcast %714 : vector<8x1xf32> to vector<8x32xf32>
    %716 = arith.mulf %711, %715 : vector<8x32xf32>
    %717 = vector.broadcast %696 : vector<1x32xf32> to vector<8x32xf32>
    %718 = arith.mulf %716, %717 : vector<8x32xf32>
    %719 = vector.broadcast %698 : vector<1x32xf32> to vector<8x32xf32>
    %720 = arith.addf %718, %719 : vector<8x32xf32>
    %c224 = arith.constant 224 : index
    %c0_175 = arith.constant 0 : index
    %721 = vector.load %arg4[%c224, %c0_175] : memref<320x128xbf16, #tpu.memory_space<vmem>>, vector<32x96xbf16>
    %c36 = arith.constant 36 : index
    %c0_176 = arith.constant 0 : index
    %722 = vector.load %arg5[%c36, %c0_176] : memref<56x128xbf16, #tpu.memory_space<vmem>>, vector<1x96xbf16>
    %723 = arith.extf %722 : vector<1x96xbf16> to vector<1x96xf32>
    %724 = arith.truncf %720 : vector<8x32xf32> to vector<8x32xbf16>
    %cst_177 = arith.constant dense<0.000000e+00> : vector<8x96xf32>
    %725 = tpu.matmul %724, %721, %cst_177 {dimension_numbers = #tpu.dot_dimension_numbers<[1], [0], [0], [1], [0, 0, 1, 1], [], []>} : vector<8x32xbf16>, vector<32x96xbf16>, vector<8x96xf32> -> vector<8x96xf32>
    %726 = vector.broadcast %723 : vector<1x96xf32> to vector<8x96xf32>
    %727 = arith.addf %725, %726 : vector<8x96xf32>
    %728 = vector.extract_strided_slice %727 {offsets = [0, 0], sizes = [8, 32], strides = [1, 1]} : vector<8x96xf32> to vector<8x32xf32>
    %729 = vector.extract_strided_slice %727 {offsets = [0, 32], sizes = [8, 32], strides = [1, 1]} : vector<8x96xf32> to vector<8x32xf32>
    %730 = vector.extract_strided_slice %727 {offsets = [0, 64], sizes = [8, 32], strides = [1, 1]} : vector<8x96xf32> to vector<8x32xf32>
    %c752 = arith.constant 752 : index
    %c0_178 = arith.constant 0 : index
    %731 = vector.load %arg3[%c752, %c0_178] : memref<944x32xbf16, #tpu.memory_space<vmem>>, vector<32x32xbf16>
    %c37 = arith.constant 37 : index
    %c0_179 = arith.constant 0 : index
    %732 = vector.load %arg5[%c37, %c0_179] : memref<56x128xbf16, #tpu.memory_space<vmem>>, vector<1x32xbf16>
    %733 = arith.extf %732 : vector<1x32xbf16> to vector<1x32xf32>
    %734 = vector.extract_strided_slice %728 {offsets = [0, 0], sizes = [8, 8], strides = [1, 1]} : vector<8x32xf32> to vector<8x8xf32>
    %735 = vector.shape_cast %734 : vector<8x8xf32> to vector<1x8x8xf32>
    %736 = vector.extract_strided_slice %728 {offsets = [0, 8], sizes = [8, 8], strides = [1, 1]} : vector<8x32xf32> to vector<8x8xf32>
    %737 = vector.shape_cast %736 : vector<8x8xf32> to vector<1x8x8xf32>
    %738 = vector.extract_strided_slice %728 {offsets = [0, 16], sizes = [8, 8], strides = [1, 1]} : vector<8x32xf32> to vector<8x8xf32>
    %739 = vector.shape_cast %738 : vector<8x8xf32> to vector<1x8x8xf32>
    %740 = vector.extract_strided_slice %728 {offsets = [0, 24], sizes = [8, 8], strides = [1, 1]} : vector<8x32xf32> to vector<8x8xf32>
    %741 = vector.shape_cast %740 : vector<8x8xf32> to vector<1x8x8xf32>
    %742 = tpu.concatenate %735, %737, %739, %741 in 0 : vector<1x8x8xf32>, vector<1x8x8xf32>, vector<1x8x8xf32>, vector<1x8x8xf32> -> vector<4x8x8xf32>
    %743 = vector.extract_strided_slice %729 {offsets = [0, 0], sizes = [8, 8], strides = [1, 1]} : vector<8x32xf32> to vector<8x8xf32>
    %744 = vector.shape_cast %743 : vector<8x8xf32> to vector<1x8x8xf32>
    %745 = vector.extract_strided_slice %729 {offsets = [0, 8], sizes = [8, 8], strides = [1, 1]} : vector<8x32xf32> to vector<8x8xf32>
    %746 = vector.shape_cast %745 : vector<8x8xf32> to vector<1x8x8xf32>
    %747 = vector.extract_strided_slice %729 {offsets = [0, 16], sizes = [8, 8], strides = [1, 1]} : vector<8x32xf32> to vector<8x8xf32>
    %748 = vector.shape_cast %747 : vector<8x8xf32> to vector<1x8x8xf32>
    %749 = vector.extract_strided_slice %729 {offsets = [0, 24], sizes = [8, 8], strides = [1, 1]} : vector<8x32xf32> to vector<8x8xf32>
    %750 = vector.shape_cast %749 : vector<8x8xf32> to vector<1x8x8xf32>
    %751 = tpu.concatenate %744, %746, %748, %750 in 0 : vector<1x8x8xf32>, vector<1x8x8xf32>, vector<1x8x8xf32>, vector<1x8x8xf32> -> vector<4x8x8xf32>
    %752 = vector.extract_strided_slice %730 {offsets = [0, 0], sizes = [8, 8], strides = [1, 1]} : vector<8x32xf32> to vector<8x8xf32>
    %753 = vector.shape_cast %752 : vector<8x8xf32> to vector<1x8x8xf32>
    %754 = vector.extract_strided_slice %730 {offsets = [0, 8], sizes = [8, 8], strides = [1, 1]} : vector<8x32xf32> to vector<8x8xf32>
    %755 = vector.shape_cast %754 : vector<8x8xf32> to vector<1x8x8xf32>
    %756 = vector.extract_strided_slice %730 {offsets = [0, 16], sizes = [8, 8], strides = [1, 1]} : vector<8x32xf32> to vector<8x8xf32>
    %757 = vector.shape_cast %756 : vector<8x8xf32> to vector<1x8x8xf32>
    %758 = vector.extract_strided_slice %730 {offsets = [0, 24], sizes = [8, 8], strides = [1, 1]} : vector<8x32xf32> to vector<8x8xf32>
    %759 = vector.shape_cast %758 : vector<8x8xf32> to vector<1x8x8xf32>
    %760 = tpu.concatenate %753, %755, %757, %759 in 0 : vector<1x8x8xf32>, vector<1x8x8xf32>, vector<1x8x8xf32>, vector<1x8x8xf32> -> vector<4x8x8xf32>
    "tpu.trace_start"() <{level = 10 : i32, message = "hqd,hkd->hqk"}> : () -> ()
    %cst_180 = arith.constant dense<0.000000e+00> : vector<4x8x8xf32>
    %761 = tpu.matmul %742, %751, %cst_180 {dimension_numbers = #tpu.dot_dimension_numbers<[2], [2], [1], [1], [0, 0, 0, 1, 1, 1], [0], [0]>} : vector<4x8x8xf32>, vector<4x8x8xf32>, vector<4x8x8xf32> -> vector<4x8x8xf32>
    "tpu.trace_stop"() : () -> ()
    %cst_181 = arith.constant 0.353553385 : f32
    %762 = vector.broadcast %cst_181 : f32 to vector<4x8x8xf32>
    %763 = arith.mulf %761, %762 : vector<4x8x8xf32>
    %764 = vector.broadcast %444 : vector<1x8x8xf32> to vector<4x8x8xf32>
    %765 = arith.addf %763, %764 : vector<4x8x8xf32>
    %cst_182 = arith.constant dense<0xFF800000> : vector<4x8xf32>
    %766 = vector.multi_reduction <maximumf>, %765, %cst_182 [2] : vector<4x8x8xf32> to vector<4x8xf32>
    %767 = vector.shape_cast %766 : vector<4x8xf32> to vector<4x8x1xf32>
    %768 = vector.broadcast %767 : vector<4x8x1xf32> to vector<4x8x8xf32>
    %769 = arith.subf %765, %768 : vector<4x8x8xf32>
    %770 = math.exp %769 : vector<4x8x8xf32>
    %cst_183 = arith.constant dense<0.000000e+00> : vector<4x8xf32>
    %771 = vector.multi_reduction <add>, %770, %cst_183 [2] : vector<4x8x8xf32> to vector<4x8xf32>
    %772 = vector.shape_cast %771 : vector<4x8xf32> to vector<4x8x1xf32>
    %773 = tpu.reciprocal %772 {approx = true} : vector<4x8x1xf32> -> vector<4x8x1xf32>
    "tpu.trace_start"() <{level = 10 : i32, message = "hqk,hkd->hqd"}> : () -> ()
    %cst_184 = arith.constant dense<0.000000e+00> : vector<4x8x8xf32>
    %774 = tpu.matmul %770, %760, %cst_184 {dimension_numbers = #tpu.dot_dimension_numbers<[2], [1], [1], [2], [0, 0, 0, 1, 1, 2], [0], [0]>} : vector<4x8x8xf32>, vector<4x8x8xf32>, vector<4x8x8xf32> -> vector<4x8x8xf32>
    "tpu.trace_stop"() : () -> ()
    %775 = vector.broadcast %773 : vector<4x8x1xf32> to vector<4x8x8xf32>
    %776 = arith.mulf %774, %775 : vector<4x8x8xf32>
    %777 = vector.extract_strided_slice %776 {offsets = [0, 0, 0], sizes = [1, 8, 8], strides = [1, 1, 1]} : vector<4x8x8xf32> to vector<1x8x8xf32>
    %778 = vector.shape_cast %777 : vector<1x8x8xf32> to vector<8x8xf32>
    %779 = arith.truncf %778 : vector<8x8xf32> to vector<8x8xbf16>
    %780 = vector.extract_strided_slice %731 {offsets = [0, 0], sizes = [8, 32], strides = [1, 1]} : vector<32x32xbf16> to vector<8x32xbf16>
    %cst_185 = arith.constant dense<0.000000e+00> : vector<8x32xf32>
    %781 = tpu.matmul %779, %780, %cst_185 {dimension_numbers = #tpu.dot_dimension_numbers<[1], [0], [0], [1], [0, 0, 1, 1], [], []>} : vector<8x8xbf16>, vector<8x32xbf16>, vector<8x32xf32> -> vector<8x32xf32>
    %782 = vector.broadcast %733 : vector<1x32xf32> to vector<8x32xf32>
    %783 = arith.addf %782, %781 : vector<8x32xf32>
    %784 = vector.extract_strided_slice %776 {offsets = [1, 0, 0], sizes = [1, 8, 8], strides = [1, 1, 1]} : vector<4x8x8xf32> to vector<1x8x8xf32>
    %785 = vector.shape_cast %784 : vector<1x8x8xf32> to vector<8x8xf32>
    %786 = arith.truncf %785 : vector<8x8xf32> to vector<8x8xbf16>
    %787 = vector.extract_strided_slice %731 {offsets = [8, 0], sizes = [8, 32], strides = [1, 1]} : vector<32x32xbf16> to vector<8x32xbf16>
    %cst_186 = arith.constant dense<0.000000e+00> : vector<8x32xf32>
    %788 = tpu.matmul %786, %787, %cst_186 {dimension_numbers = #tpu.dot_dimension_numbers<[1], [0], [0], [1], [0, 0, 1, 1], [], []>} : vector<8x8xbf16>, vector<8x32xbf16>, vector<8x32xf32> -> vector<8x32xf32>
    %789 = arith.addf %783, %788 : vector<8x32xf32>
    %790 = vector.extract_strided_slice %776 {offsets = [2, 0, 0], sizes = [1, 8, 8], strides = [1, 1, 1]} : vector<4x8x8xf32> to vector<1x8x8xf32>
    %791 = vector.shape_cast %790 : vector<1x8x8xf32> to vector<8x8xf32>
    %792 = arith.truncf %791 : vector<8x8xf32> to vector<8x8xbf16>
    %793 = vector.extract_strided_slice %731 {offsets = [16, 0], sizes = [8, 32], strides = [1, 1]} : vector<32x32xbf16> to vector<8x32xbf16>
    %cst_187 = arith.constant dense<0.000000e+00> : vector<8x32xf32>
    %794 = tpu.matmul %792, %793, %cst_187 {dimension_numbers = #tpu.dot_dimension_numbers<[1], [0], [0], [1], [0, 0, 1, 1], [], []>} : vector<8x8xbf16>, vector<8x32xbf16>, vector<8x32xf32> -> vector<8x32xf32>
    %795 = arith.addf %789, %794 : vector<8x32xf32>
    %796 = vector.extract_strided_slice %776 {offsets = [3, 0, 0], sizes = [1, 8, 8], strides = [1, 1, 1]} : vector<4x8x8xf32> to vector<1x8x8xf32>
    %797 = vector.shape_cast %796 : vector<1x8x8xf32> to vector<8x8xf32>
    %798 = arith.truncf %797 : vector<8x8xf32> to vector<8x8xbf16>
    %799 = vector.extract_strided_slice %731 {offsets = [24, 0], sizes = [8, 32], strides = [1, 1]} : vector<32x32xbf16> to vector<8x32xbf16>
    %cst_188 = arith.constant dense<0.000000e+00> : vector<8x32xf32>
    %800 = tpu.matmul %798, %799, %cst_188 {dimension_numbers = #tpu.dot_dimension_numbers<[1], [0], [0], [1], [0, 0, 1, 1], [], []>} : vector<8x8xbf16>, vector<8x32xbf16>, vector<8x32xf32> -> vector<8x32xf32>
    %801 = arith.addf %795, %800 : vector<8x32xf32>
    %802 = arith.addf %720, %801 : vector<8x32xf32>
    %c38 = arith.constant 38 : index
    %c0_189 = arith.constant 0 : index
    %803 = vector.load %arg5[%c38, %c0_189] : memref<56x128xbf16, #tpu.memory_space<vmem>>, vector<1x32xbf16>
    %804 = arith.extf %803 : vector<1x32xbf16> to vector<1x32xf32>
    %c39 = arith.constant 39 : index
    %c0_190 = arith.constant 0 : index
    %805 = vector.load %arg5[%c39, %c0_190] : memref<56x128xbf16, #tpu.memory_space<vmem>>, vector<1x32xbf16>
    %806 = arith.extf %805 : vector<1x32xbf16> to vector<1x32xf32>
    %cst_191 = arith.constant dense<0.000000e+00> : vector<8xf32>
    %807 = vector.multi_reduction <add>, %802, %cst_191 [1] : vector<8x32xf32> to vector<8xf32>
    %808 = vector.shape_cast %807 : vector<8xf32> to vector<8x1xf32>
    %cst_192 = arith.constant 3.200000e+01 : f32
    %809 = vector.broadcast %cst_192 : f32 to vector<8x1xf32>
    %810 = arith.divf %808, %809 : vector<8x1xf32>
    %811 = vector.broadcast %810 : vector<8x1xf32> to vector<8x32xf32>
    %812 = arith.subf %802, %811 : vector<8x32xf32>
    %813 = arith.mulf %812, %812 : vector<8x32xf32>
    %cst_193 = arith.constant dense<0.000000e+00> : vector<8xf32>
    %814 = vector.multi_reduction <add>, %813, %cst_193 [1] : vector<8x32xf32> to vector<8xf32>
    %815 = vector.shape_cast %814 : vector<8xf32> to vector<8x1xf32>
    %cst_194 = arith.constant 3.200000e+01 : f32
    %816 = vector.broadcast %cst_194 : f32 to vector<8x1xf32>
    %817 = arith.divf %815, %816 : vector<8x1xf32>
    %818 = vector.broadcast %810 : vector<8x1xf32> to vector<8x32xf32>
    %819 = arith.subf %802, %818 : vector<8x32xf32>
    %cst_195 = arith.constant 9.99999996E-13 : f32
    %820 = vector.broadcast %cst_195 : f32 to vector<8x1xf32>
    %821 = arith.addf %817, %820 : vector<8x1xf32>
    %822 = math.rsqrt %821 : vector<8x1xf32>
    %823 = vector.broadcast %822 : vector<8x1xf32> to vector<8x32xf32>
    %824 = arith.mulf %819, %823 : vector<8x32xf32>
    %825 = vector.broadcast %804 : vector<1x32xf32> to vector<8x32xf32>
    %826 = arith.mulf %824, %825 : vector<8x32xf32>
    %827 = vector.broadcast %806 : vector<1x32xf32> to vector<8x32xf32>
    %828 = arith.addf %826, %827 : vector<8x32xf32>
    %c784 = arith.constant 784 : index
    %c0_196 = arith.constant 0 : index
    %829 = vector.load %arg3[%c784, %c0_196] : memref<944x32xbf16, #tpu.memory_space<vmem>>, vector<32x32xbf16>
    %c40 = arith.constant 40 : index
    %c0_197 = arith.constant 0 : index
    %830 = vector.load %arg5[%c40, %c0_197] : memref<56x128xbf16, #tpu.memory_space<vmem>>, vector<1x32xbf16>
    %831 = arith.extf %830 : vector<1x32xbf16> to vector<1x32xf32>
    %832 = arith.truncf %828 : vector<8x32xf32> to vector<8x32xbf16>
    %cst_198 = arith.constant dense<0.000000e+00> : vector<8x32xf32>
    %833 = tpu.matmul %832, %829, %cst_198 {dimension_numbers = #tpu.dot_dimension_numbers<[1], [0], [0], [1], [0, 0, 1, 1], [], []>} : vector<8x32xbf16>, vector<32x32xbf16>, vector<8x32xf32> -> vector<8x32xf32>
    %834 = vector.broadcast %831 : vector<1x32xf32> to vector<8x32xf32>
    %835 = arith.addf %833, %834 : vector<8x32xf32>
    %c256 = arith.constant 256 : index
    %c0_199 = arith.constant 0 : index
    %836 = vector.load %arg4[%c256, %c0_199] : memref<320x128xbf16, #tpu.memory_space<vmem>>, vector<32x64xbf16>
    %c41 = arith.constant 41 : index
    %c0_200 = arith.constant 0 : index
    %837 = vector.load %arg5[%c41, %c0_200] : memref<56x128xbf16, #tpu.memory_space<vmem>>, vector<1x64xbf16>
    %838 = arith.extf %837 : vector<1x64xbf16> to vector<1x64xf32>
    %839 = arith.truncf %376 : vector<8x32xf32> to vector<8x32xbf16>
    %cst_201 = arith.constant dense<0.000000e+00> : vector<8x64xf32>
    %840 = tpu.matmul %839, %836, %cst_201 {dimension_numbers = #tpu.dot_dimension_numbers<[1], [0], [0], [1], [0, 0, 1, 1], [], []>} : vector<8x32xbf16>, vector<32x64xbf16>, vector<8x64xf32> -> vector<8x64xf32>
    %841 = vector.broadcast %838 : vector<1x64xf32> to vector<8x64xf32>
    %842 = arith.addf %840, %841 : vector<8x64xf32>
    %843 = vector.extract_strided_slice %842 {offsets = [0, 0], sizes = [8, 32], strides = [1, 1]} : vector<8x64xf32> to vector<8x32xf32>
    %844 = vector.extract_strided_slice %842 {offsets = [0, 32], sizes = [8, 32], strides = [1, 1]} : vector<8x64xf32> to vector<8x32xf32>
    %c816 = arith.constant 816 : index
    %c0_202 = arith.constant 0 : index
    %845 = vector.load %arg3[%c816, %c0_202] : memref<944x32xbf16, #tpu.memory_space<vmem>>, vector<32x32xbf16>
    %c42 = arith.constant 42 : index
    %c0_203 = arith.constant 0 : index
    %846 = vector.load %arg5[%c42, %c0_203] : memref<56x128xbf16, #tpu.memory_space<vmem>>, vector<1x32xbf16>
    %847 = arith.extf %846 : vector<1x32xbf16> to vector<1x32xf32>
    %848 = vector.extract_strided_slice %835 {offsets = [0, 0], sizes = [8, 8], strides = [1, 1]} : vector<8x32xf32> to vector<8x8xf32>
    %849 = vector.shape_cast %848 : vector<8x8xf32> to vector<1x8x8xf32>
    %850 = vector.extract_strided_slice %835 {offsets = [0, 8], sizes = [8, 8], strides = [1, 1]} : vector<8x32xf32> to vector<8x8xf32>
    %851 = vector.shape_cast %850 : vector<8x8xf32> to vector<1x8x8xf32>
    %852 = vector.extract_strided_slice %835 {offsets = [0, 16], sizes = [8, 8], strides = [1, 1]} : vector<8x32xf32> to vector<8x8xf32>
    %853 = vector.shape_cast %852 : vector<8x8xf32> to vector<1x8x8xf32>
    %854 = vector.extract_strided_slice %835 {offsets = [0, 24], sizes = [8, 8], strides = [1, 1]} : vector<8x32xf32> to vector<8x8xf32>
    %855 = vector.shape_cast %854 : vector<8x8xf32> to vector<1x8x8xf32>
    %856 = tpu.concatenate %849, %851, %853, %855 in 0 : vector<1x8x8xf32>, vector<1x8x8xf32>, vector<1x8x8xf32>, vector<1x8x8xf32> -> vector<4x8x8xf32>
    %857 = vector.extract_strided_slice %843 {offsets = [0, 0], sizes = [8, 8], strides = [1, 1]} : vector<8x32xf32> to vector<8x8xf32>
    %858 = vector.shape_cast %857 : vector<8x8xf32> to vector<1x8x8xf32>
    %859 = vector.extract_strided_slice %843 {offsets = [0, 8], sizes = [8, 8], strides = [1, 1]} : vector<8x32xf32> to vector<8x8xf32>
    %860 = vector.shape_cast %859 : vector<8x8xf32> to vector<1x8x8xf32>
    %861 = vector.extract_strided_slice %843 {offsets = [0, 16], sizes = [8, 8], strides = [1, 1]} : vector<8x32xf32> to vector<8x8xf32>
    %862 = vector.shape_cast %861 : vector<8x8xf32> to vector<1x8x8xf32>
    %863 = vector.extract_strided_slice %843 {offsets = [0, 24], sizes = [8, 8], strides = [1, 1]} : vector<8x32xf32> to vector<8x8xf32>
    %864 = vector.shape_cast %863 : vector<8x8xf32> to vector<1x8x8xf32>
    %865 = tpu.concatenate %858, %860, %862, %864 in 0 : vector<1x8x8xf32>, vector<1x8x8xf32>, vector<1x8x8xf32>, vector<1x8x8xf32> -> vector<4x8x8xf32>
    %866 = vector.extract_strided_slice %844 {offsets = [0, 0], sizes = [8, 8], strides = [1, 1]} : vector<8x32xf32> to vector<8x8xf32>
    %867 = vector.shape_cast %866 : vector<8x8xf32> to vector<1x8x8xf32>
    %868 = vector.extract_strided_slice %844 {offsets = [0, 8], sizes = [8, 8], strides = [1, 1]} : vector<8x32xf32> to vector<8x8xf32>
    %869 = vector.shape_cast %868 : vector<8x8xf32> to vector<1x8x8xf32>
    %870 = vector.extract_strided_slice %844 {offsets = [0, 16], sizes = [8, 8], strides = [1, 1]} : vector<8x32xf32> to vector<8x8xf32>
    %871 = vector.shape_cast %870 : vector<8x8xf32> to vector<1x8x8xf32>
    %872 = vector.extract_strided_slice %844 {offsets = [0, 24], sizes = [8, 8], strides = [1, 1]} : vector<8x32xf32> to vector<8x8xf32>
    %873 = vector.shape_cast %872 : vector<8x8xf32> to vector<1x8x8xf32>
    %874 = tpu.concatenate %867, %869, %871, %873 in 0 : vector<1x8x8xf32>, vector<1x8x8xf32>, vector<1x8x8xf32>, vector<1x8x8xf32> -> vector<4x8x8xf32>
    "tpu.trace_start"() <{level = 10 : i32, message = "hqd,hkd->hqk"}> : () -> ()
    %cst_204 = arith.constant dense<0.000000e+00> : vector<4x8x8xf32>
    %875 = tpu.matmul %856, %865, %cst_204 {dimension_numbers = #tpu.dot_dimension_numbers<[2], [2], [1], [1], [0, 0, 0, 1, 1, 1], [0], [0]>} : vector<4x8x8xf32>, vector<4x8x8xf32>, vector<4x8x8xf32> -> vector<4x8x8xf32>
    "tpu.trace_stop"() : () -> ()
    %cst_205 = arith.constant 0.353553385 : f32
    %876 = vector.broadcast %cst_205 : f32 to vector<4x8x8xf32>
    %877 = arith.mulf %875, %876 : vector<4x8x8xf32>
    %878 = vector.broadcast %383 : vector<1x8x8xf32> to vector<4x8x8xf32>
    %879 = arith.addf %877, %878 : vector<4x8x8xf32>
    %cst_206 = arith.constant dense<0xFF800000> : vector<4x8xf32>
    %880 = vector.multi_reduction <maximumf>, %879, %cst_206 [2] : vector<4x8x8xf32> to vector<4x8xf32>
    %881 = vector.shape_cast %880 : vector<4x8xf32> to vector<4x8x1xf32>
    %882 = vector.broadcast %881 : vector<4x8x1xf32> to vector<4x8x8xf32>
    %883 = arith.subf %879, %882 : vector<4x8x8xf32>
    %884 = math.exp %883 : vector<4x8x8xf32>
    %cst_207 = arith.constant dense<0.000000e+00> : vector<4x8xf32>
    %885 = vector.multi_reduction <add>, %884, %cst_207 [2] : vector<4x8x8xf32> to vector<4x8xf32>
    %886 = vector.shape_cast %885 : vector<4x8xf32> to vector<4x8x1xf32>
    %887 = tpu.reciprocal %886 {approx = true} : vector<4x8x1xf32> -> vector<4x8x1xf32>
    "tpu.trace_start"() <{level = 10 : i32, message = "hqk,hkd->hqd"}> : () -> ()
    %cst_208 = arith.constant dense<0.000000e+00> : vector<4x8x8xf32>
    %888 = tpu.matmul %884, %874, %cst_208 {dimension_numbers = #tpu.dot_dimension_numbers<[2], [1], [1], [2], [0, 0, 0, 1, 1, 2], [0], [0]>} : vector<4x8x8xf32>, vector<4x8x8xf32>, vector<4x8x8xf32> -> vector<4x8x8xf32>
    "tpu.trace_stop"() : () -> ()
    %889 = vector.broadcast %887 : vector<4x8x1xf32> to vector<4x8x8xf32>
    %890 = arith.mulf %888, %889 : vector<4x8x8xf32>
    %891 = vector.extract_strided_slice %890 {offsets = [0, 0, 0], sizes = [1, 8, 8], strides = [1, 1, 1]} : vector<4x8x8xf32> to vector<1x8x8xf32>
    %892 = vector.shape_cast %891 : vector<1x8x8xf32> to vector<8x8xf32>
    %893 = arith.truncf %892 : vector<8x8xf32> to vector<8x8xbf16>
    %894 = vector.extract_strided_slice %845 {offsets = [0, 0], sizes = [8, 32], strides = [1, 1]} : vector<32x32xbf16> to vector<8x32xbf16>
    %cst_209 = arith.constant dense<0.000000e+00> : vector<8x32xf32>
    %895 = tpu.matmul %893, %894, %cst_209 {dimension_numbers = #tpu.dot_dimension_numbers<[1], [0], [0], [1], [0, 0, 1, 1], [], []>} : vector<8x8xbf16>, vector<8x32xbf16>, vector<8x32xf32> -> vector<8x32xf32>
    %896 = vector.broadcast %847 : vector<1x32xf32> to vector<8x32xf32>
    %897 = arith.addf %896, %895 : vector<8x32xf32>
    %898 = vector.extract_strided_slice %890 {offsets = [1, 0, 0], sizes = [1, 8, 8], strides = [1, 1, 1]} : vector<4x8x8xf32> to vector<1x8x8xf32>
    %899 = vector.shape_cast %898 : vector<1x8x8xf32> to vector<8x8xf32>
    %900 = arith.truncf %899 : vector<8x8xf32> to vector<8x8xbf16>
    %901 = vector.extract_strided_slice %845 {offsets = [8, 0], sizes = [8, 32], strides = [1, 1]} : vector<32x32xbf16> to vector<8x32xbf16>
    %cst_210 = arith.constant dense<0.000000e+00> : vector<8x32xf32>
    %902 = tpu.matmul %900, %901, %cst_210 {dimension_numbers = #tpu.dot_dimension_numbers<[1], [0], [0], [1], [0, 0, 1, 1], [], []>} : vector<8x8xbf16>, vector<8x32xbf16>, vector<8x32xf32> -> vector<8x32xf32>
    %903 = arith.addf %897, %902 : vector<8x32xf32>
    %904 = vector.extract_strided_slice %890 {offsets = [2, 0, 0], sizes = [1, 8, 8], strides = [1, 1, 1]} : vector<4x8x8xf32> to vector<1x8x8xf32>
    %905 = vector.shape_cast %904 : vector<1x8x8xf32> to vector<8x8xf32>
    %906 = arith.truncf %905 : vector<8x8xf32> to vector<8x8xbf16>
    %907 = vector.extract_strided_slice %845 {offsets = [16, 0], sizes = [8, 32], strides = [1, 1]} : vector<32x32xbf16> to vector<8x32xbf16>
    %cst_211 = arith.constant dense<0.000000e+00> : vector<8x32xf32>
    %908 = tpu.matmul %906, %907, %cst_211 {dimension_numbers = #tpu.dot_dimension_numbers<[1], [0], [0], [1], [0, 0, 1, 1], [], []>} : vector<8x8xbf16>, vector<8x32xbf16>, vector<8x32xf32> -> vector<8x32xf32>
    %909 = arith.addf %903, %908 : vector<8x32xf32>
    %910 = vector.extract_strided_slice %890 {offsets = [3, 0, 0], sizes = [1, 8, 8], strides = [1, 1, 1]} : vector<4x8x8xf32> to vector<1x8x8xf32>
    %911 = vector.shape_cast %910 : vector<1x8x8xf32> to vector<8x8xf32>
    %912 = arith.truncf %911 : vector<8x8xf32> to vector<8x8xbf16>
    %913 = vector.extract_strided_slice %845 {offsets = [24, 0], sizes = [8, 32], strides = [1, 1]} : vector<32x32xbf16> to vector<8x32xbf16>
    %cst_212 = arith.constant dense<0.000000e+00> : vector<8x32xf32>
    %914 = tpu.matmul %912, %913, %cst_212 {dimension_numbers = #tpu.dot_dimension_numbers<[1], [0], [0], [1], [0, 0, 1, 1], [], []>} : vector<8x8xbf16>, vector<8x32xbf16>, vector<8x32xf32> -> vector<8x32xf32>
    %915 = arith.addf %909, %914 : vector<8x32xf32>
    %916 = arith.addf %828, %915 : vector<8x32xf32>
    %c43 = arith.constant 43 : index
    %c0_213 = arith.constant 0 : index
    %917 = vector.load %arg5[%c43, %c0_213] : memref<56x128xbf16, #tpu.memory_space<vmem>>, vector<1x32xbf16>
    %918 = arith.extf %917 : vector<1x32xbf16> to vector<1x32xf32>
    %c44 = arith.constant 44 : index
    %c0_214 = arith.constant 0 : index
    %919 = vector.load %arg5[%c44, %c0_214] : memref<56x128xbf16, #tpu.memory_space<vmem>>, vector<1x32xbf16>
    %920 = arith.extf %919 : vector<1x32xbf16> to vector<1x32xf32>
    %cst_215 = arith.constant dense<0.000000e+00> : vector<8xf32>
    %921 = vector.multi_reduction <add>, %916, %cst_215 [1] : vector<8x32xf32> to vector<8xf32>
    %922 = vector.shape_cast %921 : vector<8xf32> to vector<8x1xf32>
    %cst_216 = arith.constant 3.200000e+01 : f32
    %923 = vector.broadcast %cst_216 : f32 to vector<8x1xf32>
    %924 = arith.divf %922, %923 : vector<8x1xf32>
    %925 = vector.broadcast %924 : vector<8x1xf32> to vector<8x32xf32>
    %926 = arith.subf %916, %925 : vector<8x32xf32>
    %927 = arith.mulf %926, %926 : vector<8x32xf32>
    %cst_217 = arith.constant dense<0.000000e+00> : vector<8xf32>
    %928 = vector.multi_reduction <add>, %927, %cst_217 [1] : vector<8x32xf32> to vector<8xf32>
    %929 = vector.shape_cast %928 : vector<8xf32> to vector<8x1xf32>
    %cst_218 = arith.constant 3.200000e+01 : f32
    %930 = vector.broadcast %cst_218 : f32 to vector<8x1xf32>
    %931 = arith.divf %929, %930 : vector<8x1xf32>
    %932 = vector.broadcast %924 : vector<8x1xf32> to vector<8x32xf32>
    %933 = arith.subf %916, %932 : vector<8x32xf32>
    %cst_219 = arith.constant 9.99999996E-13 : f32
    %934 = vector.broadcast %cst_219 : f32 to vector<8x1xf32>
    %935 = arith.addf %931, %934 : vector<8x1xf32>
    %936 = math.rsqrt %935 : vector<8x1xf32>
    %937 = vector.broadcast %936 : vector<8x1xf32> to vector<8x32xf32>
    %938 = arith.mulf %933, %937 : vector<8x32xf32>
    %939 = vector.broadcast %918 : vector<1x32xf32> to vector<8x32xf32>
    %940 = arith.mulf %938, %939 : vector<8x32xf32>
    %941 = vector.broadcast %920 : vector<1x32xf32> to vector<8x32xf32>
    %942 = arith.addf %940, %941 : vector<8x32xf32>
    %c288 = arith.constant 288 : index
    %c0_220 = arith.constant 0 : index
    %943 = vector.load %arg4[%c288, %c0_220] : memref<320x128xbf16, #tpu.memory_space<vmem>>, vector<32x64xbf16>
    %c45 = arith.constant 45 : index
    %c0_221 = arith.constant 0 : index
    %944 = vector.load %arg5[%c45, %c0_221] : memref<56x128xbf16, #tpu.memory_space<vmem>>, vector<1x64xbf16>
    %945 = arith.extf %944 : vector<1x64xbf16> to vector<1x64xf32>
    %946 = arith.truncf %942 : vector<8x32xf32> to vector<8x32xbf16>
    %cst_222 = arith.constant dense<0.000000e+00> : vector<8x64xf32>
    %947 = tpu.matmul %946, %943, %cst_222 {dimension_numbers = #tpu.dot_dimension_numbers<[1], [0], [0], [1], [0, 0, 1, 1], [], []>} : vector<8x32xbf16>, vector<32x64xbf16>, vector<8x64xf32> -> vector<8x64xf32>
    %948 = vector.broadcast %945 : vector<1x64xf32> to vector<8x64xf32>
    %949 = arith.addf %947, %948 : vector<8x64xf32>
    %950 = arith.mulf %949, %949 : vector<8x64xf32>
    %951 = arith.mulf %949, %950 : vector<8x64xf32>
    %cst_223 = arith.constant 4.471500e-02 : f32
    %952 = vector.broadcast %cst_223 : f32 to vector<8x64xf32>
    %953 = arith.mulf %952, %951 : vector<8x64xf32>
    %954 = arith.addf %949, %953 : vector<8x64xf32>
    %cst_224 = arith.constant 0.797884583 : f32
    %955 = vector.broadcast %cst_224 : f32 to vector<8x64xf32>
    %956 = arith.mulf %955, %954 : vector<8x64xf32>
    %957 = math.tanh %956 : vector<8x64xf32>
    %cst_225 = arith.constant 1.000000e+00 : f32
    %958 = vector.broadcast %cst_225 : f32 to vector<8x64xf32>
    %959 = arith.addf %958, %957 : vector<8x64xf32>
    %cst_226 = arith.constant 5.000000e-01 : f32
    %960 = vector.broadcast %cst_226 : f32 to vector<8x64xf32>
    %961 = arith.mulf %960, %959 : vector<8x64xf32>
    %962 = arith.mulf %949, %961 : vector<8x64xf32>
    %c848 = arith.constant 848 : index
    %c0_227 = arith.constant 0 : index
    %963 = vector.load %arg3[%c848, %c0_227] : memref<944x32xbf16, #tpu.memory_space<vmem>>, vector<64x32xbf16>
    %c46 = arith.constant 46 : index
    %c0_228 = arith.constant 0 : index
    %964 = vector.load %arg5[%c46, %c0_228] : memref<56x128xbf16, #tpu.memory_space<vmem>>, vector<1x32xbf16>
    %965 = arith.extf %964 : vector<1x32xbf16> to vector<1x32xf32>
    %966 = arith.truncf %962 : vector<8x64xf32> to vector<8x64xbf16>
    %cst_229 = arith.constant dense<0.000000e+00> : vector<8x32xf32>
    %967 = tpu.matmul %966, %963, %cst_229 {dimension_numbers = #tpu.dot_dimension_numbers<[1], [0], [0], [1], [0, 0, 1, 1], [], []>} : vector<8x64xbf16>, vector<64x32xbf16>, vector<8x32xf32> -> vector<8x32xf32>
    %968 = vector.broadcast %965 : vector<1x32xf32> to vector<8x32xf32>
    %969 = arith.addf %967, %968 : vector<8x32xf32>
    %970 = arith.addf %942, %969 : vector<8x32xf32>
    %c47 = arith.constant 47 : index
    %c0_230 = arith.constant 0 : index
    %971 = vector.load %arg5[%c47, %c0_230] : memref<56x128xbf16, #tpu.memory_space<vmem>>, vector<1x32xbf16>
    %972 = arith.extf %971 : vector<1x32xbf16> to vector<1x32xf32>
    %c48 = arith.constant 48 : index
    %c0_231 = arith.constant 0 : index
    %973 = vector.load %arg5[%c48, %c0_231] : memref<56x128xbf16, #tpu.memory_space<vmem>>, vector<1x32xbf16>
    %974 = arith.extf %973 : vector<1x32xbf16> to vector<1x32xf32>
    %cst_232 = arith.constant dense<0.000000e+00> : vector<8xf32>
    %975 = vector.multi_reduction <add>, %970, %cst_232 [1] : vector<8x32xf32> to vector<8xf32>
    %976 = vector.shape_cast %975 : vector<8xf32> to vector<8x1xf32>
    %cst_233 = arith.constant 3.200000e+01 : f32
    %977 = vector.broadcast %cst_233 : f32 to vector<8x1xf32>
    %978 = arith.divf %976, %977 : vector<8x1xf32>
    %979 = vector.broadcast %978 : vector<8x1xf32> to vector<8x32xf32>
    %980 = arith.subf %970, %979 : vector<8x32xf32>
    %981 = arith.mulf %980, %980 : vector<8x32xf32>
    %cst_234 = arith.constant dense<0.000000e+00> : vector<8xf32>
    %982 = vector.multi_reduction <add>, %981, %cst_234 [1] : vector<8x32xf32> to vector<8xf32>
    %983 = vector.shape_cast %982 : vector<8xf32> to vector<8x1xf32>
    %cst_235 = arith.constant 3.200000e+01 : f32
    %984 = vector.broadcast %cst_235 : f32 to vector<8x1xf32>
    %985 = arith.divf %983, %984 : vector<8x1xf32>
    %986 = vector.broadcast %978 : vector<8x1xf32> to vector<8x32xf32>
    %987 = arith.subf %970, %986 : vector<8x32xf32>
    %cst_236 = arith.constant 9.99999996E-13 : f32
    %988 = vector.broadcast %cst_236 : f32 to vector<8x1xf32>
    %989 = arith.addf %985, %988 : vector<8x1xf32>
    %990 = math.rsqrt %989 : vector<8x1xf32>
    %991 = vector.broadcast %990 : vector<8x1xf32> to vector<8x32xf32>
    %992 = arith.mulf %987, %991 : vector<8x32xf32>
    %993 = vector.broadcast %972 : vector<1x32xf32> to vector<8x32xf32>
    %994 = arith.mulf %992, %993 : vector<8x32xf32>
    %995 = vector.broadcast %974 : vector<1x32xf32> to vector<8x32xf32>
    %996 = arith.addf %994, %995 : vector<8x32xf32>
    %c912 = arith.constant 912 : index
    %c0_237 = arith.constant 0 : index
    %997 = vector.load %arg3[%c912, %c0_237] : memref<944x32xbf16, #tpu.memory_space<vmem>>, vector<32x32xbf16>
    %c49 = arith.constant 49 : index
    %c0_238 = arith.constant 0 : index
    %998 = vector.load %arg5[%c49, %c0_238] : memref<56x128xbf16, #tpu.memory_space<vmem>>, vector<1x32xbf16>
    %999 = arith.extf %998 : vector<1x32xbf16> to vector<1x32xf32>
    %1000 = arith.truncf %996 : vector<8x32xf32> to vector<8x32xbf16>
    %cst_239 = arith.constant dense<0.000000e+00> : vector<8x32xf32>
    %1001 = tpu.matmul %1000, %997, %cst_239 {dimension_numbers = #tpu.dot_dimension_numbers<[1], [0], [0], [1], [0, 0, 1, 1], [], []>} : vector<8x32xbf16>, vector<32x32xbf16>, vector<8x32xf32> -> vector<8x32xf32>
    %1002 = vector.broadcast %999 : vector<1x32xf32> to vector<8x32xf32>
    %1003 = arith.addf %1001, %1002 : vector<8x32xf32>
    %1004 = arith.mulf %1003, %1003 : vector<8x32xf32>
    %1005 = arith.mulf %1003, %1004 : vector<8x32xf32>
    %cst_240 = arith.constant 4.471500e-02 : f32
    %1006 = vector.broadcast %cst_240 : f32 to vector<8x32xf32>
    %1007 = arith.mulf %1006, %1005 : vector<8x32xf32>
    %1008 = arith.addf %1003, %1007 : vector<8x32xf32>
    %cst_241 = arith.constant 0.797884583 : f32
    %1009 = vector.broadcast %cst_241 : f32 to vector<8x32xf32>
    %1010 = arith.mulf %1009, %1008 : vector<8x32xf32>
    %1011 = math.tanh %1010 : vector<8x32xf32>
    %cst_242 = arith.constant 1.000000e+00 : f32
    %1012 = vector.broadcast %cst_242 : f32 to vector<8x32xf32>
    %1013 = arith.addf %1012, %1011 : vector<8x32xf32>
    %cst_243 = arith.constant 5.000000e-01 : f32
    %1014 = vector.broadcast %cst_243 : f32 to vector<8x32xf32>
    %1015 = arith.mulf %1014, %1013 : vector<8x32xf32>
    %1016 = arith.mulf %1003, %1015 : vector<8x32xf32>
    %c50 = arith.constant 50 : index
    %c0_244 = arith.constant 0 : index
    %1017 = vector.load %arg5[%c50, %c0_244] : memref<56x128xbf16, #tpu.memory_space<vmem>>, vector<1x32xbf16>
    %1018 = arith.extf %1017 : vector<1x32xbf16> to vector<1x32xf32>
    %c51 = arith.constant 51 : index
    %c0_245 = arith.constant 0 : index
    %1019 = vector.load %arg5[%c51, %c0_245] : memref<56x128xbf16, #tpu.memory_space<vmem>>, vector<1x32xbf16>
    %1020 = arith.extf %1019 : vector<1x32xbf16> to vector<1x32xf32>
    %cst_246 = arith.constant dense<0.000000e+00> : vector<8xf32>
    %1021 = vector.multi_reduction <add>, %1016, %cst_246 [1] : vector<8x32xf32> to vector<8xf32>
    %1022 = vector.shape_cast %1021 : vector<8xf32> to vector<8x1xf32>
    %cst_247 = arith.constant 3.200000e+01 : f32
    %1023 = vector.broadcast %cst_247 : f32 to vector<8x1xf32>
    %1024 = arith.divf %1022, %1023 : vector<8x1xf32>
    %1025 = vector.broadcast %1024 : vector<8x1xf32> to vector<8x32xf32>
    %1026 = arith.subf %1016, %1025 : vector<8x32xf32>
    %1027 = arith.mulf %1026, %1026 : vector<8x32xf32>
    %cst_248 = arith.constant dense<0.000000e+00> : vector<8xf32>
    %1028 = vector.multi_reduction <add>, %1027, %cst_248 [1] : vector<8x32xf32> to vector<8xf32>
    %1029 = vector.shape_cast %1028 : vector<8xf32> to vector<8x1xf32>
    %cst_249 = arith.constant 3.200000e+01 : f32
    %1030 = vector.broadcast %cst_249 : f32 to vector<8x1xf32>
    %1031 = arith.divf %1029, %1030 : vector<8x1xf32>
    %1032 = vector.broadcast %1024 : vector<8x1xf32> to vector<8x32xf32>
    %1033 = arith.subf %1016, %1032 : vector<8x32xf32>
    %cst_250 = arith.constant 9.99999996E-13 : f32
    %1034 = vector.broadcast %cst_250 : f32 to vector<8x1xf32>
    %1035 = arith.addf %1031, %1034 : vector<8x1xf32>
    %1036 = math.rsqrt %1035 : vector<8x1xf32>
    %1037 = vector.broadcast %1036 : vector<8x1xf32> to vector<8x32xf32>
    %1038 = arith.mulf %1033, %1037 : vector<8x32xf32>
    %1039 = vector.broadcast %1018 : vector<1x32xf32> to vector<8x32xf32>
    %1040 = arith.mulf %1038, %1039 : vector<8x32xf32>
    %1041 = vector.broadcast %1020 : vector<1x32xf32> to vector<8x32xf32>
    %1042 = arith.addf %1040, %1041 : vector<8x32xf32>
    %1043 = arith.truncf %1042 : vector<8x32xf32> to vector<8x32xbf16>
    %cst_251 = arith.constant dense<0.000000e+00> : vector<8x64xf32>
    %1044 = tpu.matmul %1043, %393, %cst_251 {dimension_numbers = #tpu.dot_dimension_numbers<[1], [1], [0], [0], [0, 0, 1, 0], [], []>} : vector<8x32xbf16>, vector<64x32xbf16>, vector<8x64xf32> -> vector<8x64xf32>
    %c52 = arith.constant 52 : index
    %c0_252 = arith.constant 0 : index
    %1045 = vector.load %arg5[%c52, %c0_252] : memref<56x128xbf16, #tpu.memory_space<vmem>>, vector<1x64xbf16>
    %1046 = arith.extf %1045 : vector<1x64xbf16> to vector<1x64xf32>
    %1047 = vector.broadcast %1046 : vector<1x64xf32> to vector<8x64xf32>
    %1048 = arith.addf %1044, %1047 : vector<8x64xf32>
    %cst_253 = arith.constant dense<0xFF800000> : vector<8xf32>
    %1049 = vector.multi_reduction <maximumf>, %1048, %cst_253 [1] : vector<8x64xf32> to vector<8xf32>
    %1050 = vector.shape_cast %1049 : vector<8xf32> to vector<8x1xf32>
    %1051 = vector.broadcast %1050 : vector<8x1xf32> to vector<8x64xf32>
    %1052 = arith.subf %1048, %1051 : vector<8x64xf32>
    %1053 = math.exp %1052 : vector<8x64xf32>
    %cst_254 = arith.constant dense<0.000000e+00> : vector<8xf32>
    %1054 = vector.multi_reduction <add>, %1053, %cst_254 [1] : vector<8x64xf32> to vector<8xf32>
    %1055 = vector.shape_cast %1054 : vector<8xf32> to vector<8x1xf32>
    %1056 = math.log %1055 : vector<8x1xf32>
    %1057 = arith.addf %1056, %1050 : vector<8x1xf32>
    %1058 = vector.broadcast %389 : vector<8x1xi32> to vector<8x64xi32>
    %1059 = arith.cmpi eq, %392, %1058 : vector<8x64xi32>
    %1060 = arith.extui %1059 : vector<8x64xi1> to vector<8x64xi32>
    %1061 = arith.sitofp %1060 : vector<8x64xi32> to vector<8x64xf32>
    %1062 = arith.mulf %1061, %1048 : vector<8x64xf32>
    %cst_255 = arith.constant dense<0.000000e+00> : vector<8xf32>
    %1063 = vector.multi_reduction <add>, %1062, %cst_255 [1] : vector<8x64xf32> to vector<8xf32>
    %1064 = vector.shape_cast %1063 : vector<8xf32> to vector<8x1xf32>
    %cst_256 = arith.constant dense<0.000000e+00> : vector<8xf32>
    %1065 = vector.multi_reduction <add>, %1048, %cst_256 [1] : vector<8x64xf32> to vector<8xf32>
    %1066 = vector.shape_cast %1065 : vector<8xf32> to vector<8x1xf32>
    %cst_257 = arith.constant 6.400000e+01 : f32
    %1067 = vector.broadcast %cst_257 : f32 to vector<8x1xf32>
    %1068 = arith.divf %1066, %1067 : vector<8x1xf32>
    %cst_258 = arith.constant 0.899999976 : f32
    %1069 = vector.broadcast %cst_258 : f32 to vector<8x1xf32>
    %1070 = arith.mulf %1069, %1064 : vector<8x1xf32>
    %1071 = arith.subf %1057, %1070 : vector<8x1xf32>
    %cst_259 = arith.constant 1.000000e-01 : f32
    %1072 = vector.broadcast %cst_259 : f32 to vector<8x1xf32>
    %1073 = arith.mulf %1072, %1068 : vector<8x1xf32>
    %1074 = arith.subf %1071, %1073 : vector<8x1xf32>
    %1075 = arith.mulf %1074, %390 : vector<8x1xf32>
    %cst_260 = arith.constant dense<0.000000e+00> : vector<1xf32>
    %1076 = vector.multi_reduction <add>, %1075, %cst_260 [0] : vector<8x1xf32> to vector<1xf32>
    %1077 = vector.shape_cast %1076 : vector<1xf32> to vector<1x1xf32>
    %cst_261 = arith.constant dense<0.000000e+00> : vector<1xf32>
    %1078 = vector.multi_reduction <add>, %390, %cst_261 [0] : vector<8x1xf32> to vector<1xf32>
    %1079 = vector.shape_cast %1078 : vector<1xf32> to vector<1x1xf32>
    %1080 = tpu.iota {dimensions = array<i32: 0>} : vector<8x128xi32>
    %1081 = tpu.iota {dimensions = array<i32: 1>} : vector<8x128xi32>
    %c0_i32_262 = arith.constant 0 : i32
    %1082 = vector.broadcast %c0_i32_262 : i32 to vector<8x128xi32>
    %1083 = arith.cmpi eq, %1080, %1082 : vector<8x128xi32>
    %c0_i32_263 = arith.constant 0 : i32
    %1084 = vector.broadcast %c0_i32_263 : i32 to vector<8x128xi32>
    %1085 = arith.cmpi eq, %1081, %1084 : vector<8x128xi32>
    %1086 = arith.andi %1083, %1085 : vector<8x128xi1>
    %cst_264 = arith.constant 0.000000e+00 : f32
    %1087 = vector.shape_cast %1077 : vector<1x1xf32> to vector<1x1xf32>
    %1088 = vector.broadcast %1087 : vector<1x1xf32> to vector<8x128xf32>
    %1089 = vector.broadcast %cst_264 : f32 to vector<8x128xf32>
    %1090 = arith.select %1086, %1088, %1089 : vector<8x128xi1>, vector<8x128xf32>
    %c0_i32_265 = arith.constant 0 : i32
    %1091 = vector.broadcast %c0_i32_265 : i32 to vector<8x128xi32>
    %1092 = arith.cmpi eq, %1080, %1091 : vector<8x128xi32>
    %c1_i32 = arith.constant 1 : i32
    %1093 = vector.broadcast %c1_i32 : i32 to vector<8x128xi32>
    %1094 = arith.cmpi eq, %1081, %1093 : vector<8x128xi32>
    %1095 = arith.andi %1092, %1094 : vector<8x128xi1>
    %cst_266 = arith.constant 0.000000e+00 : f32
    %1096 = vector.shape_cast %1079 : vector<1x1xf32> to vector<1x1xf32>
    %1097 = vector.broadcast %1096 : vector<1x1xf32> to vector<8x128xf32>
    %1098 = vector.broadcast %cst_266 : f32 to vector<8x128xf32>
    %1099 = arith.select %1095, %1097, %1098 : vector<8x128xi1>, vector<8x128xf32>
    %1100 = arith.addf %1090, %1099 : vector<8x128xf32>
    %1101 = vector.shape_cast %1100 : vector<8x128xf32> to vector<1x8x128xf32>
    %c0_267 = arith.constant 0 : index
    %c0_268 = arith.constant 0 : index
    %c0_269 = arith.constant 0 : index
    %1102 = vector.load %arg6[%c0_267, %c0_268, %c0_269] : memref<1x8x128xf32, #tpu.memory_space<vmem>>, vector<1x8x128xf32>
    tpu.vector_store %arg6[%c0_267, %c0_268, %c0_269], %1101 {strides = array<i32>} : memref<1x8x128xf32, #tpu.memory_space<vmem>>, vector<1x8x128xf32>,
    return
  }
  func.func @transform_0(%arg0: i32) -> (i32, i32, i32) {
    %c0_i32 = arith.constant 0 : i32
    %c0_i32_0 = arith.constant 0 : i32
    %c0_i32_1 = arith.constant 0 : i32
    return %arg0, %c0_i32, %c0_i32_0 : i32, i32, i32
  }
  func.func @transform_1(%arg0: i32) -> (i32, i32, i32) {
    %c0_i32 = arith.constant 0 : i32
    %c0_i32_0 = arith.constant 0 : i32
    %c0_i32_1 = arith.constant 0 : i32
    return %arg0, %c0_i32, %c0_i32_0 : i32, i32, i32
  }
  func.func @transform_2(%arg0: i32) -> (i32, i32) {
    %c0_i32 = arith.constant 0 : i32
    %c0_i32_0 = arith.constant 0 : i32
    %c0_i32_1 = arith.constant 0 : i32
    return %c0_i32, %c0_i32_0 : i32, i32
  }
  func.func @transform_3(%arg0: i32) -> (i32, i32) {
    %c0_i32 = arith.constant 0 : i32
    %c0_i32_0 = arith.constant 0 : i32
    %c0_i32_1 = arith.constant 0 : i32
    return %c0_i32, %c0_i32_0 : i32, i32
  }
  func.func @transform_4(%arg0: i32) -> (i32, i32) {
    %c0_i32 = arith.constant 0 : i32
    %c0_i32_0 = arith.constant 0 : i32
    %c0_i32_1 = arith.constant 0 : i32
    return %c0_i32, %c0_i32_0 : i32, i32
  }
  func.func @transform_5(%arg0: i32) -> (i32, i32, i32) {
    %c0_i32 = arith.constant 0 : i32
    %c0_i32_0 = arith.constant 0 : i32
    %c0_i32_1 = arith.constant 0 : i32
    return %arg0, %c0_i32, %c0_i32_0 : i32, i32, i32
  }
}

</mosaic_0001>

<bundles_post_ra>
// kernel: blip_decoder_forward.1
= control target key start
LH: loop header
LB: loop body
LE: loop exit
PB: predicated region body
PF: predicated region fallthrough
CT: control target
= control target key end

     0   :  { %s8797_s18 = smov 0   ;;  %s10034_s0 = inlined_call_operand.vmem [shape: f32[2,8,192], index: 0, kind: input, shape index: {}]   ;;  %s10035_s1 = inlined_call_operand.vmem [shape: f32[2,16,128], index: 1, kind: input, shape index: {}]   ;;  %s10036_s2 = inlined_call_operand.vmem [shape: bf16[944,32], index: 2, kind: input, shape index: {}]   ;;  %s10037_s3 = inlined_call_operand.vmem [shape: bf16[320,128], index: 3, kind: input, shape index: {}]   ;;  %s10038_s4 = inlined_call_operand.vmem [shape: bf16[56,128], index: 4, kind: input, shape index: {}]   ;;  %s10039_s5 = inlined_call_operand.vmem [shape: f32[2,8,128], index: 5, kind: output, shape index: {}]  }
   0x1 LB: > { %s7523_s19 = sadd.s32 4294967295, %s8755_s18   ;;  %p7527_p0 = scmp.ge.s32.totalorder %s8755_s18, 1  ;;  %s8755_s18 = sphi %s8797_s18, %s15_s18  }
   0x2   : > { %p197_p1 = scmp.lt.s32.totalorder %s8755_s18, 3 }
   0x4   : > { %p198_p2 = pnand %p7527_p0, %p197_p1 }
   0x5   : > { %p229_p3 = scmp.lt.s32.totalorder (!%p198_p2), %s7523_s19, 1  ;;  %s8760_s13 = smov (!%p198_p2), 104  }
   0x6   : > { %201 = sbr.rel (%p198_p2) target bundleno = 13580 (0x350c), region = 40  ;;  %s8761_s14 = smov (!%p198_p2), 120  }
   0x7   : > { %s8762_s15 = smov (!%p198_p2), 112   ;;  %s8763_s16 = smov (!%p198_p2), 96  }
   0x8   : > { %s8764_s17 = smov (!%p198_p2), 64  }
   0xb   : > { %v8542_v0 = vld [vmem:[%s10036_s2 + $0x38] sm:$0xff]   ;;  %v8757_v1 = vmov 0   ;;  %v8543_v2 = vld [vmem:[%s10036_s2 + $0x30] sm:$0xff]   ;;  %s10041_s19 = smov (!%p229_p3, %s7523_s19), 1  ;;  %v8544_v3 = vld [vmem:[%s10036_s2 + $0x28] sm:$0xff]   ;;  %v8758_v4 = vmov 0.0   ;;  %v274_v18 = vlaneseq }
   0xc   : > { %354 = vmatprep.subr.bf16.mxu0 %v8757_v1  ;;  %8538 = vset.pattern.permute.xlu0 %v8757_v1  ;;  %s7719_s26 = sshll.u32 %s10041_s19, 4  ;;  %v8545_v5 = vld [vmem:[%s10036_s2 + $0x20] sm:$0xff]   ;;  %vm350_vm0 = vcmask 523264   ;;  %v8546_v8 = vld [vmem:[%s10036_s2 + $0x18] sm:$0xff]   ;;  %v8547_v9 = vld [vmem:[%s10036_s2 + $0x10] sm:$0xff]   ;;  %vm413_vm2 = vcmask 261120  }
   0xd   : > { %355 = vmatpush1.bf16.msra.mxu0 %v8542_v0  ;;  %s8822_s29 = scalar_lea.vmem %s10034_s0, %s7719_s26  ;;  %7942 = vmatprep.subr.bf16.mxu1 %v8758_v4  ;;  %v8548_v10 = vld [vmem:[%s10036_s2 + $0x8] sm:$0xff]   ;;  %v8549_v11 = vld [vmem:[%s10036_s2] sm:$0xff]   ;;  %v8550_v12 = vld [vmem:[%s10036_s2 + $0x58] sm:$0xff]   ;;  %v8857_v19 = vshrl.u32 %v274_v18, 7  ;;  %vm8759_vm3 = vmmov 0   ;;  %vm517_vm4 = vcmask 64512   ;;  %s9238_s23 = scalar_lea.vmem %s10035_s1, %s7719_s26 }
   0xe   : > { %356 = vmatprep.subr.bf16.mxu0 %v8757_v1  ;;  %v245_v6 = vld [vmem:[%s8822_s29 + $0x8] sm:$0xff]  ;;  %v8551_v13 = vld [vmem:[%s10036_s2 + $0x50] sm:$0xff]   ;;  %v8553_v15 = vld [vmem:[%s10036_s2 + $0x40] sm:$0xff]   ;;  %7946 = vmatprep.mubr.msk.bf16.mxu1 %vm8759_vm3, %v8758_v4  ;;  %vm1180_vm6 = vcmask 1043456   ;;  %vm7425_vm10 = vcmask 23568  }
   0xf   : > { %v273_v7 = vpack.c.bf16 %v245_v6, %v245_v6  ;;  %v8552_v14 = vld [vmem:[%s10036_s2 + $0x48] sm:$0xff]   ;;  %v244_v16 = vld [vmem:[%s8822_s29] sm:$0xff]  ;;  %v8863_v21 = vsub.s32 0, %v8857_v19  ;;  %v8866_v23 = vsub.s32 1, %v8857_v19  ;;  %vm396_vm1 = vcmp.eq.s32.totalorder %v8857_v19, 0 }
  0x10   : > { %v272_v17 = vpack.c.bf16 %v244_v16, %v244_v16  ;;  %v270_v20 = vld [vmem:[%s10038_s4] sm:$0x1]  ;;  %v8554_v41 = vld [vmem:[%s10037_s3 + $0x8] sm:$0xff]   ;;  %v411_v46 = vld [vmem:[%s10038_s4] sm:$0x2]  ;;  %v8898_v48 = vsub.s32 2, %v8857_v19 }
  0x11   : > { %357 = vmatpush1.bf16.msra.mxu0 %v8543_v2  ;;  %7545 = vmatprep.mubr.msk.bf16.mxu0 %vm350_vm0, %v273_v7  ;;  %v271_v22 = vunpack.c.l.bf16 %v270_v20  ;;  %v402_v25 = vld [vmem:[%s10036_s2 + $0x60] sm:$0xf]  ;;  %v412_v47 = vunpack.c.l.bf16 %v411_v46  ;;  %v8901_v49 = vsub.s32 3, %v8857_v19  ;;  %v8915_v59 = vsub.s32 4, %v8857_v19 }
  0x12   : > { %358 = vmatprep.subr.bf16.mxu0 %v8757_v1  ;;  %v403_v28 = vunpack.c.l.bf16 %v402_v25  ;;  %7943 = vmatpush3.bf16.msra.mxu1 %v8554_v41  ;;  %v8555_v42 = vld [vmem:[%s10037_s3] sm:$0xff]  }
  0x13   : > { %v277_v24 = vrot.slane %v271_v22, %v8863_v21  ;;  %v400_v26 = vrot.slane %v271_v22, %v8866_v23  ;;  %7944 = vmatprep.subr.bf16.mxu1 %v8758_v4  ;;  %v431_v50 = vrot.slane %v412_v47, %v8898_v48  ;;  %v436_v53 = vrot.slane %v412_v47, %v8901_v49  ;;  %v8911_v57 = vld [vmem:[%s10038_s4] sm:$0x4] }
  0x14   : > { %v443_v58 = vunpack.c.l.bf16 %v8911_v57 }
  0x15   : > { %359 = vmatpush1.bf16.msra.mxu0 %v8544_v3 }
  0x16   : > { %360 = vmatprep.subr.bf16.mxu0 %v8757_v1  ;;  %7945 = vmatpush3.bf16.msra.mxu1 %v8555_v42  ;;  %v448_v60 = vrot.slane %v443_v58, %v8915_v59 }
  0x17   : > { %7950 = vmatprep.subr.mxu1 %v8758_v4 }
  0x19   : > { %361 = vmatpush1.bf16.msra.mxu0 %v8545_v5 }
  0x1a   : > { %362 = vmatprep.subr.bf16.mxu0 %v8757_v1 }
  0x1d   : > { %363 = vmatpush1.bf16.msra.mxu0 %v8546_v8 }
  0x1e   : > { %364 = vmatprep.subr.bf16.mxu0 %v8757_v1 }
  0x21   : > { %365 = vmatpush1.bf16.msra.mxu0 %v8547_v9 }
  0x22   : > { %366 = vmatprep.subr.bf16.mxu0 %v8757_v1 }
  0x25   : > { %367 = vmatpush1.bf16.msra.mxu0 %v8548_v10 }
  0x26   : > { %368 = vmatprep.subr.bf16.mxu0 %v8757_v1 }
  0x29   : > { %369 = vmatpush1.bf16.msra.mxu0 %v8549_v11  ;;  %v8950_v11 = vand.u32 127, %v274_v18 }
  0x2a   : > { %378 = vmatprep.subr.bf16.mxu0 %v8757_v1 }
  0x2b   : > { %vm407_vm5 = vcmp.ge.s32.totalorder %v8950_v11, 5  ;;  %vm2897_vm8 = vcmp.ge.s32.totalorder %v8857_v19, %v8950_v11  ;;  %vm7448_vm11 = vcmp.eq.s32.totalorder %v8950_v11, 1  ;;  %vm7440_vm12 = vcmp.eq.s32.totalorder %v8950_v11, 0 }
  0x2c   : > { %vm7449_vm13 = vmand %vm396_vm1, %vm7448_vm11 }
  0x2d   : > { %379 = vmatpush2.bf16.msra.mxu0 %v8550_v12  ;;  %v7546_v12 = vsel %vm407_vm5, 1.0, %v8758_v4  ;;  %vm7441_vm14 = vmand %vm396_vm1, %vm7440_vm12 }
  0x2e   : > { %380 = vmatprep.subr.bf16.mxu0 %v8757_v1 }
  0x31   : > { %381 = vmatpush2.bf16.msra.mxu0 %v8551_v13  ;;  %v8954_v13 = vmul.f32 -1e+09, %v7546_v12 }
  0x32   : > { %382 = vmatprep.subr.bf16.mxu0 %v8757_v1 }
  0x35   : > { %383 = vmatpush2.bf16.msra.mxu0 %v8552_v14 }
  0x36   : > { %384 = vmatprep.subr.bf16.mxu0 %v8757_v1 }
  0x39   : > { %385 = vmatpush2.bf16.msra.mxu0 %v8553_v15 }
  0x3a   : > { %7996 = vmatprep.subr.bf16.mxu0 %v8758_v4 }
  0x3c   : > { %387 = vmatmul.mubr.bf16.vlgmr.msra.gmra.mxu0 %v272_v17 }
  0x3d   : > { %7998 = vmatprep.mubr.msk.bf16.mxu0 %vm8759_vm3, %v8758_v4 }
  0xfc   : > { %v388_v27 = vpop.f32.mrf.mxu0 }
  0xfd   : > { %v389_v29 = vadd.f32 %v388_v27, %v277_v24 }
  0xfe   : > { %v390_v30 = vpop.f32.mrf.mxu0 }
  0xff   : > { %v401_v31 = vsel %vm396_vm1, %v400_v26, %v389_v29 }
 0x100   : > { %v391_v32 = vpop.f32.mrf.mxu0  ;;  %v8876_v33 = vadd.f32 %v403_v28, %v401_v31 }
 0x102   : > { %v392_v34 = vpop.f32.mrf.mxu0  ;;  %v414_v35 = vsel %vm413_vm2, %v8876_v33, 0.0 }
 0x103   : > { %415 = vadd.xlane.f32.xlu0 %v414_v35 }
 0x18c   : > { %v416_v36 = vpop.xlane.xlu0 %415 }
 0x18d   : > { %v418_v37 = vmul.f32 0.03125, %v416_v36 }
 0x18f   : > { %v419_v38 = vsub.f32 %v8876_v33, %v418_v37 }
 0x191   : > { %v420_v39 = vmul.f32 %v419_v38, %v419_v38 }
 0x193   : > { %v421_v40 = vsel %vm413_vm2, %v420_v39, 0.0 }
 0x194   : > { %422 = vadd.xlane.f32.xlu0 %v421_v40 }
 0x21d   : > { %v423_v43 = vpop.xlane.xlu0 %422 }
 0x21e   : > { %v424_v44 = vmul.f32 0.03125, %v423_v43 }
 0x220   : > { %v425_v45 = vadd.f32 1e-06, %v424_v44 }
 0x222   : > { %8608 = vrsqrt.f32 %v425_v45 }
 0x22f   : > { %v8609_v51 = vpop.eup %8608 }
 0x230   : > { %v427_v52 = vmul.f32 %v8609_v51, %v419_v38 }
 0x232   : > { %v432_v54 = vmul.f32 %v431_v50, %v427_v52 }
 0x234   : > { %v437_v55 = vadd.f32 %v436_v53, %v432_v54 }
 0x236   : > { %v444_v56 = vpack.c.bf16 %v437_v55, %v437_v55 }
 0x238   : > { %7947 = vmatmul.mubr.msk.bf16.vlgmr.msra.gmra.mxu1 %vm413_vm2, %v444_v56 }
 0x239   : > { %7952 = vmatprep.mubr.msk.f32.mxu1 %vm8759_vm3, %v8758_v4 }
 0x2f8   : > { %v498_v61 = vpop.f32.mrf.mxu1 }
 0x2f9   : > { %v499_v62 = vadd.f32 %v498_v61, %v448_v60 }
 0x2fa   : > { %v7948_v63 = vpop.f32.mrf.mxu1 }
 0x2fb   : > { %513 = vrot.lane.b32.xlu0 %v499_v62, %s8760_s13  ;;  %509 = vrot.lane.b32.xlu1 %v499_v62, %s8761_s14 }
 0x2fc   : > { %v501_v0 = vpop.f32.mrf.mxu1 }
 0x2fe   : > { %v7949_v1 = vpop.f32.mrf.mxu1 }
 0x2ff   : > { %511 = vrot.lane.b32.xlu1 %v499_v62, %s8762_s15 }
 0x303   : > { %515 = vrot.lane.b32.xlu1 %v499_v62, %s8763_s16 }
 0x36d   : > { %v510_v2 = vpop.permute.xlu1 %509  ;;  %v514_v5 = vpop.permute.xlu0 %513 }
 0x36e   : > { %592 = vrot.lane.b32.xlu1 %v510_v2, %s8763_s16 }
 0x371   : > { %v512_v3 = vpop.permute.xlu1 %511 }
 0x372   : > { %668 = vrot.lane.b32.xlu1 %v512_v3, %s8763_s16 }
 0x375   : > { %v516_v6 = vpop.permute.xlu1 %515 }
 0x376   : > { %744 = vrot.lane.b32.xlu1 %v514_v5, %s8763_s16  ;;  %7951 = vmatpush3.xpose.msk.msra.mxu1 %vm517_vm4, %v516_v6 }
 0x377   : > { %7955 = vmatprep.subr.mxu1 %v8758_v4 }
 0x379   : > { %7953 = vmatmul.mubr.msk.f32.vlgmr.msra.gmra.mxu1 %vm517_vm4, %v499_v62 }
 0x37a   : > { %868 = vrot.lane.b32.xlu1 %v499_v62, %s8764_s17  ;;  %7957 = vmatprep.mubr.msk.f32.mxu1 %vm8759_vm3, %v8758_v4  ;;  %v504_v62 = vld [vmem:[%s10036_s2 + $0x64] sm:$0xf] }
 0x37b   : > { %v1182_v1 = vsel %vm1180_vm6, %v504_v62, 0 }
 0x3e0   : > { %v593_v7 = vpop.permute.xlu1 %592 }
 0x3e1   : > { %7956 = vmatpush3.xpose.msk.msra.mxu1 %vm517_vm4, %v593_v7 }
 0x3e2   : > { %7960 = vmatprep.subr.mxu1 %v8758_v4 }
 0x3e4   : > { %7958 = vmatmul.mubr.msk.f32.vlgmr.msra.gmra.mxu1 %vm517_vm4, %v510_v2  ;;  %v669_v8 = vpop.permute.xlu1 %668 }
 0x3e5   : > { %7961 = vmatpush3.xpose.msk.msra.mxu1 %vm517_vm4, %v669_v8  ;;  %7962 = vmatprep.mubr.msk.f32.mxu1 %vm8759_vm3, %v8758_v4 }
 0x3e6   : > { %7965 = vmatprep.subr.mxu1 %v8758_v4 }
 0x3e8   : > { %7963 = vmatmul.mubr.msk.f32.vlgmr.msra.gmra.mxu1 %vm517_vm4, %v512_v3  ;;  %v745_v9 = vpop.permute.xlu1 %744 }
 0x3e9   : > { %7966 = vmatpush3.xpose.msk.msra.mxu1 %vm517_vm4, %v745_v9  ;;  %7967 = vmatprep.mubr.msk.f32.mxu1 %vm8759_vm3, %v8758_v4 }
 0x3ea   : > { %7970 = vmatprep.subr.mxu1 %v8758_v4 }
 0x3ec   : > { %7968 = vmatmul.mubr.msk.f32.vlgmr.msra.gmra.mxu1 %vm517_vm4, %v514_v5  ;;  %v869_v10 = vpop.permute.xlu1 %868 }
 0x3ed   : > { %7971 = vmatpush3.msra.mxu1 %v869_v10  ;;  %7972 = vmatprep.mubr.msk.f32.mxu1 %vm8759_vm3, %v8758_v4  ;;  %v506_v10 = vld [vmem:[%s10036_s2 + $0x6c] sm:$0xf] }
 0x3ee   : > { %7975 = vmatprep.subr.mxu1 %v8758_v4 }
 0x439   : > { %v588_v14 = vpop.f32.mrf.mxu1 }
 0x43a   : > { %v820_v15 = vmul.f32 0.35355338, %v588_v14 }
 0x43b   : > { %v7954_v16 = vpop.f32.mrf.mxu1 }
 0x43c   : > { %v824_v17 = vadd.f32 %v820_v15, %v8954_v13  ;;  %v1282_v16 = vsel %vm1180_vm6, %v506_v10, 0  ;;  %v8556_v10 = vld [vmem:[%s10037_s3 + $0x18] sm:$0xff]  }
 0x43e   : > { %v828_v20 = vsel %vm517_vm4, %v824_v17, -inf }
 0x43f   : > { %829 = vmax.xlane.f32.xlu1 %v828_v20 }
 0x4a4   : > { %v664_v22 = vpop.f32.mrf.mxu1 }
 0x4a5   : > { %v821_v24 = vmul.f32 0.35355338, %v664_v22 }
 0x4a6   : > { %v7959_v25 = vpop.f32.mrf.mxu1 }
 0x4a7   : > { %v825_v18 = vadd.f32 %v821_v24, %v8954_v13 }
 0x4a8   : > { %v740_v26 = vpop.f32.mrf.mxu1 }
 0x4a9   : > { %v822_v27 = vmul.f32 0.35355338, %v740_v26  ;;  %v831_v28 = vsel %vm517_vm4, %v825_v18, -inf }
 0x4aa   : > { %832 = vmax.xlane.f32.xlu0 %v831_v28  ;;  %v7964_v29 = vpop.f32.mrf.mxu1 }
 0x4ab   : > { %v826_v30 = vadd.f32 %v822_v27, %v8954_v13 }
 0x4ac   : > { %v816_v31 = vpop.f32.mrf.mxu1 }
 0x4ad   : > { %v823_v32 = vmul.f32 0.35355338, %v816_v31  ;;  %v834_v34 = vsel %vm517_vm4, %v826_v30, -inf }
 0x4ae   : > { %835 = vmax.xlane.f32.xlu1 %v834_v34  ;;  %v7969_v35 = vpop.f32.mrf.mxu1 }
 0x4af   : > { %v827_v36 = vadd.f32 %v823_v32, %v8954_v13 }
 0x4b1   : > { %v837_v37 = vsel %vm517_vm4, %v827_v36, -inf }
 0x4b2   : > { %838 = vmax.xlane.f32.xlu0 %v837_v37 }
 0x4bf   : > { %1020 = vrot.lane.b32.xlu1 %v512_v3, %s8764_s17 }
 0x4c3   : > { %1096 = vrot.lane.b32.xlu1 %v514_v5, %s8764_s17  ;;  %v505_v5 = vld [vmem:[%s10036_s2 + $0x68] sm:$0xf] }
 0x4c4   : > { %v1234_v6 = vsel %vm1180_vm6, %v505_v5, 0 }
 0x4c5   : > { %7997 = vmatpush3.bf16.msra.mxu0 %v1234_v6 }
 0x4c6   : > { %8008 = vmatprep.subr.bf16.mxu0 %v8758_v4 }
 0x4c8   : > { %v830_v38 = vpop.xlane.xlu1 %829  ;;  %944 = vrot.lane.b32.xlu0 %v510_v2, %s8764_s17 }
 0x4c9   : > { %v840_v39 = vsub.f32 %v824_v17, %v830_v38 }
 0x4cb   : > { %v844_v40 = vmul.f32 1.442695, %v840_v39 }
 0x4cd   : > { %8610 = vpow2.f32 %v844_v40 }
 0x4da   : > { %v8611_v41 = vpop.eup %8610 }
 0x4db   : > { %7973 = vmatmul.mubr.msk.f32.vlgmr.msra.gmra.mxu1 %vm517_vm4, %v8611_v41  ;;  %v852_v42 = vsel %vm517_vm4, %v8611_v41, 0.0 }
 0x4dc   : > { %7977 = vmatprep.mubr.msk.f32.mxu1 %vm8759_vm3, %v8758_v4 }
 0x4e7   : > { %853 = vadd.xlane.f32.xlu0 %v852_v42 }
 0x533   : > { %v833_v43 = vpop.xlane.xlu0 %832 }
 0x534   : > { %v841_v44 = vsub.f32 %v825_v18, %v833_v43  ;;  %v507_v18 = vld [vmem:[%s10036_s2 + $0x70] sm:$0xf] }
 0x535   : > { %v1330_v29 = vsel %vm1180_vm6, %v507_v18, 0 }
 0x536   : > { %v846_v45 = vmul.f32 1.442695, %v841_v44 }
 0x537   : > { %v836_v46 = vpop.xlane.xlu1 %835 }
 0x538   : > { %8612 = vpow2.f32 %v846_v45  ;;  %v842_v47 = vsub.f32 %v826_v30, %v836_v46  ;;  %v9019_v45 = vsub.s32 5, %v8857_v19 }
 0x53a   : > { %v848_v50 = vmul.f32 1.442695, %v842_v47  ;;  %v1227_v46 = vrot.slane %v443_v58, %v9019_v45 }
 0x53b   : > { %v839_v51 = vpop.xlane.xlu0 %838  ;;  %v1021_v55 = vpop.permute.xlu1 %1020 }
 0x53c   : > { %8614 = vpow2.f32 %v848_v50  ;;  %v843_v52 = vsub.f32 %v827_v36, %v839_v51 }
 0x53e   : > { %v850_v53 = vmul.f32 1.442695, %v843_v52 }
 0x53f   : > { %v945_v54 = vpop.permute.xlu0 %944  ;;  %v1097_v63 = vpop.permute.xlu1 %1096 }
 0x540   : > { %8616 = vpow2.f32 %v850_v53  ;;  %7976 = vmatpush3.msra.mxu1 %v945_v54 }
 0x541   : > { %7980 = vmatprep.subr.mxu1 %v8758_v4 }
 0x545   : > { %v8613_v56 = vpop.eup %8612 }
 0x546   : > { %7978 = vmatmul.mubr.msk.f32.vlgmr.msra.gmra.mxu1 %vm517_vm4, %v8613_v56  ;;  %v855_v60 = vsel %vm517_vm4, %v8613_v56, 0.0 }
 0x547   : > { %7981 = vmatpush3.msra.mxu1 %v1021_v55  ;;  %856 = vadd.xlane.f32.xlu1 %v855_v60 }
 0x548   : > { %7982 = vmatprep.mubr.msk.f32.mxu1 %vm8759_vm3, %v8758_v4  ;;  %7985 = vmatprep.subr.mxu1 %v8758_v4 }
 0x549   : > { %v8615_v61 = vpop.eup %8614 }
 0x54a   : > { %7983 = vmatmul.mubr.msk.f32.vlgmr.msra.gmra.mxu1 %vm517_vm4, %v8615_v61  ;;  %v858_v0 = vsel %vm517_vm4, %v8615_v61, 0.0 }
 0x54b   : > { %7986 = vmatpush3.msra.mxu1 %v1097_v63  ;;  %859 = vadd.xlane.f32.xlu0 %v858_v0 }
 0x54c   : > { %7987 = vmatprep.mubr.msk.f32.mxu1 %vm8759_vm3, %v8758_v4  ;;  %7990 = vmatprep.subr.bf16.mxu1 %v8758_v4 }
 0x54d   : > { %v8617_v2 = vpop.eup %8616 }
 0x54e   : > { %7988 = vmatmul.mubr.msk.f32.vlgmr.msra.gmra.mxu1 %vm517_vm4, %v8617_v2  ;;  %v861_v3 = vsel %vm517_vm4, %v8617_v2, 0.0 }
 0x54f   : > { %862 = vadd.xlane.f32.xlu0 %v861_v3  ;;  %7991 = vmatpush3.bf16.msra.mxu1 %v1182_v1 }
 0x550   : > { %7992 = vmatprep.mubr.msk.bf16.mxu1 %vm8759_vm3, %v8758_v4  ;;  %8002 = vmatprep.subr.bf16.mxu1 %v8758_v4 }
 0x570   : > { %v854_v7 = vpop.xlane.xlu0 %853 }
 0x571   : > { %8618 = vrcp.f32 %v854_v7 }
 0x57e   : > { %v8619_v8 = vpop.eup %8618 }
 0x59b   : > { %v940_v9 = vpop.f32.mrf.mxu1 }
 0x59c   : > { %v1172_v12 = vmul.f32 %v8619_v8, %v940_v9 }
 0x59d   : > { %v7974_v14 = vpop.f32.mrf.mxu1 }
 0x59e   : > { %v1176_v15 = vpack.c.bf16 %v1172_v12, %v1172_v12 }
 0x5a0   : > { %7993 = vmatmul.mubr.msk.bf16.vlgmr.msra.gmra.mxu1 %vm517_vm4, %v1176_v15 }
 0x5a1   : > { %8003 = vmatpush3.bf16.msra.mxu1 %v1282_v16  ;;  %8004 = vmatprep.mubr.msk.bf16.mxu1 %vm8759_vm3, %v8758_v4  ;;  %v1374_v16 = vld [vmem:[%s10038_s4] sm:$0x8] }
 0x5a2   : > { %8014 = vmatprep.subr.bf16.mxu1 %v8758_v4 }
 0x5d0   : > { %v857_v17 = vpop.xlane.xlu1 %856 }
 0x5d1   : > { %8620 = vrcp.f32 %v857_v17  ;;  %v1375_v17 = vunpack.c.l.bf16 %v1374_v16 }
 0x5d4   : > { %v860_v20 = vpop.xlane.xlu0 %859 }
 0x5d5   : > { %8622 = vrcp.f32 %v860_v20  ;;  %v9043_v20 = vsub.s32 6, %v8857_v19 }
 0x5d8   : > { %v863_v22 = vpop.xlane.xlu0 %862 }
 0x5d9   : > { %8624 = vrcp.f32 %v863_v22  ;;  %v9046_v22 = vsub.s32 7, %v8857_v19 }
 0x5de   : > { %v8621_v24 = vpop.eup %8620 }
 0x5e2   : > { %v8623_v30 = vpop.eup %8622 }
 0x5e6   : > { %v8625_v36 = vpop.eup %8624 }
 0x606   : > { %v1016_v25 = vpop.f32.mrf.mxu1 }
 0x607   : > { %v1173_v26 = vmul.f32 %v8621_v24, %v1016_v25  ;;  %v1392_v24 = vrot.slane %v1375_v17, %v9043_v20 }
 0x608   : > { %v7979_v27 = vpop.f32.mrf.mxu1 }
 0x609   : > { %v1229_v28 = vpack.c.bf16 %v1173_v26, %v1173_v26  ;;  %v1397_v26 = vrot.slane %v1375_v17, %v9046_v22  ;;  %v1584_v17 = vld [vmem:[%s10038_s4 + $0x4] sm:$0x2] }
 0x60a   : > { %v1092_v31 = vpop.f32.mrf.mxu1 }
 0x60b   : > { %v1174_v32 = vmul.f32 %v8623_v30, %v1092_v31  ;;  %7999 = vmatmul.mubr.msk.bf16.vlgmr.msra.gmra.mxu0 %vm517_vm4, %v1229_v28  ;;  %v8558_v30 = vld [vmem:[%s10036_s2 + $0xac] sm:$0xff]   ;;  %v8559_v31 = vld [vmem:[%s10036_s2 + $0xa4] sm:$0xff]  }
 0x60c   : > { %v7984_v34 = vpop.f32.mrf.mxu1  ;;  %8009 = vmatpush3.bf16.msra.mxu0 %v1330_v29  ;;  %8010 = vmatprep.mubr.msk.bf16.mxu0 %vm8759_vm3, %v8758_v4 }
 0x60d   : > { %v1277_v35 = vpack.c.bf16 %v1174_v32, %v1174_v32  ;;  %8022 = vmatprep.subr.bf16.mxu0 %v8758_v4  ;;  %v8560_v32 = vld [vmem:[%s10036_s2 + $0x9c] sm:$0xff]   ;;  %v8561_v34 = vld [vmem:[%s10036_s2 + $0x94] sm:$0xff]  }
 0x60e   : > { %v1168_v37 = vpop.f32.mrf.mxu1 }
 0x60f   : > { %v1175_v38 = vmul.f32 %v8625_v36, %v1168_v37  ;;  %8005 = vmatmul.mubr.msk.bf16.vlgmr.msra.gmra.mxu1 %vm517_vm4, %v1277_v35  ;;  %v8562_v35 = vld [vmem:[%s10036_s2 + $0x8c] sm:$0xff]   ;;  %v8563_v36 = vld [vmem:[%s10036_s2 + $0x84] sm:$0xff]   ;;  %v8564_v37 = vld [vmem:[%s10036_s2 + $0x7c] sm:$0xff]  }
 0x610   : > { %v7989_v39 = vpop.f32.mrf.mxu1  ;;  %8018 = vmatprep.mubr.msk.bf16.mxu1 %vm8759_vm3, %v8758_v4  ;;  %8015 = vmatpush3.bf16.msra.mxu1 %v8556_v10 }
 0x611   : > { %v1325_v40 = vpack.c.bf16 %v1175_v38, %v1175_v38  ;;  %8016 = vmatprep.subr.bf16.mxu1 %v8758_v4  ;;  %v8565_v38 = vld [vmem:[%s10036_s2 + $0x74] sm:$0xff]   ;;  %v1403_v39 = vld [vmem:[%s10038_s4 + $0x4] sm:$0x1] }
 0x613   : > { %8011 = vmatmul.mubr.msk.bf16.vlgmr.msra.gmra.mxu0 %vm517_vm4, %v1325_v40  ;;  %v1404_v40 = vunpack.c.l.bf16 %v1403_v39 }
 0x614   : > { %8038 = vmatprep.mubr.msk.bf16.mxu0 %vm8759_vm3, %v8758_v4  ;;  %8023 = vmatpush3.bf16.msra.mxu0 %v8558_v30 }
 0x615   : > { %8024 = vmatprep.subr.bf16.mxu0 %v8758_v4 }
 0x618   : > { %8025 = vmatpush3.bf16.msra.mxu0 %v8559_v31  ;;  %v9118_v31 = vld [vmem:[%s10038_s4 + $0x4] sm:$0x4] }
 0x619   : > { %8026 = vmatprep.subr.bf16.mxu0 %v8758_v4 }
 0x61c   : > { %8027 = vmatpush3.bf16.msra.mxu0 %v8560_v32  ;;  %v1614_v32 = vunpack.c.l.bf16 %v9118_v31 }
 0x61d   : > { %8028 = vmatprep.subr.bf16.mxu0 %v8758_v4 }
 0x620   : > { %8029 = vmatpush3.bf16.msra.mxu0 %v8561_v34  ;;  %v1619_v34 = vrot.slane %v1614_v32, %v8915_v59 }
 0x621   : > { %8030 = vmatprep.subr.bf16.mxu0 %v8758_v4 }
 0x624   : > { %8031 = vmatpush3.bf16.msra.mxu0 %v8562_v35 }
 0x625   : > { %8032 = vmatprep.subr.bf16.mxu0 %v8758_v4 }
 0x628   : > { %8033 = vmatpush3.bf16.msra.mxu0 %v8563_v36 }
 0x629   : > { %8034 = vmatprep.subr.bf16.mxu0 %v8758_v4 }
 0x62c   : > { %8035 = vmatpush3.bf16.msra.mxu0 %v8564_v37 }
 0x62d   : > { %8036 = vmatprep.subr.bf16.mxu0 %v8758_v4 }
 0x630   : > { %8037 = vmatpush3.bf16.msra.mxu0 %v8565_v38 }
 0x631   : > { %8080 = vmatprep.subr.mxu0 %v8758_v4 }
 0x660   : > { %v1218_v41 = vpop.f32.mrf.mxu1 }
 0x661   : > { %v1228_v51 = vadd.f32 %v1227_v46, %v1218_v41  ;;  %v1409_v41 = vrot.slane %v1404_v40, %v8863_v21 }
 0x662   : > { %v7994_v42 = vpop.f32.mrf.mxu1 }
 0x664   : > { %v1221_v43 = vpop.f32.mrf.mxu1 }
 0x666   : > { %v7995_v44 = vpop.f32.mrf.mxu1 }
 0x6cb   : > { %v1270_v47 = vpop.f32.mrf.mxu0 }
 0x6cc   : > { %v1276_v54 = vadd.f32 %v1270_v47, %v1228_v51 }
 0x6cd   : > { %v8000_v50 = vpop.f32.mrf.mxu0 }
 0x6cf   : > { %v1273_v52 = vpop.f32.mrf.mxu0  ;;  %v1318_v53 = vpop.f32.mrf.mxu1 }
 0x6d0   : > { %v1324_v60 = vadd.f32 %v1318_v53, %v1276_v54 }
 0x6d1   : > { %v8001_v55 = vpop.f32.mrf.mxu0  ;;  %v8006_v56 = vpop.f32.mrf.mxu1 }
 0x6d3   : > { %v1321_v61 = vpop.f32.mrf.mxu1  ;;  %v1366_v62 = vpop.f32.mrf.mxu0 }
 0x6d4   : > { %v1372_v63 = vadd.f32 %v1366_v62, %v1324_v60 }
 0x6d5   : > { %v8007_v0 = vpop.f32.mrf.mxu1  ;;  %v8012_v1 = vpop.f32.mrf.mxu0 }
 0x6d6   : > { %v9025_v2 = vadd.f32 %v1372_v63, %v8876_v33  ;;  %v8557_v33 = vld [vmem:[%s10037_s3 + $0x10] sm:$0xff]   ;;  %v1494_v63 = vrot.slane %v1404_v40, %v8866_v23 }
 0x6d7   : > { %v1369_v3 = vpop.f32.mrf.mxu0  ;;  %8017 = vmatpush3.bf16.msra.mxu1 %v8557_v33 }
 0x6d8   : > { %v1376_v57 = vsel %vm413_vm2, %v9025_v2, 0.0  ;;  %8042 = vmatprep.subr.bf16.mxu1 %v8758_v4 }
 0x6d9   : > { %v8013_v58 = vpop.f32.mrf.mxu0  ;;  %1377 = vadd.xlane.f32.xlu1 %v1376_v57 }
 0x762   : > { %v1378_v5 = vpop.xlane.xlu1 %1377 }
 0x763   : > { %v1379_v6 = vmul.f32 0.03125, %v1378_v5 }
 0x765   : > { %v1380_v7 = vsub.f32 %v9025_v2, %v1379_v6 }
 0x767   : > { %v1381_v8 = vmul.f32 %v1380_v7, %v1380_v7 }
 0x769   : > { %v1382_v9 = vsel %vm413_vm2, %v1381_v8, 0.0 }
 0x76a   : > { %1383 = vadd.xlane.f32.xlu0 %v1382_v9 }
 0x7f3   : > { %v1384_v12 = vpop.xlane.xlu0 %1383 }
 0x7f4   : > { %v1385_v14 = vmul.f32 0.03125, %v1384_v12  ;;  %v8566_v12 = vld [vmem:[%s10037_s3 + $0x28] sm:$0xff]  }
 0x7f6   : > { %v1386_v15 = vadd.f32 1e-06, %v1385_v14 }
 0x7f8   : > { %8626 = vrsqrt.f32 %v1386_v15 }
 0x805   : > { %v8627_v25 = vpop.eup %8626 }
 0x806   : > { %v1388_v18 = vmul.f32 %v8627_v25, %v1380_v7 }
 0x808   : > { %v1393_v27 = vmul.f32 %v1392_v24, %v1388_v18  ;;  %v1585_v24 = vunpack.c.l.bf16 %v1584_v17 }
 0x80a   : > { %v1398_v28 = vadd.f32 %v1397_v26, %v1393_v27  ;;  %v1602_v25 = vrot.slane %v1585_v24, %v8898_v48  ;;  %v1607_v27 = vrot.slane %v1585_v24, %v8901_v49 }
 0x80c   : > { %v1405_v29 = vpack.c.bf16 %v1398_v28, %v1398_v28 }
 0x80e   : > { %8019 = vmatmul.mubr.msk.bf16.vlgmr.msra.gmra.mxu1 %vm413_vm2, %v1405_v29 }
 0x80f   : > { %8046 = vmatprep.mubr.msk.bf16.mxu1 %vm8759_vm3, %v8758_v4  ;;  %8043 = vmatpush3.bf16.msra.mxu1 %v8566_v12 }
 0x810   : > { %8044 = vmatprep.subr.bf16.mxu1 %v8758_v4 }
 0x8ce   : > { %v1459_v42 = vpop.f32.mrf.mxu1 }
 0x8cf   : > { %v1460_v43 = vadd.f32 %v1459_v42, %v1409_v41 }
 0x8d0   : > { %v8020_v44 = vpop.f32.mrf.mxu1 }
 0x8d1   : > { %v1465_v46 = vmul.f32 %v1460_v43, %v1460_v43 }
 0x8d2   : > { %v1462_v47 = vpop.f32.mrf.mxu1 }
 0x8d3   : > { %v1466_v50 = vmul.f32 %v1465_v46, %v1460_v43 }
 0x8d4   : > { %v8021_v51 = vpop.f32.mrf.mxu1 }
 0x8d5   : > { %v1467_v52 = vmul.f32 0.044715, %v1466_v50 }
 0x8d7   : > { %v1468_v53 = vadd.f32 %v1467_v52, %v1460_v43 }
 0x8d9   : > { %v1469_v54 = vmul.f32 0.7978846, %v1468_v53 }
 0x8db   : > { %8628 = vtanh.f32 %v1469_v54 }
 0x8e8   : > { %v8629_v55 = vpop.eup %8628 }
 0x8e9   : > { %v1471_v56 = vadd.f32 1.0, %v8629_v55 }
 0x8eb   : > { %v1472_v60 = vmul.f32 0.5, %v1471_v56 }
 0x8ed   : > { %v1473_v61 = vmul.f32 %v1472_v60, %v1460_v43 }
 0x8ef   : > { %v1490_v62 = vpack.c.bf16 %v1473_v61, %v1473_v61 }
 0x8f1   : > { %8039 = vmatmul.mubr.bf16.vlgmr.msra.gmra.mxu0 %v1490_v62 }
 0x8f2   : > { %8082 = vmatprep.mubr.msk.f32.mxu0 %vm8759_vm3, %v8758_v4 }
 0x9b1   : > { %v1577_v0 = vpop.f32.mrf.mxu0 }
 0x9b2   : > { %v1578_v1 = vadd.f32 %v1577_v0, %v1494_v63 }
 0x9b3   : > { %v8040_v3 = vpop.f32.mrf.mxu0 }
 0x9b4   : > { %v9093_v57 = vadd.f32 %v1578_v1, %v9025_v2  ;;  %v8567_v2 = vld [vmem:[%s10037_s3 + $0x20] sm:$0xff]  }
 0x9b5   : > { %v1580_v58 = vpop.f32.mrf.mxu0  ;;  %8045 = vmatpush3.bf16.msra.mxu1 %v8567_v2 }
 0x9b6   : > { %v1586_v5 = vsel %vm413_vm2, %v9093_v57, 0.0  ;;  %8050 = vmatprep.subr.mxu1 %v8758_v4 }
 0x9b7   : > { %1587 = vadd.xlane.f32.xlu1 %v1586_v5  ;;  %v8041_v6 = vpop.f32.mrf.mxu0 }
 0xa40   : > { %v1588_v7 = vpop.xlane.xlu1 %1587 }
 0xa41   : > { %v1589_v8 = vmul.f32 0.03125, %v1588_v7 }
 0xa43   : > { %v1590_v9 = vsub.f32 %v9093_v57, %v1589_v8 }
 0xa45   : > { %v1591_v10 = vmul.f32 %v1590_v9, %v1590_v9 }
 0xa47   : > { %v1592_v33 = vsel %vm413_vm2, %v1591_v10, 0.0 }
 0xa48   : > { %1593 = vadd.xlane.f32.xlu0 %v1592_v33 }
 0xad1   : > { %v1594_v14 = vpop.xlane.xlu0 %1593 }
 0xad2   : > { %v1595_v15 = vmul.f32 0.03125, %v1594_v14 }
 0xad4   : > { %v1596_v16 = vadd.f32 1e-06, %v1595_v15 }
 0xad6   : > { %8630 = vrsqrt.f32 %v1596_v16 }
 0xae3   : > { %v8631_v18 = vpop.eup %8630 }
 0xae4   : > { %v1598_v26 = vmul.f32 %v8631_v18, %v1590_v9 }
 0xae6   : > { %v1603_v28 = vmul.f32 %v1602_v25, %v1598_v26 }
 0xae8   : > { %v1608_v29 = vadd.f32 %v1607_v27, %v1603_v28 }
 0xaea   : > { %v1615_v30 = vpack.c.bf16 %v1608_v29, %v1608_v29 }
 0xaec   : > { %8047 = vmatmul.mubr.msk.bf16.vlgmr.msra.gmra.mxu1 %vm413_vm2, %v1615_v30 }
 0xaed   : > { %8052 = vmatprep.mubr.msk.f32.mxu1 %vm8759_vm3, %v8758_v4 }
 0xbac   : > { %v1669_v35 = vpop.f32.mrf.mxu1 }
 0xbad   : > { %v1670_v36 = vadd.f32 %v1669_v35, %v1619_v34 }
 0xbae   : > { %v8048_v37 = vpop.f32.mrf.mxu1 }
 0xbaf   : > { %1682 = vrot.lane.b32.xlu0 %v1670_v36, %s8762_s15  ;;  %1680 = vrot.lane.b32.xlu1 %v1670_v36, %s8761_s14 }
 0xbb0   : > { %v1672_v38 = vpop.f32.mrf.mxu1 }
 0xbb2   : > { %v8049_v39 = vpop.f32.mrf.mxu1 }
 0xbb3   : > { %1684 = vrot.lane.b32.xlu1 %v1670_v36, %s8760_s13 }
 0xbb7   : > { %1686 = vrot.lane.b32.xlu1 %v1670_v36, %s8763_s16 }
 0xc21   : > { %v1683_v40 = vpop.permute.xlu0 %1682  ;;  %v1681_v41 = vpop.permute.xlu1 %1680 }
 0xc22   : > { %1838 = vrot.lane.b32.xlu1 %v1683_v40, %s8763_s16  ;;  %1762 = vrot.lane.b32.xlu0 %v1681_v41, %s8763_s16 }
 0xc25   : > { %v1685_v42 = vpop.permute.xlu1 %1684 }
 0xc26   : > { %1914 = vrot.lane.b32.xlu0 %v1685_v42, %s8763_s16 }
 0xc29   : > { %v1687_v43 = vpop.permute.xlu1 %1686 }
 0xc2a   : > { %8051 = vmatpush3.xpose.msk.msra.mxu1 %vm517_vm4, %v1687_v43 }
 0xc2b   : > { %8055 = vmatprep.subr.mxu1 %v8758_v4 }
 0xc2d   : > { %8053 = vmatmul.mubr.msk.f32.vlgmr.msra.gmra.mxu1 %vm517_vm4, %v1670_v36 }
 0xc2e   : > { %8057 = vmatprep.mubr.msk.f32.mxu1 %vm8759_vm3, %v8758_v4 }
 0xc94   : > { %v1763_v44 = vpop.permute.xlu0 %1762  ;;  %v1839_v46 = vpop.permute.xlu1 %1838 }
 0xc95   : > { %8056 = vmatpush3.xpose.msk.msra.mxu1 %vm517_vm4, %v1763_v44  ;;  %v1676_v44 = vld [vmem:[%s10036_s2 + $0xb8] sm:$0xf] }
 0xc96   : > { %8060 = vmatprep.subr.mxu1 %v8758_v4 }
 0xc98   : > { %8058 = vmatmul.mubr.msk.f32.vlgmr.msra.gmra.mxu1 %vm517_vm4, %v1681_v41  ;;  %v1915_v47 = vpop.permute.xlu0 %1914 }
 0xc99   : > { %8061 = vmatpush3.xpose.msk.msra.mxu1 %vm517_vm4, %v1839_v46  ;;  %8062 = vmatprep.mubr.msk.f32.mxu1 %vm8759_vm3, %v8758_v4  ;;  %v2403_v46 = vsel %vm1180_vm6, %v1676_v44, 0 }
 0xc9a   : > { %8065 = vmatprep.subr.mxu1 %v8758_v4 }
 0xc9c   : > { %8063 = vmatmul.mubr.msk.f32.vlgmr.msra.gmra.mxu1 %vm517_vm4, %v1683_v40 }
 0xc9d   : > { %8066 = vmatpush3.xpose.msk.msra.mxu1 %vm517_vm4, %v1915_v47  ;;  %8067 = vmatprep.mubr.msk.f32.mxu1 %vm8759_vm3, %v8758_v4 }
 0xc9e   : > { %8070 = vmatprep.subr.mxu1 %v8758_v4 }
 0xca0   : > { %8068 = vmatmul.mubr.msk.f32.vlgmr.msra.gmra.mxu1 %vm517_vm4, %v1685_v42 }
 0xca1   : > { %8072 = vmatprep.mubr.msk.f32.mxu1 %vm8759_vm3, %v8758_v4 }
 0xced   : > { %v1758_v50 = vpop.f32.mrf.mxu1 }
 0xcee   : > { %v1990_v51 = vmul.f32 0.35355338, %v1758_v50 }
 0xcef   : > { %v8054_v52 = vpop.f32.mrf.mxu1 }
 0xcf0   : > { %v1994_v53 = vadd.f32 %v1990_v51, %v8954_v13 }
 0xcf2   : > { %v1998_v54 = vsel %vm517_vm4, %v1994_v53, -inf }
 0xcf3   : > { %1999 = vmax.xlane.f32.xlu1 %v1998_v54 }
 0xd04   : > { %2114 = vrot.lane.b32.xlu1 %v1681_v41, %s8764_s17  ;;  %v1675_v41 = vld [vmem:[%s10036_s2 + $0xb4] sm:$0xf] }
 0xd05   : > { %v2351_v43 = vsel %vm1180_vm6, %v1675_v41, 0 }
 0xd58   : > { %v1834_v55 = vpop.f32.mrf.mxu1 }
 0xd59   : > { %v1991_v56 = vmul.f32 0.35355338, %v1834_v55 }
 0xd5a   : > { %v8059_v60 = vpop.f32.mrf.mxu1 }
 0xd5b   : > { %v1995_v61 = vadd.f32 %v1991_v56, %v8954_v13 }
 0xd5c   : > { %v1910_v62 = vpop.f32.mrf.mxu1 }
 0xd5d   : > { %v2001_v63 = vsel %vm517_vm4, %v1995_v61, -inf  ;;  %v1992_v10 = vmul.f32 0.35355338, %v1910_v62 }
 0xd5e   : > { %2002 = vmax.xlane.f32.xlu0 %v2001_v63  ;;  %v8064_v0 = vpop.f32.mrf.mxu1  ;;  %v1678_v63 = vld [vmem:[%s10036_s2 + $0xc0] sm:$0xf] }
 0xd5f   : > { %v1996_v33 = vadd.f32 %v1992_v10, %v8954_v13 }
 0xd60   : > { %v1986_v1 = vpop.f32.mrf.mxu1 }
 0xd61   : > { %v1993_v3 = vmul.f32 0.35355338, %v1986_v1  ;;  %v2004_v12 = vsel %vm517_vm4, %v1996_v33, -inf }
 0xd62   : > { %v8069_v58 = vpop.f32.mrf.mxu1 }
 0xd63   : > { %v1997_v5 = vadd.f32 %v1993_v3, %v8954_v13  ;;  %v2499_v58 = vsel %vm1180_vm6, %v1678_v63, 0 }
 0xd65   : > { %v2007_v6 = vsel %vm517_vm4, %v1997_v5, -inf }
 0xd66   : > { %2008 = vmax.xlane.f32.xlu1 %v2007_v6 }
 0xd74   : > { %2038 = vrot.lane.b32.xlu0 %v1670_v36, %s8764_s17 }
 0xd77   : > { %2190 = vrot.lane.b32.xlu1 %v1683_v40, %s8764_s17 }
 0xd7c   : > { %v2000_v7 = vpop.xlane.xlu1 %1999 }
 0xd7d   : > { %v2010_v8 = vsub.f32 %v1994_v53, %v2000_v7  ;;  %v1677_v53 = vld [vmem:[%s10036_s2 + $0xbc] sm:$0xf] }
 0xd7e   : > { %v2451_v60 = vsel %vm1180_vm6, %v1677_v53, 0 }
 0xd7f   : > { %v2014_v9 = vmul.f32 1.442695, %v2010_v8 }
 0xd80   : > { %v2115_v24 = vpop.permute.xlu1 %2114 }
 0xd81   : > { %8632 = vpow2.f32 %v2014_v9 }
 0xd8e   : > { %v8633_v2 = vpop.eup %8632 }
 0xd8f   : > { %v2022_v14 = vsel %vm517_vm4, %v8633_v2, 0.0 }
 0xd93   : > { %2005 = vmax.xlane.f32.xlu0 %v2004_v12 }
 0xd9b   : > { %2023 = vadd.xlane.f32.xlu1 %v2022_v14 }
 0xda9   : > { %2266 = vrot.lane.b32.xlu0 %v1685_v42, %s8764_s17 }
 0xde7   : > { %v2003_v15 = vpop.xlane.xlu0 %2002 }
 0xde8   : > { %v2011_v16 = vsub.f32 %v1995_v61, %v2003_v15 }
 0xdea   : > { %v2016_v17 = vmul.f32 1.442695, %v2011_v16 }
 0xdeb   : > { %v2039_v25 = vpop.permute.xlu0 %2038 }
 0xdec   : > { %8634 = vpow2.f32 %v2016_v17  ;;  %8071 = vmatpush3.msra.mxu1 %v2039_v25 }
 0xded   : > { %8073 = vmatmul.mubr.msk.f32.vlgmr.msra.gmra.mxu1 %vm517_vm4, %v8633_v2  ;;  %8075 = vmatprep.subr.mxu1 %v8758_v4 }
 0xdee   : > { %8076 = vmatpush3.msra.mxu1 %v2115_v24  ;;  %8077 = vmatprep.mubr.msk.f32.mxu1 %vm8759_vm3, %v8758_v4 }
 0xdef   : > { %v2009_v18 = vpop.xlane.xlu1 %2008  ;;  %8085 = vmatprep.subr.mxu1 %v8758_v4 }
 0xdf0   : > { %v2013_v26 = vsub.f32 %v1997_v5, %v2009_v18 }
 0xdf2   : > { %v2020_v27 = vmul.f32 1.442695, %v2013_v26 }
 0xdf3   : > { %v2191_v28 = vpop.permute.xlu1 %2190 }
 0xdf4   : > { %8636 = vpow2.f32 %v2020_v27  ;;  %8081 = vmatpush3.msra.mxu0 %v2191_v28 }
 0xdf5   : > { %8090 = vmatprep.subr.bf16.mxu0 %v8758_v4 }
 0xdf9   : > { %v8635_v29 = vpop.eup %8634 }
 0xdfa   : > { %8078 = vmatmul.mubr.msk.f32.vlgmr.msra.gmra.mxu1 %vm517_vm4, %v8635_v29  ;;  %v2025_v30 = vsel %vm517_vm4, %v8635_v29, 0.0 }
 0xdfb   : > { %2026 = vadd.xlane.f32.xlu0 %v2025_v30  ;;  %8087 = vmatprep.mubr.msk.f32.mxu1 %vm8759_vm3, %v8758_v4 }
 0xe01   : > { %v8637_v34 = vpop.eup %8636 }
 0xe02   : > { %v2031_v35 = vsel %vm517_vm4, %v8637_v34, 0.0 }
 0xe03   : > { %2032 = vadd.xlane.f32.xlu1 %v2031_v35 }
 0xe1c   : > { %v2006_v36 = vpop.xlane.xlu0 %2005 }
 0xe1d   : > { %v2012_v37 = vsub.f32 %v1996_v33, %v2006_v36  ;;  %v2396_v36 = vrot.slane %v1614_v32, %v9019_v45 }
 0xe1f   : > { %v2018_v38 = vmul.f32 1.442695, %v2012_v37 }
 0xe20   : > { %v2267_v39 = vpop.permute.xlu0 %2266 }
 0xe21   : > { %8638 = vpow2.f32 %v2018_v38  ;;  %8086 = vmatpush3.msra.mxu1 %v2267_v39 }
 0xe22   : > { %8088 = vmatmul.mubr.msk.f32.vlgmr.msra.gmra.mxu1 %vm517_vm4, %v8637_v34  ;;  %8096 = vmatprep.subr.bf16.mxu1 %v8758_v4 }
 0xe23   : > { %8098 = vmatprep.mubr.msk.bf16.mxu1 %vm8759_vm3, %v8758_v4  ;;  %8097 = vmatpush3.bf16.msra.mxu1 %v2403_v46 }
 0xe24   : > { %8108 = vmatprep.subr.bf16.mxu1 %v8758_v4  ;;  %v2024_v47 = vpop.xlane.xlu1 %2023 }
 0xe25   : > { %8640 = vrcp.f32 %v2024_v47 }
 0xe2e   : > { %v8639_v40 = vpop.eup %8638 }
 0xe2f   : > { %8083 = vmatmul.mubr.msk.f32.vlgmr.msra.gmra.mxu0 %vm517_vm4, %v8639_v40  ;;  %v2028_v42 = vsel %vm517_vm4, %v8639_v40, 0.0 }
 0xe30   : > { %2029 = vadd.xlane.f32.xlu0 %v2028_v42  ;;  %8091 = vmatpush3.bf16.msra.mxu0 %v2351_v43 }
 0xe31   : > { %8092 = vmatprep.mubr.msk.bf16.mxu0 %vm8759_vm3, %v8758_v4  ;;  %8102 = vmatprep.subr.bf16.mxu0 %v8758_v4 }
 0xe32   : > { %v8641_v51 = vpop.eup %8640 }
 0xe84   : > { %v2027_v50 = vpop.xlane.xlu0 %2026 }
 0xe85   : > { %8642 = vrcp.f32 %v2027_v50 }
 0xe8c   : > { %v2033_v5 = vpop.xlane.xlu1 %2032 }
 0xe8d   : > { %8644 = vrcp.f32 %v2033_v5 }
 0xe92   : > { %v8643_v61 = vpop.eup %8642 }
 0xe9a   : > { %v8645_v7 = vpop.eup %8644 }
 0xead   : > { %v2110_v52 = vpop.f32.mrf.mxu1 }
 0xeae   : > { %v2342_v54 = vmul.f32 %v8641_v51, %v2110_v52 }
 0xeaf   : > { %v8074_v55 = vpop.f32.mrf.mxu1 }
 0xeb0   : > { %v2346_v56 = vpack.c.bf16 %v2342_v54, %v2342_v54  ;;  %v8568_v54 = vld [vmem:[%s10037_s3 + $0x38] sm:$0xff]   ;;  %v2778_v55 = vld [vmem:[%s9238_s23] sm:$0xff] }
 0xeb2   : > { %8093 = vmatmul.mubr.msk.bf16.vlgmr.msra.gmra.mxu0 %vm517_vm4, %v2346_v56  ;;  %v8518_v56 = vtrunc.f32 %v2778_v55 }
 0xeb3   : > { %8103 = vmatpush3.bf16.msra.mxu0 %v2451_v60  ;;  %8104 = vmatprep.mubr.msk.bf16.mxu0 %vm8759_vm3, %v8758_v4 }
 0xeb4   : > { %8114 = vmatprep.subr.bf16.mxu0 %v8758_v4  ;;  %v9241_v60 = vcvt.f32.s32 %v8518_v56  ;;  %v2796_v56 = vld [vmem:[%s10038_s4 + $0x8] sm:$0x4] }
 0xeb9   : > { %v2030_v6 = vpop.xlane.xlu0 %2029 }
 0xeba   : > { %v2186_v62 = vpop.f32.mrf.mxu1  ;;  %8646 = vrcp.f32 %v2030_v6 }
 0xebb   : > { %v2343_v0 = vmul.f32 %v8643_v61, %v2186_v62 }
 0xebc   : > { %v8079_v1 = vpop.f32.mrf.mxu1 }
 0xebd   : > { %v2398_v3 = vpack.c.bf16 %v2343_v0, %v2343_v0  ;;  %v2543_v0 = vld [vmem:[%s10038_s4 + $0x4] sm:$0x8] }
 0xebe   : > { %v2544_v1 = vunpack.c.l.bf16 %v2543_v0 }
 0xebf   : > { %8099 = vmatmul.mubr.msk.bf16.vlgmr.msra.gmra.mxu1 %vm517_vm4, %v2398_v3 }
 0xec0   : > { %8109 = vmatpush3.bf16.msra.mxu1 %v2499_v58  ;;  %8110 = vmatprep.mubr.msk.bf16.mxu1 %vm8759_vm3, %v8758_v4  ;;  %v2561_v3 = vrot.slane %v2544_v1, %v9043_v20  ;;  %v2566_v6 = vrot.slane %v2544_v1, %v9046_v22 }
 0xec1   : > { %8122 = vmatprep.subr.bf16.mxu1 %v8758_v4 }
 0xec7   : > { %v8647_v12 = vpop.eup %8646 }
 0xee2   : > { %v2338_v8 = vpop.f32.mrf.mxu1 }
 0xee3   : > { %v2345_v9 = vmul.f32 %v8645_v7, %v2338_v8 }
 0xee4   : > { %v8089_v10 = vpop.f32.mrf.mxu1 }
 0xee5   : > { %v2494_v33 = vpack.c.bf16 %v2345_v9, %v2345_v9  ;;  %v8570_v10 = vld [vmem:[%s10036_s2 + $0xfc] sm:$0xff]  }
 0xee7   : > { %8111 = vmatmul.mubr.msk.bf16.vlgmr.msra.gmra.mxu1 %vm517_vm4, %v2494_v33  ;;  %v8571_v33 = vld [vmem:[%s10036_s2 + $0xf4] sm:$0xff]  }
 0xee8   : > { %8138 = vmatprep.mubr.msk.bf16.mxu1 %vm8759_vm3, %v8758_v4  ;;  %8123 = vmatpush3.bf16.msra.mxu1 %v8570_v10 }
 0xee9   : > { %8124 = vmatprep.subr.bf16.mxu1 %v8758_v4 }
 0xeec   : > { %8125 = vmatpush3.bf16.msra.mxu1 %v8571_v33 }
 0xeed   : > { %8126 = vmatprep.subr.bf16.mxu1 %v8758_v4 }
 0xeef   : > { %v2262_v2 = vpop.f32.mrf.mxu0 }
 0xef0   : > { %v2344_v14 = vmul.f32 %v8647_v12, %v2262_v2  ;;  %v8572_v12 = vld [vmem:[%s10036_s2 + $0xec] sm:$0xff]   ;;  %v8573_v2 = vld [vmem:[%s10036_s2 + $0xe4] sm:$0xff]  }
 0xef1   : > { %v8084_v15 = vpop.f32.mrf.mxu0  ;;  %8127 = vmatpush3.bf16.msra.mxu1 %v8572_v12 }
 0xef2   : > { %v2446_v16 = vpack.c.bf16 %v2344_v14, %v2344_v14  ;;  %8128 = vmatprep.subr.bf16.mxu1 %v8758_v4  ;;  %v8574_v14 = vld [vmem:[%s10036_s2 + $0xdc] sm:$0xff]   ;;  %v8575_v15 = vld [vmem:[%s10036_s2 + $0xd4] sm:$0xff]  }
 0xef4   : > { %8105 = vmatmul.mubr.msk.bf16.vlgmr.msra.gmra.mxu0 %vm517_vm4, %v2446_v16  ;;  %v8576_v16 = vld [vmem:[%s10036_s2 + $0xcc] sm:$0xff]  }
 0xef5   : > { %8118 = vmatprep.mubr.msk.bf16.mxu0 %vm8759_vm3, %v8758_v4  ;;  %8115 = vmatpush3.bf16.msra.mxu0 %v8568_v54 }
 0xef6   : > { %8116 = vmatprep.subr.bf16.mxu0 %v8758_v4  ;;  %8129 = vmatpush3.bf16.msra.mxu1 %v8573_v2 }
 0xef7   : > { %8130 = vmatprep.subr.bf16.mxu1 %v8758_v4 }
 0xefa   : > { %8131 = vmatpush3.bf16.msra.mxu1 %v8574_v14  ;;  %v8582_v14 = vld [vmem:[%s10037_s3 + $0x48] sm:$0xff]  }
 0xefb   : > { %8132 = vmatprep.subr.bf16.mxu1 %v8758_v4 }
 0xefe   : > { %8133 = vmatpush3.bf16.msra.mxu1 %v8575_v15  ;;  %v8583_v15 = vld [vmem:[%s10037_s3 + $0x40] sm:$0xff]  }
 0xeff   : > { %8134 = vmatprep.subr.bf16.mxu1 %v8758_v4 }
 0xf02   : > { %8135 = vmatpush3.bf16.msra.mxu1 %v8576_v16 }
 0xf03   : > { %8136 = vmatprep.subr.bf16.mxu1 %v8758_v4 }
 0xf72   : > { %v2387_v17 = vpop.f32.mrf.mxu0 }
 0xf73   : > { %v2397_v38 = vadd.f32 %v2396_v36, %v2387_v17  ;;  %v8577_v17 = vld [vmem:[%s10036_s2 + $0xc4] sm:$0xff]  }
 0xf74   : > { %v8094_v24 = vpop.f32.mrf.mxu0  ;;  %8137 = vmatpush3.bf16.msra.mxu1 %v8577_v17 }
 0xf75   : > { %8142 = vmatprep.subr.bf16.mxu1 %v8758_v4  ;;  %v9287_v24 = vld [vmem:[%s10038_s4 + $0x8] sm:$0x1] }
 0xf76   : > { %v2390_v25 = vpop.f32.mrf.mxu0 }
 0xf77   : > { %v2573_v25 = vunpack.c.l.bf16 %v9287_v24  ;;  %v2971_v24 = vld [vmem:[%s10036_s2 + $0x128] sm:$0xf] }
 0xf78   : > { %v8095_v18 = vpop.f32.mrf.mxu0 }
 0xf79   : > { %v2578_v18 = vrot.slane %v2573_v25, %v8863_v21 }
 0xf7f   : > { %v2439_v26 = vpop.f32.mrf.mxu1 }
 0xf80   : > { %v2445_v39 = vadd.f32 %v2439_v26, %v2397_v38 }
 0xf81   : > { %v8100_v27 = vpop.f32.mrf.mxu1 }
 0xf83   : > { %v2442_v28 = vpop.f32.mrf.mxu1 }
 0xf85   : > { %v8101_v29 = vpop.f32.mrf.mxu1 }
 0xfa7   : > { %v2535_v30 = vpop.f32.mrf.mxu1 }
 0xfa9   : > { %v8112_v34 = vpop.f32.mrf.mxu1 }
 0xfab   : > { %v2538_v35 = vpop.f32.mrf.mxu1 }
 0xfad   : > { %v8113_v37 = vpop.f32.mrf.mxu1 }
 0xfb4   : > { %v2487_v40 = vpop.f32.mrf.mxu0 }
 0xfb5   : > { %v2493_v41 = vadd.f32 %v2487_v40, %v2445_v39 }
 0xfb6   : > { %v8106_v42 = vpop.f32.mrf.mxu0 }
 0xfb7   : > { %v2541_v43 = vadd.f32 %v2535_v30, %v2493_v41 }
 0xfb8   : > { %v2490_v44 = vpop.f32.mrf.mxu0 }
 0xfb9   : > { %v9219_v46 = vadd.f32 %v2541_v43, %v9093_v57  ;;  %v8569_v57 = vld [vmem:[%s10037_s3 + $0x30] sm:$0xff]   ;;  %v8578_v43 = vld [vmem:[%s10036_s2 + $0x11c] sm:$0xff]  }
 0xfba   : > { %v8107_v47 = vpop.f32.mrf.mxu0  ;;  %8117 = vmatpush3.bf16.msra.mxu0 %v8569_v57 }
 0xfbb   : > { %v2545_v50 = vsel %vm413_vm2, %v9219_v46, 0.0  ;;  %8154 = vmatprep.subr.bf16.mxu0 %v8758_v4  ;;  %v8579_v47 = vld [vmem:[%s10036_s2 + $0x114] sm:$0xff]  }
 0xfbc   : > { %2546 = vadd.xlane.f32.xlu0 %v2545_v50 }
 0xfd2   : > { %2790 = vperm.xlu0 %8538, %v9241_v60  }
0x1045   : > { %v2547_v51 = vpop.xlane.xlu0 %2546 }
0x1046   : > { %v2548_v31 = vmul.f32 0.03125, %v2547_v51  ;;  %v8580_v51 = vld [vmem:[%s10036_s2 + $0x10c] sm:$0xff]  }
0x1048   : > { %v2549_v32 = vsub.f32 %v9219_v46, %v2548_v31 }
0x104a   : > { %v2550_v52 = vmul.f32 %v2549_v32, %v2549_v32 }
0x104c   : > { %v2551_v53 = vsel %vm413_vm2, %v2550_v52, 0.0 }
0x104d   : > { %2552 = vadd.xlane.f32.xlu1 %v2551_v53  ;;  %v2791_v50 = vpop.permute.xlu0 %2790 }
0x104e   : > { %vm2792_vm7 = vcmp.eq.s32.totalorder %v8950_v11, %v2791_v50 }
0x104f   : > { %v7607_v31 = vsel %vm2792_vm7, 1.0, %v8758_v4 }
0x1050   : > { %v2795_v52 = vpack.c.bf16 %v7607_v31, %v7607_v31 }
0x10d6   : > { %v2553_v61 = vpop.xlane.xlu1 %2552 }
0x10d7   : > { %v2554_v62 = vmul.f32 0.03125, %v2553_v61  ;;  %v2797_v61 = vunpack.c.l.bf16 %v2796_v56  ;;  %v7613_v56 = vsel %vm2897_vm8, 1.0, %v8758_v4 }
0x10d9   : > { %v2555_v63 = vadd.f32 1e-06, %v2554_v62  ;;  %v2869_v62 = vld [vmem:[%s10036_s2 + $0x124] sm:$0xf] }
0x10da   : > { %v2870_v0 = vunpack.c.l.bf16 %v2869_v62 }
0x10db   : > { %8648 = vrsqrt.f32 %v2555_v63  ;;  %v2801_v63 = vrot.slane %v2797_v61, %v8915_v59 }
0x10e8   : > { %v8649_v58 = vpop.eup %8648 }
0x10e9   : > { %v2557_v5 = vmul.f32 %v8649_v58, %v2549_v32  ;;  %v8581_v32 = vld [vmem:[%s10036_s2 + $0x104] sm:$0xff]  }
0x10eb   : > { %v2562_v7 = vmul.f32 %v2561_v3, %v2557_v5 }
0x10ed   : > { %v2567_v8 = vadd.f32 %v2566_v6, %v2562_v7 }
0x10ef   : > { %v2574_v9 = vpack.c.bf16 %v2567_v8, %v2567_v8 }
0x10f1   : > { %8119 = vmatmul.mubr.msk.bf16.vlgmr.msra.gmra.mxu0 %vm413_vm2, %v2574_v9 }
0x10f2   : > { %8158 = vmatprep.mubr.msk.bf16.mxu0 %vm8759_vm3, %v8758_v4  ;;  %8155 = vmatpush3.bf16.msra.mxu0 %v8582_v14 }
0x10f3   : > { %8156 = vmatprep.subr.bf16.mxu0 %v8758_v4 }
0x10f6   : > { %8157 = vmatpush3.bf16.msra.mxu0 %v8583_v15 }
0x10f7   : > { %8162 = vmatprep.subr.mxu0 %v8758_v4 }
0x11b1   : > { %v2628_v26 = vpop.f32.mrf.mxu0 }
0x11b2   : > { %v2629_v27 = vadd.f32 %v2628_v26, %v2578_v18  ;;  %v2872_v26 = vld [vmem:[%s10038_s4 + $0x8] sm:$0x8] }
0x11b3   : > { %v8120_v28 = vpop.f32.mrf.mxu0 }
0x11b4   : > { %v2634_v29 = vmul.f32 %v2629_v27, %v2629_v27  ;;  %v2890_v28 = vrot.slane %v2797_v61, %v9019_v45 }
0x11b5   : > { %v2631_v30 = vpop.f32.mrf.mxu0 }
0x11b6   : > { %v2635_v34 = vmul.f32 %v2634_v29, %v2629_v27 }
0x11b7   : > { %v8121_v35 = vpop.f32.mrf.mxu0 }
0x11b8   : > { %v2636_v36 = vmul.f32 0.044715, %v2635_v34 }
0x11ba   : > { %v2637_v37 = vadd.f32 %v2636_v36, %v2629_v27 }
0x11bc   : > { %v2638_v38 = vmul.f32 0.7978846, %v2637_v37 }
0x11be   : > { %8650 = vtanh.f32 %v2638_v38 }
0x11cb   : > { %v8651_v39 = vpop.eup %8650 }
0x11cc   : > { %v2640_v40 = vadd.f32 1.0, %v8651_v39 }
0x11ce   : > { %v2641_v41 = vmul.f32 0.5, %v2640_v40 }
0x11d0   : > { %v2642_v42 = vmul.f32 %v2641_v41, %v2629_v27  ;;  %v2873_v27 = vunpack.c.l.bf16 %v2872_v26 }
0x11d2   : > { %v2659_v44 = vpack.c.bf16 %v2642_v42, %v2642_v42  ;;  %v2895_v34 = vrot.slane %v2873_v27, %v9043_v20  ;;  %v2915_v38 = vrot.slane %v2873_v27, %v9046_v22 }
0x11d4   : > { %8139 = vmatmul.mubr.bf16.vlgmr.msra.gmra.mxu1 %v2659_v44 }
0x11d5   : > { %8143 = vmatpush3.bf16.msra.mxu1 %v8578_v43  ;;  %8150 = vmatprep.mubr.msk.bf16.mxu1 %vm8759_vm3, %v8758_v4 }
0x11d6   : > { %8144 = vmatprep.subr.bf16.mxu1 %v8758_v4 }
0x11d9   : > { %8145 = vmatpush3.bf16.msra.mxu1 %v8579_v47 }
0x11da   : > { %8146 = vmatprep.subr.bf16.mxu1 %v8758_v4 }
0x11dd   : > { %8147 = vmatpush3.bf16.msra.mxu1 %v8580_v51 }
0x11de   : > { %8148 = vmatprep.subr.bf16.mxu1 %v8758_v4 }
0x11e1   : > { %8149 = vmatpush3.bf16.msra.mxu1 %v8581_v32 }
0x11e2   : > { %8167 = vmatprep.subr.mxu1 %v8758_v4 }
0x11e4   : > { %8151 = vmatmul.mubr.msk.bf16.vlgmr.msra.gmra.mxu1 %vm350_vm0, %v2795_v52 }
0x11e5   : > { %8169 = vmatprep.mubr.msk.f32.mxu1 %vm8759_vm3, %v8758_v4 }
0x1294   : > { %v9316_v53 = vpop.f32.mrf.mxu1 }
0x1296   : > { %v8140_v54 = vpop.f32.mrf.mxu1 }
0x1298   : > { %v2749_v57 = vpop.f32.mrf.mxu1 }
0x1299   : > { %v2779_v57 = vld [vmem:[%s9238_s23 + $0x8] sm:$0xff] }
0x129a   : > { %v8141_v55 = vpop.f32.mrf.mxu1 }
0x129b   : > { %v2903_v55 = vrot.slane %v2779_v57, %v8863_v21 }
0x129d   : > { %v2904_v61 = vmul.f32 %v7613_v56, %v2903_v55 }
0x129f   : > { %v2905_v62 = vsub.f32 1.0, %v2904_v61 }
0x12a4   : > { %v2863_v1 = vpop.f32.mrf.mxu1 }
0x12a5   : > { %v2864_v3 = vadd.f32 %v2863_v1, %v2801_v63  ;;  %v9382_v63 = vmul.f32 -1e+09, %v2905_v62 }
0x12a6   : > { %v8152_v58 = vpop.f32.mrf.mxu1 }
0x12a7   : > { %v2871_v5 = vadd.f32 %v2870_v0, %v2864_v3 }
0x12a8   : > { %v2866_v6 = vpop.f32.mrf.mxu1 }
0x12a9   : > { %v2874_v7 = vsel %vm413_vm2, %v2871_v5, 0.0 }
0x12aa   : > { %2875 = vadd.xlane.f32.xlu1 %v2874_v7  ;;  %v8153_v8 = vpop.f32.mrf.mxu1 }
0x1333   : > { %v2876_v9 = vpop.xlane.xlu1 %2875 }
0x1334   : > { %v2877_v10 = vmul.f32 0.03125, %v2876_v9 }
0x1336   : > { %v2878_v33 = vsub.f32 %v2871_v5, %v2877_v10 }
0x1338   : > { %v2879_v12 = vmul.f32 %v2878_v33, %v2878_v33 }
0x133a   : > { %v2880_v2 = vsel %vm413_vm2, %v2879_v12, 0.0 }
0x133b   : > { %2881 = vadd.xlane.f32.xlu1 %v2880_v2 }
0x13c4   : > { %v2882_v16 = vpop.xlane.xlu1 %2881 }
0x13c5   : > { %v2883_v17 = vmul.f32 0.03125, %v2882_v16 }
0x13c7   : > { %v2884_v18 = vadd.f32 1e-12, %v2883_v17 }
0x13c9   : > { %8652 = vrsqrt.f32 %v2884_v18 }
0x13d6   : > { %v8653_v29 = vpop.eup %8652 }
0x13d7   : > { %v2886_v30 = vmul.f32 %v8653_v29, %v2878_v33 }
0x13d9   : > { %v2891_v35 = vmul.f32 %v2890_v28, %v2886_v30 }
0x13db   : > { %v9340_v36 = vadd.f32 %v2895_v34, %v2891_v35 }
0x13dd   : > { %v2911_v37 = vpack.c.bf16 %v9340_v36, %v9340_v36 }
0x13df   : > { %8159 = vmatmul.mubr.msk.bf16.vlgmr.msra.gmra.mxu0 %vm413_vm2, %v2911_v37 }
0x13e0   : > { %8164 = vmatprep.mubr.msk.f32.mxu0 %vm8759_vm3, %v8758_v4 }
0x149f   : > { %v2965_v39 = vpop.f32.mrf.mxu0 }
0x14a0   : > { %v2966_v40 = vadd.f32 %v2965_v39, %v2915_v38 }
0x14a1   : > { %v8160_v41 = vpop.f32.mrf.mxu0 }
0x14a2   : > { %2978 = vrot.lane.b32.xlu1 %v2966_v40, %s8761_s14 }
0x14a3   : > { %v2968_v42 = vpop.f32.mrf.mxu0 }
0x14a5   : > { %v8161_v43 = vpop.f32.mrf.mxu0 }
0x14a6   : > { %2980 = vrot.lane.b32.xlu1 %v2966_v40, %s8762_s15 }
0x14aa   : > { %2982 = vrot.lane.b32.xlu1 %v2966_v40, %s8760_s13 }
0x14ae   : > { %2984 = vrot.lane.b32.xlu1 %v2966_v40, %s8763_s16 }
0x1514   : > { %v2979_v44 = vpop.permute.xlu1 %2978 }
0x1515   : > { %3060 = vrot.lane.b32.xlu1 %v2979_v44, %s8763_s16 }
0x1518   : > { %v2981_v47 = vpop.permute.xlu1 %2980 }
0x1519   : > { %3136 = vrot.lane.b32.xlu0 %v2981_v47, %s8763_s16 }
0x151c   : > { %v2983_v50 = vpop.permute.xlu1 %2982 }
0x151d   : > { %3212 = vrot.lane.b32.xlu1 %v2983_v50, %s8763_s16 }
0x1520   : > { %v2985_v51 = vpop.permute.xlu1 %2984 }
0x1521   : > { %3336 = vrot.lane.b32.xlu1 %v2966_v40, %s8764_s17  ;;  %8163 = vmatpush3.xpose.msk.msra.mxu0 %vm517_vm4, %v2985_v51 }
0x1522   : > { %8172 = vmatprep.subr.mxu0 %v8758_v4 }
0x1524   : > { %8165 = vmatmul.mubr.msk.f32.vlgmr.msra.gmra.mxu0 %vm517_vm4, %v2966_v40 }
0x1525   : > { %8174 = vmatprep.mubr.msk.f32.mxu0 %vm8759_vm3, %v8758_v4 }
0x1587   : > { %v3061_v31 = vpop.permute.xlu1 %3060 }
0x1588   : > { %8168 = vmatpush3.xpose.msk.msra.mxu1 %vm517_vm4, %v3061_v31 }
0x1589   : > { %8177 = vmatprep.subr.mxu1 %v8758_v4 }
0x158b   : > { %v3137_v32 = vpop.permute.xlu0 %3136  ;;  %8170 = vmatmul.mubr.msk.f32.vlgmr.msra.gmra.mxu1 %vm517_vm4, %v2979_v44 }
0x158c   : > { %8173 = vmatpush3.xpose.msk.msra.mxu0 %vm517_vm4, %v3137_v32  ;;  %8179 = vmatprep.mubr.msk.f32.mxu1 %vm8759_vm3, %v8758_v4 }
0x158d   : > { %8182 = vmatprep.subr.mxu0 %v8758_v4 }
0x158f   : > { %8175 = vmatmul.mubr.msk.f32.vlgmr.msra.gmra.mxu0 %vm517_vm4, %v2981_v47  ;;  %v3213_v52 = vpop.permute.xlu1 %3212 }
0x1590   : > { %8178 = vmatpush3.xpose.msk.msra.mxu1 %vm517_vm4, %v3213_v52  ;;  %8184 = vmatprep.mubr.msk.f32.mxu0 %vm8759_vm3, %v8758_v4 }
0x1591   : > { %8187 = vmatprep.subr.mxu1 %v8758_v4 }
0x1593   : > { %8180 = vmatmul.mubr.msk.f32.vlgmr.msra.gmra.mxu1 %vm517_vm4, %v2983_v50  ;;  %v3337_v54 = vpop.permute.xlu1 %3336 }
0x1594   : > { %8183 = vmatpush3.msra.mxu0 %v3337_v54  ;;  %8189 = vmatprep.mubr.msk.f32.mxu1 %vm8759_vm3, %v8758_v4 }
0x1595   : > { %8192 = vmatprep.subr.mxu0 %v8758_v4 }
0x15e4   : > { %v3056_v0 = vpop.f32.mrf.mxu0 }
0x15e5   : > { %v3288_v1 = vmul.f32 0.35355338, %v3056_v0  ;;  %v2972_v0 = vld [vmem:[%s10036_s2 + $0x12c] sm:$0xf] }
0x15e6   : > { %v8166_v3 = vpop.f32.mrf.mxu0 }
0x15e7   : > { %v3292_v58 = vadd.f32 %v3288_v1, %v9382_v63  ;;  %v3701_v1 = vsel %vm1180_vm6, %v2972_v0, 0 }
0x15e9   : > { %v3296_v5 = vsel %vm517_vm4, %v3292_v58, -inf }
0x15ea   : > { %3297 = vmax.xlane.f32.xlu0 %v3296_v5 }
0x164b   : > { %v3132_v6 = vpop.f32.mrf.mxu1 }
0x164c   : > { %v3289_v7 = vmul.f32 0.35355338, %v3132_v6  ;;  %v2973_v6 = vld [vmem:[%s10036_s2 + $0x130] sm:$0xf] }
0x164d   : > { %v8171_v8 = vpop.f32.mrf.mxu1 }
0x164e   : > { %v3293_v9 = vadd.f32 %v3289_v7, %v9382_v63 }
0x164f   : > { %v3208_v10 = vpop.f32.mrf.mxu0 }
0x1650   : > { %v3290_v33 = vmul.f32 0.35355338, %v3208_v10  ;;  %v3299_v12 = vsel %vm517_vm4, %v3293_v9, -inf  ;;  %v3749_v10 = vsel %vm1180_vm6, %v2973_v6, 0 }
0x1651   : > { %v8176_v2 = vpop.f32.mrf.mxu0  ;;  %3300 = vmax.xlane.f32.xlu1 %v3299_v12 }
0x1652   : > { %v3294_v14 = vadd.f32 %v3290_v33, %v9382_v63 }
0x1653   : > { %v3284_v15 = vpop.f32.mrf.mxu1 }
0x1654   : > { %v3291_v16 = vmul.f32 0.35355338, %v3284_v15  ;;  %v3302_v17 = vsel %vm517_vm4, %v3294_v14, -inf }
0x1655   : > { %3303 = vmax.xlane.f32.xlu0 %v3302_v17  ;;  %v8181_v18 = vpop.f32.mrf.mxu1 }
0x1656   : > { %v3295_v26 = vadd.f32 %v3291_v16, %v9382_v63 }
0x1658   : > { %v3305_v27 = vsel %vm517_vm4, %v3295_v26, -inf }
0x1659   : > { %3306 = vmax.xlane.f32.xlu0 %v3305_v27 }
0x1662   : > { %3488 = vrot.lane.b32.xlu1 %v2981_v47, %s8764_s17 }
0x1666   : > { %3564 = vrot.lane.b32.xlu1 %v2983_v50, %s8764_s17  ;;  %v2663_v50 = vrot.slane %v2573_v25, %v8866_v23 }
0x1668   : > { %v2747_v32 = vadd.f32 %v9316_v53, %v2663_v50  ;;  %v3649_v53 = vsel %vm1180_vm6, %v2971_v24, 0  ;;  %v8584_v50 = vld [vmem:[%s10037_s3 + $0x58] sm:$0xff]  }
0x166a   : > { %v2752_v55 = vadd.f32 %v2747_v32, %v9219_v46 }
0x166c   : > { %v2755_v56 = vsel %vm413_vm2, %v2752_v55, 0.0 }
0x166f   : > { %3412 = vrot.lane.b32.xlu0 %v2979_v44, %s8764_s17 }
0x1673   : > { %v3298_v28 = vpop.xlane.xlu0 %3297 }
0x1674   : > { %v3308_v29 = vsub.f32 %v3292_v58, %v3298_v28  ;;  %v2974_v28 = vld [vmem:[%s10036_s2 + $0x134] sm:$0xf] }
0x1676   : > { %v3312_v30 = vmul.f32 1.442695, %v3308_v29 }
0x1678   : > { %8654 = vpow2.f32 %v3312_v30 }
0x1685   : > { %v8655_v34 = vpop.eup %8654 }
0x1686   : > { %8185 = vmatmul.mubr.msk.f32.vlgmr.msra.gmra.mxu0 %vm517_vm4, %v8655_v34  ;;  %v3320_v35 = vsel %vm517_vm4, %v8655_v34, 0.0 }
0x1687   : > { %8194 = vmatprep.mubr.msk.f32.mxu0 %vm8759_vm3, %v8758_v4 }
0x168e   : > { %3321 = vadd.xlane.f32.xlu0 %v3320_v35  ;;  %v3797_v35 = vsel %vm1180_vm6, %v2974_v28, 0 }
0x16da   : > { %v3301_v37 = vpop.xlane.xlu1 %3300 }
0x16db   : > { %v3309_v38 = vsub.f32 %v3293_v9, %v3301_v37 }
0x16dd   : > { %v3314_v39 = vmul.f32 1.442695, %v3309_v38 }
0x16de   : > { %v3304_v40 = vpop.xlane.xlu0 %3303  ;;  %v3489_v41 = vpop.permute.xlu1 %3488 }
0x16df   : > { %8656 = vpow2.f32 %v3314_v39  ;;  %v3310_v42 = vsub.f32 %v3294_v14, %v3304_v40  ;;  %8193 = vmatpush3.msra.mxu0 %v3489_v41 }
0x16e0   : > { %8202 = vmatprep.subr.bf16.mxu0 %v8758_v4 }
0x16e1   : > { %v3316_v43 = vmul.f32 1.442695, %v3310_v42 }
0x16e2   : > { %v3307_v44 = vpop.xlane.xlu0 %3306  ;;  %v3565_v54 = vpop.permute.xlu1 %3564 }
0x16e3   : > { %8658 = vpow2.f32 %v3316_v43  ;;  %v3311_v47 = vsub.f32 %v3295_v26, %v3307_v44 }
0x16e5   : > { %v3318_v51 = vmul.f32 1.442695, %v3311_v47 }
0x16e6   : > { %v3413_v31 = vpop.permute.xlu0 %3412 }
0x16e7   : > { %8660 = vpow2.f32 %v3318_v51  ;;  %8188 = vmatpush3.msra.mxu1 %v3413_v31  ;;  %v8585_v31 = vld [vmem:[%s10037_s3 + $0x50] sm:$0xff]  }
0x16e8   : > { %8197 = vmatprep.subr.mxu1 %v8758_v4 }
0x16ec   : > { %v8657_v52 = vpop.eup %8656 }
0x16ed   : > { %8190 = vmatmul.mubr.msk.f32.vlgmr.msra.gmra.mxu1 %vm517_vm4, %v8657_v52  ;;  %v3323_v57 = vsel %vm517_vm4, %v8657_v52, 0.0 }
0x16ee   : > { %8198 = vmatpush3.msra.mxu1 %v3565_v54  ;;  %3324 = vadd.xlane.f32.xlu1 %v3323_v57 }
0x16ef   : > { %8199 = vmatprep.mubr.msk.f32.mxu1 %vm8759_vm3, %v8758_v4  ;;  %8208 = vmatprep.subr.bf16.mxu1 %v8758_v4 }
0x16f0   : > { %v8659_v25 = vpop.eup %8658 }
0x16f1   : > { %8195 = vmatmul.mubr.msk.f32.vlgmr.msra.gmra.mxu0 %vm517_vm4, %v8659_v25  ;;  %v3326_v46 = vsel %vm517_vm4, %v8659_v25, 0.0 }
0x16f2   : > { %2756 = vadd.xlane.f32.xlu1 %v2755_v56  ;;  %3327 = vadd.xlane.f32.xlu0 %v3326_v46 }
0x16f3   : > { %8203 = vmatpush3.bf16.msra.mxu0 %v3649_v53  ;;  %8204 = vmatprep.mubr.msk.bf16.mxu0 %vm8759_vm3, %v8758_v4  ;;  %v2753_v53 = vld [vmem:[%s10038_s4 + $0x8] sm:$0x2] }
0x16f4   : > { %v8661_v61 = vpop.eup %8660  ;;  %8214 = vmatprep.subr.bf16.mxu0 %v8758_v4  ;;  %v2754_v56 = vunpack.c.l.bf16 %v2753_v53  ;;  %v3843_v53 = vld [vmem:[%s10038_s4 + $0xc] sm:$0x2] }
0x16f5   : > { %8200 = vmatmul.mubr.msk.f32.vlgmr.msra.gmra.mxu1 %vm517_vm4, %v8661_v61  ;;  %v3329_v62 = vsel %vm517_vm4, %v8661_v61, 0.0 }
0x16f6   : > { %3330 = vadd.xlane.f32.xlu0 %v3329_v62  ;;  %8210 = vmatprep.mubr.msk.bf16.mxu1 %vm8759_vm3, %v8758_v4  ;;  %v2771_v46 = vrot.slane %v2754_v56, %v8898_v48  ;;  %v2776_v0 = vrot.slane %v2754_v56, %v8901_v49 }
0x16f7   : > { %8209 = vmatpush3.bf16.msra.mxu1 %v3701_v1 }
0x16f8   : > { %8220 = vmatprep.subr.bf16.mxu1 %v8758_v4 }
0x1717   : > { %v3322_v3 = vpop.xlane.xlu0 %3321 }
0x1718   : > { %8662 = vrcp.f32 %v3322_v3 }
0x1725   : > { %v8663_v58 = vpop.eup %8662 }
0x1746   : > { %v3408_v5 = vpop.f32.mrf.mxu0 }
0x1747   : > { %v3640_v7 = vmul.f32 %v8663_v58, %v3408_v5  ;;  %v2975_v5 = vld [vmem:[%s10038_s4 + $0xc] sm:$0x1] }
0x1748   : > { %v8186_v8 = vpop.f32.mrf.mxu0  ;;  %v2976_v6 = vunpack.c.l.bf16 %v2975_v5 }
0x1749   : > { %v3644_v9 = vpack.c.bf16 %v3640_v7, %v3640_v7 }
0x174a   : > { %v3694_v7 = vrot.slane %v2976_v6, %v8863_v21 }
0x174b   : > { %8205 = vmatmul.mubr.msk.bf16.vlgmr.msra.gmra.mxu0 %vm517_vm4, %v3644_v9 }
0x174c   : > { %8215 = vmatpush3.bf16.msra.mxu0 %v3749_v10  ;;  %8216 = vmatprep.mubr.msk.bf16.mxu0 %vm8759_vm3, %v8758_v4 }
0x174d   : > { %8226 = vmatprep.subr.bf16.mxu0 %v8758_v4 }
0x1777   : > { %v3325_v33 = vpop.xlane.xlu1 %3324 }
0x1778   : > { %8664 = vrcp.f32 %v3325_v33 }
0x177b   : > { %v2757_v12 = vpop.xlane.xlu1 %2756  ;;  %v3328_v17 = vpop.xlane.xlu0 %3327 }
0x177c   : > { %v2758_v2 = vmul.f32 0.03125, %v2757_v12  ;;  %8666 = vrcp.f32 %v3328_v17 }
0x177e   : > { %v2759_v14 = vsub.f32 %v2752_v55, %v2758_v2 }
0x177f   : > { %v3331_v18 = vpop.xlane.xlu0 %3330 }
0x1780   : > { %v2760_v15 = vmul.f32 %v2759_v14, %v2759_v14  ;;  %8668 = vrcp.f32 %v3331_v18 }
0x1782   : > { %v2761_v16 = vsel %vm413_vm2, %v2760_v15, 0.0 }
0x1783   : > { %2762 = vadd.xlane.f32.xlu1 %v2761_v16 }
0x1785   : > { %v8665_v26 = vpop.eup %8664 }
0x1789   : > { %v8667_v37 = vpop.eup %8666 }
0x178d   : > { %v8669_v42 = vpop.eup %8668 }
0x17ad   : > { %v3484_v27 = vpop.f32.mrf.mxu1 }
0x17ae   : > { %v3641_v29 = vmul.f32 %v8665_v26, %v3484_v27 }
0x17af   : > { %v8191_v30 = vpop.f32.mrf.mxu1 }
0x17b0   : > { %v3696_v34 = vpack.c.bf16 %v3641_v29, %v3641_v29 }
0x17b1   : > { %v3560_v38 = vpop.f32.mrf.mxu0 }
0x17b2   : > { %v3642_v39 = vmul.f32 %v8667_v37, %v3560_v38  ;;  %8211 = vmatmul.mubr.msk.bf16.vlgmr.msra.gmra.mxu1 %vm517_vm4, %v3696_v34  ;;  %v9481_v37 = vld [vmem:[%s10038_s4 + $0xc] sm:$0x4] }
0x17b3   : > { %v8196_v40 = vpop.f32.mrf.mxu0  ;;  %8221 = vmatpush3.bf16.msra.mxu1 %v3797_v35  ;;  %8222 = vmatprep.mubr.msk.bf16.mxu1 %vm8759_vm3, %v8758_v4  ;;  %v3937_v38 = vunpack.c.l.bf16 %v9481_v37 }
0x17b4   : > { %v3744_v41 = vpack.c.bf16 %v3642_v39, %v3642_v39  ;;  %8234 = vmatprep.subr.bf16.mxu1 %v8758_v4 }
0x17b5   : > { %v3636_v43 = vpop.f32.mrf.mxu1  ;;  %v3942_v39 = vrot.slane %v3937_v38, %v8915_v59 }
0x17b6   : > { %v3643_v44 = vmul.f32 %v8669_v42, %v3636_v43  ;;  %8217 = vmatmul.mubr.msk.bf16.vlgmr.msra.gmra.mxu0 %vm517_vm4, %v3744_v41 }
0x17b7   : > { %v8201_v47 = vpop.f32.mrf.mxu1  ;;  %8230 = vmatprep.mubr.msk.bf16.mxu0 %vm8759_vm3, %v8758_v4 }
0x17b8   : > { %v3792_v51 = vpack.c.bf16 %v3643_v44, %v3643_v44 }
0x17ba   : > { %8223 = vmatmul.mubr.msk.bf16.vlgmr.msra.gmra.mxu1 %vm517_vm4, %v3792_v51 }
0x17bb   : > { %8235 = vmatpush3.bf16.msra.mxu1 %v8584_v50  ;;  %8238 = vmatprep.mubr.msk.bf16.mxu1 %vm8759_vm3, %v8758_v4 }
0x17bc   : > { %8236 = vmatprep.subr.bf16.mxu1 %v8758_v4 }
0x17bf   : > { %8237 = vmatpush3.bf16.msra.mxu1 %v8585_v31 }
0x17c0   : > { %8247 = vmatprep.subr.mxu1 %v8758_v4 }
0x180b   : > { %v3685_v32 = vpop.f32.mrf.mxu0 }
0x180c   : > { %v2763_v52 = vpop.xlane.xlu1 %2762  ;;  %v3695_v10 = vadd.f32 %v3694_v7, %v3685_v32  ;;  %v8586_v32 = vld [vmem:[%s10036_s2 + $0x140] sm:$0xff]  }
0x180d   : > { %v2764_v54 = vmul.f32 0.03125, %v2763_v52  ;;  %v8206_v57 = vpop.f32.mrf.mxu0  ;;  %8227 = vmatpush3.bf16.msra.mxu0 %v8586_v32  ;;  %v8587_v52 = vld [vmem:[%s10036_s2 + $0x138] sm:$0xff]  }
0x180e   : > { %8228 = vmatprep.subr.bf16.mxu0 %v8758_v4 }
0x180f   : > { %v2765_v55 = vadd.f32 1e-06, %v2764_v54  ;;  %v3688_v24 = vpop.f32.mrf.mxu0 }
0x1811   : > { %8670 = vrsqrt.f32 %v2765_v55  ;;  %v8207_v25 = vpop.f32.mrf.mxu0  ;;  %8229 = vmatpush3.bf16.msra.mxu0 %v8587_v52 }
0x1812   : > { %8242 = vmatprep.subr.mxu0 %v8758_v4  ;;  %v3841_v25 = vld [vmem:[%s10038_s4 + $0xc] sm:$0x1] }
0x1813   : > { %v3842_v56 = vunpack.c.l.bf16 %v3841_v25 }
0x181e   : > { %v8671_v61 = vpop.eup %8670 }
0x181f   : > { %v2767_v62 = vmul.f32 %v8671_v61, %v2759_v14  ;;  %v3861_v61 = vrot.slane %v3842_v56, %v8866_v23 }
0x1821   : > { %v2772_v1 = vmul.f32 %v2771_v46, %v2767_v62  ;;  %v3844_v46 = vunpack.c.l.bf16 %v3843_v53 }
0x1823   : > { %v2777_v3 = vadd.f32 %v2776_v0, %v2772_v1  ;;  %v3866_v1 = vrot.slane %v3844_v46, %v8898_v48  ;;  %v3876_v7 = vrot.slane %v3844_v46, %v8901_v49 }
0x1825   : > { %v9466_v58 = vpack.c.bf16 %v2777_v3, %v2777_v3 }
0x1827   : > { %8239 = vmatmul.mubr.msk.bf16.vlgmr.msra.gmra.mxu1 %vm413_vm2, %v9466_v58 }
0x1828   : > { %8249 = vmatprep.mubr.msk.f32.mxu1 %vm8759_vm3, %v8758_v4 }
0x1872   : > { %v3737_v8 = vpop.f32.mrf.mxu1 }
0x1873   : > { %v3743_v2 = vadd.f32 %v3737_v8, %v3695_v10 }
0x1874   : > { %v8212_v9 = vpop.f32.mrf.mxu1 }
0x1876   : > { %v3740_v33 = vpop.f32.mrf.mxu1  ;;  %v3785_v12 = vpop.f32.mrf.mxu0 }
0x1877   : > { %v3791_v16 = vadd.f32 %v3785_v12, %v3743_v2 }
0x1878   : > { %v8213_v14 = vpop.f32.mrf.mxu1  ;;  %v8218_v15 = vpop.f32.mrf.mxu0 }
0x187a   : > { %v3788_v17 = vpop.f32.mrf.mxu0  ;;  %v3833_v18 = vpop.f32.mrf.mxu1 }
0x187b   : > { %v3839_v26 = vadd.f32 %v3833_v18, %v3791_v16 }
0x187c   : > { %v8219_v27 = vpop.f32.mrf.mxu0  ;;  %v8224_v28 = vpop.f32.mrf.mxu1 }
0x187d   : > { %v3840_v29 = vadd.f32 %v3839_v26, %v9340_v36 }
0x187e   : > { %v3836_v30 = vpop.f32.mrf.mxu1 }
0x187f   : > { %v3845_v34 = vsel %vm413_vm2, %v3840_v29, 0.0 }
0x1880   : > { %3846 = vadd.xlane.f32.xlu0 %v3845_v34  ;;  %v8225_v35 = vpop.f32.mrf.mxu1 }
0x18e7   : > { %v3992_v40 = vpop.f32.mrf.mxu1 }
0x18e8   : > { %v3993_v41 = vadd.f32 %v3992_v40, %v3942_v39 }
0x18e9   : > { %v8240_v42 = vpop.f32.mrf.mxu1 }
0x18ea   : > { %4010 = vrot.lane.b32.xlu1 %v3993_v41, %s8761_s14 }
0x18eb   : > { %v3995_v36 = vpop.f32.mrf.mxu1 }
0x18ed   : > { %v8241_v43 = vpop.f32.mrf.mxu1 }
0x18ee   : > { %4012 = vrot.lane.b32.xlu1 %v3993_v41, %s8762_s15 }
0x18f2   : > { %4014 = vrot.lane.b32.xlu1 %v3993_v41, %s8760_s13 }
0x1909   : > { %v3847_v44 = vpop.xlane.xlu0 %3846 }
0x190a   : > { %v3848_v47 = vmul.f32 0.03125, %v3847_v44 }
0x190c   : > { %v3849_v50 = vsub.f32 %v3840_v29, %v3848_v47 }
0x190e   : > { %v3850_v51 = vmul.f32 %v3849_v50, %v3849_v50 }
0x1910   : > { %v3851_v31 = vsel %vm413_vm2, %v3850_v51, 0.0 }
0x1911   : > { %3852 = vadd.xlane.f32.xlu0 %v3851_v31 }
0x195c   : > { %v9499_v54 = vpop.permute.xlu1 %4010 }
0x195d   : > { %8248 = vmatpush3.xpose.msk.msra.mxu1 %vm517_vm4, %v9499_v54 }
0x195e   : > { %8257 = vmatprep.subr.mxu1 %v8758_v4 }
0x1960   : > { %v4013_v33 = vpop.permute.xlu1 %4012 }
0x1964   : > { %v4015_v14 = vpop.permute.xlu1 %4014 }
0x199a   : > { %v3853_v57 = vpop.xlane.xlu0 %3852 }
0x199b   : > { %v3854_v55 = vmul.f32 0.03125, %v3853_v57 }
0x199d   : > { %v3855_v24 = vadd.f32 1e-12, %v3854_v55 }
0x199f   : > { %8672 = vrsqrt.f32 %v3855_v24 }
0x19ac   : > { %v8673_v62 = vpop.eup %8672 }
0x19ad   : > { %v3857_v0 = vmul.f32 %v8673_v62, %v3849_v50 }
0x19af   : > { %v3862_v3 = vmul.f32 %v3861_v61, %v3857_v0 }
0x19b1   : > { %v9512_v5 = vadd.f32 %v3866_v1, %v3862_v3 }
0x19b3   : > { %v3872_v6 = vpack.c.bf16 %v9512_v5, %v9512_v5 }
0x19b5   : > { %8231 = vmatmul.mubr.msk.bf16.vlgmr.msra.gmra.mxu0 %vm413_vm2, %v3872_v6 }
0x19b6   : > { %8243 = vmatpush3.xpose.msk.msra.mxu0 %vm517_vm4, %v3993_v41  ;;  %8244 = vmatprep.mubr.msk.f32.mxu0 %vm8759_vm3, %v8758_v4 }
0x19b7   : > { %8252 = vmatprep.subr.mxu0 %v8758_v4 }
0x1a75   : > { %v3926_v8 = vpop.f32.mrf.mxu0 }
0x1a76   : > { %v3927_v9 = vadd.f32 %v3926_v8, %v3876_v7 }
0x1a77   : > { %v8232_v10 = vpop.f32.mrf.mxu0 }
0x1a78   : > { %4003 = vrot.lane.b32.xlu0 %v3927_v9, %s8761_s14  ;;  %4007 = vrot.lane.b32.xlu1 %v3927_v9, %s8760_s13  ;;  %v3998_v10 = vld [vmem:[%s10036_s2 + $0x148] sm:$0xf] }
0x1a79   : > { %8245 = vmatmul.mubr.msk.f32.vlgmr.msra.gmra.mxu0 %vm517_vm4, %v3927_v9  ;;  %v3929_v12 = vpop.f32.mrf.mxu0 }
0x1a7a   : > { %8253 = vmatpush3.xpose.msk.msra.mxu0 %vm517_vm4, %v4013_v33  ;;  %8254 = vmatprep.mubr.msk.f32.mxu0 %vm8759_vm3, %v8758_v4 }
0x1a7b   : > { %v8233_v2 = vpop.f32.mrf.mxu0  ;;  %8262 = vmatprep.subr.mxu0 %v8758_v4 }
0x1a7c   : > { %4005 = vrot.lane.b32.xlu0 %v3927_v9, %s8762_s15  ;;  %4360 = vrot.lane.b32.xlu1 %v3993_v41, %s8763_s16  ;;  %v4673_v2 = vsel %vm1180_vm6, %v3998_v10, 0 }
0x1aea   : > { %v4004_v15 = vpop.permute.xlu0 %4003  ;;  %v4008_v16 = vpop.permute.xlu1 %4007 }
0x1aeb   : > { %8250 = vmatmul.mubr.msk.f32.vlgmr.msra.gmra.mxu1 %vm517_vm4, %v4004_v15 }
0x1aec   : > { %8258 = vmatpush3.xpose.msk.msra.mxu1 %vm517_vm4, %v4015_v14  ;;  %8259 = vmatprep.mubr.msk.f32.mxu1 %vm8759_vm3, %v8758_v4 }
0x1aed   : > { %8267 = vmatprep.subr.mxu1 %v8758_v4 }
0x1aee   : > { %v4006_v17 = vpop.permute.xlu0 %4005  ;;  %v4361_v18 = vpop.permute.xlu1 %4360 }
0x1aef   : > { %8255 = vmatmul.mubr.msk.f32.vlgmr.msra.gmra.mxu0 %vm517_vm4, %v4006_v17  ;;  %8260 = vmatmul.mubr.msk.f32.vlgmr.msra.gmra.mxu1 %vm517_vm4, %v4008_v16 }
0x1af0   : > { %8263 = vmatpush3.msra.mxu0 %v4361_v18  ;;  %8264 = vmatprep.mubr.msk.f32.mxu0 %vm8759_vm3, %v8758_v4 }
0x1af1   : > { %8272 = vmatprep.subr.mxu0 %v8758_v4  ;;  %8269 = vmatprep.mubr.msk.f32.mxu1 %vm8759_vm3, %v8758_v4 }
0x1b39   : > { %v4086_v26 = vpop.f32.mrf.mxu0 }
0x1b3a   : > { %v4312_v27 = vmul.f32 0.35355338, %v4086_v26  ;;  %v3999_v26 = vld [vmem:[%s10036_s2 + $0x14c] sm:$0xf] }
0x1b3b   : > { %v8246_v28 = vpop.f32.mrf.mxu0 }
0x1b3c   : > { %v4316_v29 = vadd.f32 %v4312_v27, %v8954_v13  ;;  %v4725_v27 = vsel %vm1180_vm6, %v3999_v26, 0 }
0x1b3e   : > { %v4320_v30 = vsel %vm517_vm4, %v4316_v29, -inf }
0x1b3f   : > { %4321 = vmax.xlane.f32.xlu0 %v4320_v30  ;;  %v4000_v30 = vld [vmem:[%s10036_s2 + $0x150] sm:$0xf] }
0x1bab   : > { %v4160_v34 = vpop.f32.mrf.mxu1 }
0x1bac   : > { %v4313_v35 = vmul.f32 0.35355338, %v4160_v34 }
0x1bad   : > { %v8251_v39 = vpop.f32.mrf.mxu1 }
0x1bae   : > { %v4317_v40 = vadd.f32 %v4313_v35, %v8954_v13 }
0x1baf   : > { %v4234_v41 = vpop.f32.mrf.mxu0  ;;  %v4308_v42 = vpop.f32.mrf.mxu1 }
0x1bb0   : > { %v4314_v36 = vmul.f32 0.35355338, %v4234_v41  ;;  %v4315_v43 = vmul.f32 0.35355338, %v4308_v42  ;;  %v4323_v44 = vsel %vm517_vm4, %v4317_v40, -inf }
0x1bb1   : > { %v8256_v47 = vpop.f32.mrf.mxu0  ;;  %4324 = vmax.xlane.f32.xlu1 %v4323_v44  ;;  %v8261_v50 = vpop.f32.mrf.mxu1 }
0x1bb2   : > { %v4318_v51 = vadd.f32 %v4314_v36, %v8954_v13  ;;  %v4319_v32 = vadd.f32 %v4315_v43, %v8954_v13  ;;  %v4001_v47 = vld [vmem:[%s10036_s2 + $0x154] sm:$0xf] }
0x1bb4   : > { %v4326_v31 = vsel %vm517_vm4, %v4318_v51, -inf  ;;  %v4329_v52 = vsel %vm517_vm4, %v4319_v32, -inf }
0x1bb5   : > { %4327 = vmax.xlane.f32.xlu0 %v4326_v31 }
0x1bb9   : > { %4330 = vmax.xlane.f32.xlu0 %v4329_v52 }
0x1bc2   : > { %4512 = vrot.lane.b32.xlu1 %v4013_v33, %s8763_s16 }
0x1bc6   : > { %4588 = vrot.lane.b32.xlu1 %v4015_v14, %s8763_s16 }
0x1bc8   : > { %v4322_v57 = vpop.xlane.xlu0 %4321 }
0x1bc9   : > { %v4332_v55 = vsub.f32 %v4316_v29, %v4322_v57 }
0x1bcb   : > { %v4336_v24 = vmul.f32 1.442695, %v4332_v55 }
0x1bcd   : > { %8674 = vpow2.f32 %v4336_v24 }
0x1bcf   : > { %4436 = vrot.lane.b32.xlu0 %v9499_v54, %s8763_s16 }
0x1bda   : > { %v8675_v25 = vpop.eup %8674 }
0x1bdb   : > { %8265 = vmatmul.mubr.msk.f32.vlgmr.msra.gmra.mxu0 %vm517_vm4, %v8675_v25  ;;  %v4344_v53 = vsel %vm517_vm4, %v8675_v25, 0.0 }
0x1bdc   : > { %8274 = vmatprep.mubr.msk.f32.mxu0 %vm8759_vm3, %v8758_v4 }
0x1bee   : > { %4345 = vadd.xlane.f32.xlu0 %v4344_v53 }
0x1c3a   : > { %v4325_v56 = vpop.xlane.xlu1 %4324 }
0x1c3b   : > { %v4333_v46 = vsub.f32 %v4317_v40, %v4325_v56  ;;  %v4773_v40 = vsel %vm1180_vm6, %v4000_v30, 0 }
0x1c3d   : > { %v4338_v61 = vmul.f32 1.442695, %v4333_v46 }
0x1c3e   : > { %v4328_v62 = vpop.xlane.xlu0 %4327  ;;  %v4513_v0 = vpop.permute.xlu1 %4512 }
0x1c3f   : > { %8676 = vpow2.f32 %v4338_v61  ;;  %v4334_v1 = vsub.f32 %v4318_v51, %v4328_v62  ;;  %8273 = vmatpush3.msra.mxu0 %v4513_v0 }
0x1c40   : > { %8282 = vmatprep.subr.bf16.mxu0 %v8758_v4 }
0x1c41   : > { %v4340_v54 = vmul.f32 1.442695, %v4334_v1 }
0x1c42   : > { %v4331_v3 = vpop.xlane.xlu0 %4330  ;;  %v4589_v33 = vpop.permute.xlu1 %4588 }
0x1c43   : > { %8678 = vpow2.f32 %v4340_v54  ;;  %v4335_v6 = vsub.f32 %v4319_v32, %v4331_v3  ;;  %v4821_v32 = vsel %vm1180_vm6, %v4001_v47, 0 }
0x1c45   : > { %v4342_v7 = vmul.f32 1.442695, %v4335_v6  ;;  %v4718_v6 = vrot.slane %v3937_v38, %v9019_v45 }
0x1c46   : > { %v4437_v8 = vpop.permute.xlu0 %4436 }
0x1c47   : > { %8680 = vpow2.f32 %v4342_v7  ;;  %8268 = vmatpush3.msra.mxu1 %v4437_v8 }
0x1c48   : > { %8277 = vmatprep.subr.mxu1 %v8758_v4 }
0x1c4c   : > { %v8677_v9 = vpop.eup %8676 }
0x1c4d   : > { %8270 = vmatmul.mubr.msk.f32.vlgmr.msra.gmra.mxu1 %vm517_vm4, %v8677_v9  ;;  %v4347_v12 = vsel %vm517_vm4, %v8677_v9, 0.0 }
0x1c4e   : > { %8278 = vmatpush3.msra.mxu1 %v4589_v33  ;;  %4348 = vadd.xlane.f32.xlu1 %v4347_v12 }
0x1c4f   : > { %8279 = vmatprep.mubr.msk.f32.mxu1 %vm8759_vm3, %v8758_v4  ;;  %8288 = vmatprep.subr.bf16.mxu1 %v8758_v4 }
0x1c50   : > { %v8679_v14 = vpop.eup %8678 }
0x1c51   : > { %8275 = vmatmul.mubr.msk.f32.vlgmr.msra.gmra.mxu0 %vm517_vm4, %v8679_v14  ;;  %v4350_v15 = vsel %vm517_vm4, %v8679_v14, 0.0 }
0x1c52   : > { %4351 = vadd.xlane.f32.xlu0 %v4350_v15  ;;  %8283 = vmatpush3.bf16.msra.mxu0 %v4673_v2 }
0x1c53   : > { %8284 = vmatprep.mubr.msk.bf16.mxu0 %vm8759_vm3, %v8758_v4  ;;  %8294 = vmatprep.subr.bf16.mxu0 %v8758_v4 }
0x1c54   : > { %v8681_v16 = vpop.eup %8680 }
0x1c55   : > { %8280 = vmatmul.mubr.msk.f32.vlgmr.msra.gmra.mxu1 %vm517_vm4, %v8681_v16  ;;  %v4353_v17 = vsel %vm517_vm4, %v8681_v16, 0.0 }
0x1c56   : > { %4354 = vadd.xlane.f32.xlu0 %v4353_v17  ;;  %8290 = vmatprep.mubr.msk.bf16.mxu1 %vm8759_vm3, %v8758_v4 }
0x1c57   : > { %8289 = vmatpush3.bf16.msra.mxu1 %v4725_v27 }
0x1c58   : > { %8300 = vmatprep.subr.bf16.mxu1 %v8758_v4 }
0x1c77   : > { %v4346_v18 = vpop.xlane.xlu0 %4345 }
0x1c78   : > { %8682 = vrcp.f32 %v4346_v18 }
0x1c85   : > { %v8683_v28 = vpop.eup %8682 }
0x1c9b   : > { %v4432_v29 = vpop.f32.mrf.mxu0 }
0x1c9c   : > { %v4664_v34 = vmul.f32 %v8683_v28, %v4432_v29 }
0x1c9d   : > { %v8266_v35 = vpop.f32.mrf.mxu0 }
0x1c9e   : > { %v4668_v39 = vpack.c.bf16 %v4664_v34, %v4664_v34 }
0x1ca0   : > { %8285 = vmatmul.mubr.msk.bf16.vlgmr.msra.gmra.mxu0 %vm517_vm4, %v4668_v39 }
0x1ca1   : > { %8295 = vmatpush3.bf16.msra.mxu0 %v4773_v40  ;;  %8296 = vmatprep.mubr.msk.bf16.mxu0 %vm8759_vm3, %v8758_v4 }
0x1ca2   : > { %8306 = vmatprep.subr.bf16.mxu0 %v8758_v4 }
0x1cd7   : > { %v4349_v41 = vpop.xlane.xlu1 %4348 }
0x1cd8   : > { %8684 = vrcp.f32 %v4349_v41  ;;  %v8588_v41 = vld [vmem:[%s10037_s3 + $0x68] sm:$0xff]  }
0x1cdb   : > { %v4352_v42 = vpop.xlane.xlu0 %4351 }
0x1cdc   : > { %8686 = vrcp.f32 %v4352_v42 }
0x1cdf   : > { %v4355_v36 = vpop.xlane.xlu0 %4354 }
0x1ce0   : > { %8688 = vrcp.f32 %v4355_v36 }
0x1ce5   : > { %v8685_v43 = vpop.eup %8684 }
0x1ce9   : > { %v8687_v52 = vpop.eup %8686 }
0x1ced   : > { %v8689_v53 = vpop.eup %8688 }
0x1d0d   : > { %v4508_v44 = vpop.f32.mrf.mxu1 }
0x1d0e   : > { %v4665_v50 = vmul.f32 %v8685_v43, %v4508_v44  ;;  %v4865_v44 = vld [vmem:[%s10038_s4 + $0xc] sm:$0x8] }
0x1d0f   : > { %v8271_v51 = vpop.f32.mrf.mxu1  ;;  %v4866_v47 = vunpack.c.l.bf16 %v4865_v44  ;;  %v5046_v44 = vld [vmem:[%s10038_s4 + $0x10] sm:$0x2] }
0x1d10   : > { %v4720_v31 = vpack.c.bf16 %v4665_v50, %v4665_v50 }
0x1d11   : > { %v4584_v57 = vpop.f32.mrf.mxu0  ;;  %v4883_v50 = vrot.slane %v4866_v47, %v9043_v20 }
0x1d12   : > { %v4666_v55 = vmul.f32 %v8687_v52, %v4584_v57  ;;  %8291 = vmatmul.mubr.msk.bf16.vlgmr.msra.gmra.mxu1 %vm517_vm4, %v4720_v31 }
0x1d13   : > { %v8276_v24 = vpop.f32.mrf.mxu0  ;;  %8301 = vmatpush3.bf16.msra.mxu1 %v4821_v32  ;;  %8302 = vmatprep.mubr.msk.bf16.mxu1 %vm8759_vm3, %v8758_v4  ;;  %v4888_v32 = vrot.slane %v4866_v47, %v9046_v22  ;;  %v5047_v47 = vunpack.c.l.bf16 %v5046_v44 }
0x1d14   : > { %v4768_v25 = vpack.c.bf16 %v4666_v55, %v4666_v55  ;;  %8314 = vmatprep.subr.bf16.mxu1 %v8758_v4  ;;  %v8590_v24 = vld [vmem:[%s10036_s2 + $0x170] sm:$0xff]  }
0x1d15   : > { %v4660_v56 = vpop.f32.mrf.mxu1 }
0x1d16   : > { %v4667_v46 = vmul.f32 %v8689_v53, %v4660_v56  ;;  %8297 = vmatmul.mubr.msk.bf16.vlgmr.msra.gmra.mxu0 %vm517_vm4, %v4768_v25  ;;  %v8591_v25 = vld [vmem:[%s10036_s2 + $0x168] sm:$0xff]   ;;  %v8592_v53 = vld [vmem:[%s10036_s2 + $0x160] sm:$0xff]   ;;  %v8593_v56 = vld [vmem:[%s10036_s2 + $0x158] sm:$0xff]  }
0x1d17   : > { %v8281_v61 = vpop.f32.mrf.mxu1  ;;  %8310 = vmatprep.mubr.msk.bf16.mxu0 %vm8759_vm3, %v8758_v4  ;;  %8307 = vmatpush3.bf16.msra.mxu0 %v8588_v41  ;;  %v8594_v41 = vld [vmem:[%s10037_s3 + $0x78] sm:$0xff]  }
0x1d18   : > { %v4816_v62 = vpack.c.bf16 %v4667_v46, %v4667_v46  ;;  %8308 = vmatprep.subr.bf16.mxu0 %v8758_v4  ;;  %v4894_v46 = vld [vmem:[%s10038_s4 + $0x10] sm:$0x1] }
0x1d19   : > { %v4895_v61 = vunpack.c.l.bf16 %v4894_v46 }
0x1d1a   : > { %8303 = vmatmul.mubr.msk.bf16.vlgmr.msra.gmra.mxu1 %vm517_vm4, %v4816_v62 }
0x1d1b   : > { %8322 = vmatprep.mubr.msk.bf16.mxu1 %vm8759_vm3, %v8758_v4  ;;  %8315 = vmatpush3.bf16.msra.mxu1 %v8590_v24  ;;  %v4900_v62 = vrot.slane %v4895_v61, %v8863_v21  ;;  %v9677_v24 = vld [vmem:[%s10038_s4 + $0x10] sm:$0x4] }
0x1d1c   : > { %8316 = vmatprep.subr.bf16.mxu1 %v8758_v4 }
0x1d1f   : > { %8317 = vmatpush3.bf16.msra.mxu1 %v8591_v25  ;;  %v5076_v25 = vunpack.c.l.bf16 %v9677_v24  ;;  %v6034_v24 = vld [vmem:[%s10038_s4 + $0x14] sm:$0x1] }
0x1d20   : > { %8318 = vmatprep.subr.bf16.mxu1 %v8758_v4 }
0x1d23   : > { %8319 = vmatpush3.bf16.msra.mxu1 %v8592_v53  ;;  %v5081_v53 = vrot.slane %v5076_v25, %v8915_v59 }
0x1d24   : > { %8320 = vmatprep.subr.bf16.mxu1 %v8758_v4 }
0x1d27   : > { %8321 = vmatpush3.bf16.msra.mxu1 %v8593_v56 }
0x1d28   : > { %8339 = vmatprep.subr.mxu1 %v8758_v4 }
0x1d60   : > { %v4709_v0 = vpop.f32.mrf.mxu0 }
0x1d61   : > { %v4719_v9 = vadd.f32 %v4718_v6, %v4709_v0 }
0x1d62   : > { %v8286_v1 = vpop.f32.mrf.mxu0 }
0x1d64   : > { %v4712_v54 = vpop.f32.mrf.mxu0 }
0x1d66   : > { %v8287_v3 = vpop.f32.mrf.mxu0 }
0x1dd2   : > { %v4761_v7 = vpop.f32.mrf.mxu1 }
0x1dd3   : > { %v4767_v12 = vadd.f32 %v4761_v7, %v4719_v9 }
0x1dd4   : > { %v8292_v8 = vpop.f32.mrf.mxu1 }
0x1dd6   : > { %v4764_v10 = vpop.f32.mrf.mxu1  ;;  %v4809_v33 = vpop.f32.mrf.mxu0 }
0x1dd7   : > { %v4815_v15 = vadd.f32 %v4809_v33, %v4767_v12 }
0x1dd8   : > { %v8293_v2 = vpop.f32.mrf.mxu1  ;;  %v8298_v14 = vpop.f32.mrf.mxu0 }
0x1dda   : > { %v4812_v16 = vpop.f32.mrf.mxu0  ;;  %v4857_v17 = vpop.f32.mrf.mxu1 }
0x1ddb   : > { %v4863_v18 = vadd.f32 %v4857_v17, %v4815_v15  ;;  %v4977_v17 = vrot.slane %v4895_v61, %v8866_v23 }
0x1ddc   : > { %v8299_v26 = vpop.f32.mrf.mxu0  ;;  %v8304_v27 = vpop.f32.mrf.mxu1 }
0x1ddd   : > { %v4864_v28 = vadd.f32 %v4863_v18, %v9512_v5  ;;  %v8589_v5 = vld [vmem:[%s10037_s3 + $0x60] sm:$0xff]  }
0x1dde   : > { %v4860_v29 = vpop.f32.mrf.mxu1  ;;  %8309 = vmatpush3.bf16.msra.mxu0 %v8589_v5  ;;  %v8595_v5 = vld [vmem:[%s10037_s3 + $0x70] sm:$0xff]  }
0x1ddf   : > { %v4867_v37 = vsel %vm413_vm2, %v4864_v28, 0.0  ;;  %8326 = vmatprep.subr.bf16.mxu0 %v8758_v4 }
0x1de0   : > { %4868 = vadd.xlane.f32.xlu1 %v4867_v37  ;;  %v8305_v38 = vpop.f32.mrf.mxu1 }
0x1e69   : > { %v4869_v30 = vpop.xlane.xlu1 %4868 }
0x1e6a   : > { %v4870_v34 = vmul.f32 0.03125, %v4869_v30 }
0x1e6c   : > { %v4871_v35 = vsub.f32 %v4864_v28, %v4870_v34 }
0x1e6e   : > { %v4872_v39 = vmul.f32 %v4871_v35, %v4871_v35 }
0x1e70   : > { %v4873_v40 = vsel %vm413_vm2, %v4872_v39, 0.0 }
0x1e71   : > { %4874 = vadd.xlane.f32.xlu0 %v4873_v40 }
0x1efa   : > { %v4875_v42 = vpop.xlane.xlu0 %4874 }
0x1efb   : > { %v4876_v36 = vmul.f32 0.03125, %v4875_v42 }
0x1efd   : > { %v4877_v43 = vadd.f32 1e-12, %v4876_v36 }
0x1eff   : > { %8690 = vrsqrt.f32 %v4877_v43 }
0x1f0c   : > { %v8691_v51 = vpop.eup %8690 }
0x1f0d   : > { %v4879_v31 = vmul.f32 %v8691_v51, %v4871_v35 }
0x1f0f   : > { %v4884_v52 = vmul.f32 %v4883_v50, %v4879_v31  ;;  %v5064_v50 = vrot.slane %v5047_v47, %v8898_v48 }
0x1f11   : > { %v4889_v57 = vadd.f32 %v4888_v32, %v4884_v52  ;;  %v5069_v32 = vrot.slane %v5047_v47, %v8901_v49 }
0x1f13   : > { %v4896_v55 = vpack.c.bf16 %v4889_v57, %v4889_v57 }
0x1f15   : > { %8311 = vmatmul.mubr.msk.bf16.vlgmr.msra.gmra.mxu0 %vm413_vm2, %v4896_v55 }
0x1f16   : > { %8330 = vmatprep.mubr.msk.bf16.mxu0 %vm8759_vm3, %v8758_v4  ;;  %8327 = vmatpush3.bf16.msra.mxu0 %v8594_v41 }
0x1f17   : > { %8328 = vmatprep.subr.bf16.mxu0 %v8758_v4 }
0x1f1a   : > { %8329 = vmatpush3.bf16.msra.mxu0 %v8595_v5 }
0x1f1b   : > { %8334 = vmatprep.subr.mxu0 %v8758_v4 }
0x1fd5   : > { %v4950_v0 = vpop.f32.mrf.mxu0 }
0x1fd6   : > { %v4951_v1 = vadd.f32 %v4950_v0, %v4900_v62 }
0x1fd7   : > { %v8312_v54 = vpop.f32.mrf.mxu0 }
0x1fd8   : > { %v4956_v3 = vmul.f32 %v4951_v1, %v4951_v1 }
0x1fd9   : > { %v4953_v6 = vpop.f32.mrf.mxu0 }
0x1fda   : > { %v4957_v7 = vmul.f32 %v4956_v3, %v4951_v1 }
0x1fdb   : > { %v8313_v8 = vpop.f32.mrf.mxu0 }
0x1fdc   : > { %v4958_v9 = vmul.f32 0.044715, %v4957_v7 }
0x1fde   : > { %v4959_v10 = vadd.f32 %v4958_v9, %v4951_v1 }
0x1fe0   : > { %v4960_v33 = vmul.f32 0.7978846, %v4959_v10 }
0x1fe2   : > { %8692 = vtanh.f32 %v4960_v33 }
0x1fef   : > { %v8693_v12 = vpop.eup %8692 }
0x1ff0   : > { %v4962_v2 = vadd.f32 1.0, %v8693_v12 }
0x1ff2   : > { %v4963_v14 = vmul.f32 0.5, %v4962_v2 }
0x1ff4   : > { %v4964_v15 = vmul.f32 %v4963_v14, %v4951_v1 }
0x1ff6   : > { %v4973_v16 = vpack.c.bf16 %v4964_v15, %v4964_v15 }
0x1ff8   : > { %8323 = vmatmul.mubr.msk.bf16.vlgmr.msra.gmra.mxu1 %vm350_vm0, %v4973_v16 }
0x1ff9   : > { %8341 = vmatprep.mubr.msk.f32.mxu1 %vm8759_vm3, %v8758_v4 }
0x20b8   : > { %v5039_v18 = vpop.f32.mrf.mxu1 }
0x20b9   : > { %v5040_v26 = vadd.f32 %v5039_v18, %v4977_v17 }
0x20ba   : > { %v8324_v27 = vpop.f32.mrf.mxu1 }
0x20bb   : > { %v5045_v28 = vadd.f32 %v5040_v26, %v4889_v57 }
0x20bc   : > { %v5042_v29 = vpop.f32.mrf.mxu1 }
0x20bd   : > { %v5048_v37 = vsel %vm413_vm2, %v5045_v28, 0.0 }
0x20be   : > { %5049 = vadd.xlane.f32.xlu1 %v5048_v37  ;;  %v8325_v38 = vpop.f32.mrf.mxu1 }
0x2147   : > { %v5050_v30 = vpop.xlane.xlu1 %5049 }
0x2148   : > { %v5051_v34 = vmul.f32 0.03125, %v5050_v30 }
0x214a   : > { %v5052_v35 = vsub.f32 %v5045_v28, %v5051_v34 }
0x214c   : > { %v5053_v39 = vmul.f32 %v5052_v35, %v5052_v35 }
0x214e   : > { %v5054_v40 = vsel %vm413_vm2, %v5053_v39, 0.0 }
0x214f   : > { %5055 = vadd.xlane.f32.xlu0 %v5054_v40 }
0x21d8   : > { %v5056_v42 = vpop.xlane.xlu0 %5055 }
0x21d9   : > { %v5057_v36 = vmul.f32 0.03125, %v5056_v42 }
0x21db   : > { %v5058_v43 = vadd.f32 1e-12, %v5057_v36 }
0x21dd   : > { %8694 = vrsqrt.f32 %v5058_v43 }
0x21ea   : > { %v8695_v51 = vpop.eup %8694 }
0x21eb   : > { %v5060_v31 = vmul.f32 %v8695_v51, %v5052_v35 }
0x21ed   : > { %v5065_v52 = vmul.f32 %v5064_v50, %v5060_v31 }
0x21ef   : > { %v9667_v57 = vadd.f32 %v5069_v32, %v5065_v52 }
0x21f1   : > { %v5077_v55 = vpack.c.bf16 %v9667_v57, %v9667_v57 }
0x21f3   : > { %8331 = vmatmul.mubr.msk.bf16.vlgmr.msra.gmra.mxu0 %vm413_vm2, %v5077_v55 }
0x21f4   : > { %8336 = vmatprep.mubr.msk.f32.mxu0 %vm8759_vm3, %v8758_v4 }
0x22b3   : > { %v5131_v56 = vpop.f32.mrf.mxu0 }
0x22b4   : > { %v5132_v46 = vadd.f32 %v5131_v56, %v5081_v53 }
0x22b5   : > { %v8332_v61 = vpop.f32.mrf.mxu0 }
0x22b6   : > { %5144 = vrot.lane.b32.xlu0 %v5132_v46, %s8762_s15  ;;  %5142 = vrot.lane.b32.xlu1 %v5132_v46, %s8761_s14 }
0x22b7   : > { %v5134_v62 = vpop.f32.mrf.mxu0 }
0x22b9   : > { %v8333_v0 = vpop.f32.mrf.mxu0 }
0x22ba   : > { %5146 = vrot.lane.b32.xlu1 %v5132_v46, %s8760_s13 }
0x22be   : > { %5148 = vrot.lane.b32.xlu1 %v5132_v46, %s8763_s16 }
0x2328   : > { %v5145_v1 = vpop.permute.xlu0 %5144  ;;  %v5143_v54 = vpop.permute.xlu1 %5142 }
0x2329   : > { %5300 = vrot.lane.b32.xlu1 %v5145_v1, %s8763_s16  ;;  %5224 = vrot.lane.b32.xlu0 %v5143_v54, %s8763_s16 }
0x232c   : > { %v5147_v3 = vpop.permute.xlu1 %5146 }
0x232d   : > { %5376 = vrot.lane.b32.xlu0 %v5147_v3, %s8763_s16 }
0x2330   : > { %v5149_v6 = vpop.permute.xlu1 %5148 }
0x2331   : > { %8335 = vmatpush3.xpose.msk.msra.mxu0 %vm517_vm4, %v5149_v6 }
0x2332   : > { %8344 = vmatprep.subr.mxu0 %v8758_v4 }
0x2334   : > { %8337 = vmatmul.mubr.msk.f32.vlgmr.msra.gmra.mxu0 %vm517_vm4, %v5132_v46 }
0x2335   : > { %8346 = vmatprep.mubr.msk.f32.mxu0 %vm8759_vm3, %v8758_v4 }
0x239b   : > { %v5225_v7 = vpop.permute.xlu0 %5224  ;;  %v5301_v8 = vpop.permute.xlu1 %5300 }
0x239c   : > { %8340 = vmatpush3.xpose.msk.msra.mxu1 %vm517_vm4, %v5225_v7  ;;  %8345 = vmatpush3.xpose.msk.msra.mxu0 %vm517_vm4, %v5301_v8  ;;  %v5137_v7 = vld [vmem:[%s10036_s2 + $0x178] sm:$0xf] }
0x239d   : > { %8349 = vmatprep.subr.mxu1 %v8758_v4  ;;  %8354 = vmatprep.subr.mxu0 %v8758_v4  ;;  %v5813_v8 = vsel %vm1180_vm6, %v5137_v7, 0 }
0x239f   : > { %8342 = vmatmul.mubr.msk.f32.vlgmr.msra.gmra.mxu1 %vm517_vm4, %v5143_v54  ;;  %v5377_v9 = vpop.permute.xlu0 %5376  ;;  %8347 = vmatmul.mubr.msk.f32.vlgmr.msra.gmra.mxu0 %vm517_vm4, %v5145_v1 }
0x23a0   : > { %8350 = vmatpush3.xpose.msk.msra.mxu1 %vm517_vm4, %v5377_v9  ;;  %8351 = vmatprep.mubr.msk.f32.mxu1 %vm8759_vm3, %v8758_v4  ;;  %v5138_v9 = vld [vmem:[%s10036_s2 + $0x17c] sm:$0xf] }
0x23a1   : > { %8359 = vmatprep.subr.mxu1 %v8758_v4  ;;  %8356 = vmatprep.mubr.msk.f32.mxu0 %vm8759_vm3, %v8758_v4 }
0x23a3   : > { %8352 = vmatmul.mubr.msk.f32.vlgmr.msra.gmra.mxu1 %vm517_vm4, %v5147_v3 }
0x23a4   : > { %8361 = vmatprep.mubr.msk.f32.mxu1 %vm8759_vm3, %v8758_v4 }
0x23f4   : > { %v5220_v10 = vpop.f32.mrf.mxu0 }
0x23f5   : > { %v5452_v33 = vmul.f32 0.35355338, %v5220_v10  ;;  %v5865_v10 = vsel %vm1180_vm6, %v5138_v9, 0 }
0x23f6   : > { %v8338_v12 = vpop.f32.mrf.mxu0 }
0x23f7   : > { %v5456_v2 = vadd.f32 %v5452_v33, %v9382_v63 }
0x23f9   : > { %v5460_v14 = vsel %vm517_vm4, %v5456_v2, -inf }
0x23fa   : > { %5461 = vmax.xlane.f32.xlu1 %v5460_v14 }
0x240b   : > { %5576 = vrot.lane.b32.xlu1 %v5143_v54, %s8764_s17 }
0x245f   : > { %v5296_v15 = vpop.f32.mrf.mxu1  ;;  %v5372_v16 = vpop.f32.mrf.mxu0 }
0x2460   : > { %v5453_v17 = vmul.f32 0.35355338, %v5296_v15  ;;  %v5454_v5 = vmul.f32 0.35355338, %v5372_v16  ;;  %v5139_v15 = vld [vmem:[%s10036_s2 + $0x180] sm:$0xf] }
0x2461   : > { %v8343_v18 = vpop.f32.mrf.mxu1  ;;  %v8348_v26 = vpop.f32.mrf.mxu0 }
0x2462   : > { %v5457_v27 = vadd.f32 %v5453_v17, %v9382_v63  ;;  %v5458_v42 = vadd.f32 %v5454_v5, %v9382_v63  ;;  %v5913_v26 = vsel %vm1180_vm6, %v5139_v15, 0 }
0x2463   : > { %v5448_v28 = vpop.f32.mrf.mxu1 }
0x2464   : > { %v5455_v29 = vmul.f32 0.35355338, %v5448_v28  ;;  %v5463_v37 = vsel %vm517_vm4, %v5457_v27, -inf  ;;  %v5466_v36 = vsel %vm517_vm4, %v5458_v42, -inf }
0x2465   : > { %5464 = vmax.xlane.f32.xlu0 %v5463_v37  ;;  %v8353_v38 = vpop.f32.mrf.mxu1 }
0x2466   : > { %v5459_v30 = vadd.f32 %v5455_v29, %v9382_v63  ;;  %v5140_v29 = vld [vmem:[%s10036_s2 + $0x184] sm:$0xf] }
0x2468   : > { %v5469_v34 = vsel %vm517_vm4, %v5459_v30, -inf }
0x2469   : > { %5470 = vmax.xlane.f32.xlu1 %v5469_v34  ;;  %v5961_v34 = vsel %vm1180_vm6, %v5140_v29, 0 }
0x247a   : > { %5652 = vrot.lane.b32.xlu1 %v5145_v1, %s8764_s17 }
0x247b   : > { %5500 = vrot.lane.b32.xlu0 %v5132_v46, %s8764_s17 }
0x2483   : > { %v5462_v35 = vpop.xlane.xlu1 %5461 }
0x2484   : > { %v5472_v39 = vsub.f32 %v5456_v2, %v5462_v35 }
0x2486   : > { %v5476_v41 = vmul.f32 1.442695, %v5472_v39 }
0x2487   : > { %v5577_v40 = vpop.permute.xlu1 %5576 }
0x2488   : > { %8360 = vmatpush3.msra.mxu1 %v5577_v40  ;;  %8696 = vpow2.f32 %v5476_v41 }
0x2489   : > { %8369 = vmatprep.subr.mxu1 %v8758_v4 }
0x2495   : > { %v8697_v43 = vpop.eup %8696 }
0x2496   : > { %v5484_v44 = vsel %vm517_vm4, %v8697_v43, 0.0 }
0x249a   : > { %5467 = vmax.xlane.f32.xlu0 %v5466_v36  ;;  %v8596_v36 = vld [vmem:[%s10037_s3 + $0x88] sm:$0xff]  }
0x249e   : > { %5485 = vadd.xlane.f32.xlu1 %v5484_v44  ;;  %v8597_v44 = vld [vmem:[%s10037_s3 + $0x80] sm:$0xff]  }
0x24b0   : > { %5728 = vrot.lane.b32.xlu0 %v5147_v3, %s8764_s17 }
0x24ee   : > { %v5465_v47 = vpop.xlane.xlu0 %5464 }
0x24ef   : > { %v5473_v50 = vsub.f32 %v5457_v27, %v5465_v47 }
0x24f1   : > { %v5478_v51 = vmul.f32 1.442695, %v5473_v50 }
0x24f2   : > { %v5501_v31 = vpop.permute.xlu0 %5500  ;;  %v5471_v32 = vpop.xlane.xlu1 %5470 }
0x24f3   : > { %8698 = vpow2.f32 %v5478_v51  ;;  %v5475_v52 = vsub.f32 %v5459_v30, %v5471_v32  ;;  %8355 = vmatpush3.msra.mxu0 %v5501_v31 }
0x24f4   : > { %8357 = vmatmul.mubr.msk.f32.vlgmr.msra.gmra.mxu0 %vm517_vm4, %v8697_v43  ;;  %8364 = vmatprep.subr.mxu0 %v8758_v4 }
0x24f5   : > { %v5482_v63 = vmul.f32 1.442695, %v5475_v52  ;;  %8366 = vmatprep.mubr.msk.f32.mxu0 %vm8759_vm3, %v8758_v4 }
0x24f6   : > { %v5653_v55 = vpop.permute.xlu1 %5652 }
0x24f7   : > { %8700 = vpow2.f32 %v5482_v63  ;;  %8365 = vmatpush3.msra.mxu0 %v5653_v55 }
0x24f8   : > { %8374 = vmatprep.subr.bf16.mxu0 %v8758_v4 }
0x2500   : > { %v8699_v53 = vpop.eup %8698 }
0x2501   : > { %8362 = vmatmul.mubr.msk.f32.vlgmr.msra.gmra.mxu1 %vm517_vm4, %v8699_v53  ;;  %v5487_v56 = vsel %vm517_vm4, %v8699_v53, 0.0 }
0x2502   : > { %5488 = vadd.xlane.f32.xlu0 %v5487_v56  ;;  %8371 = vmatprep.mubr.msk.f32.mxu1 %vm8759_vm3, %v8758_v4 }
0x2504   : > { %v8701_v46 = vpop.eup %8700 }
0x2505   : > { %v5493_v61 = vsel %vm517_vm4, %v8701_v46, 0.0 }
0x2506   : > { %5494 = vadd.xlane.f32.xlu1 %v5493_v61 }
0x2523   : > { %v5468_v62 = vpop.xlane.xlu0 %5467 }
0x2524   : > { %v5474_v0 = vsub.f32 %v5458_v42, %v5468_v62 }
0x2526   : > { %v5480_v1 = vmul.f32 1.442695, %v5474_v0 }
0x2527   : > { %v5729_v54 = vpop.permute.xlu0 %5728  ;;  %v5486_v33 = vpop.xlane.xlu1 %5485 }
0x2528   : > { %8702 = vpow2.f32 %v5480_v1  ;;  %8370 = vmatpush3.msra.mxu1 %v5729_v54  ;;  %v5858_v54 = vrot.slane %v5076_v25, %v9019_v45  ;;  %v6035_v25 = vunpack.c.l.bf16 %v6034_v24 }
0x2529   : > { %8372 = vmatmul.mubr.msk.f32.vlgmr.msra.gmra.mxu1 %vm517_vm4, %v8701_v46  ;;  %8380 = vmatprep.subr.bf16.mxu1 %v8758_v4  ;;  %8704 = vrcp.f32 %v5486_v33 }
0x252a   : > { %8382 = vmatprep.mubr.msk.bf16.mxu1 %vm8759_vm3, %v8758_v4  ;;  %8381 = vmatpush3.bf16.msra.mxu1 %v5865_v10 }
0x252b   : > { %8392 = vmatprep.subr.bf16.mxu1 %v8758_v4 }
0x2535   : > { %v8703_v3 = vpop.eup %8702 }
0x2536   : > { %8367 = vmatmul.mubr.msk.f32.vlgmr.msra.gmra.mxu0 %vm517_vm4, %v8703_v3  ;;  %v5490_v6 = vsel %vm517_vm4, %v8703_v3, 0.0  ;;  %v8705_v2 = vpop.eup %8704 }
0x2537   : > { %5491 = vadd.xlane.f32.xlu0 %v5490_v6  ;;  %8376 = vmatprep.mubr.msk.bf16.mxu0 %vm8759_vm3, %v8758_v4 }
0x2538   : > { %8375 = vmatpush3.bf16.msra.mxu0 %v5813_v8 }
0x2539   : > { %8386 = vmatprep.subr.bf16.mxu0 %v8758_v4 }
0x258b   : > { %v5489_v12 = vpop.xlane.xlu0 %5488 }
0x258c   : > { %8706 = vrcp.f32 %v5489_v12 }
0x258f   : > { %v5495_v35 = vpop.xlane.xlu1 %5494 }
0x2590   : > { %8708 = vrcp.f32 %v5495_v35  ;;  %v8598_v35 = vld [vmem:[%s10036_s2 + $0x190] sm:$0xff]  }
0x2599   : > { %v8707_v27 = vpop.eup %8706 }
0x259d   : > { %v8709_v40 = vpop.eup %8708 }
0x25b4   : > { %v5572_v14 = vpop.f32.mrf.mxu0 }
0x25b5   : > { %v5804_v16 = vmul.f32 %v8705_v2, %v5572_v14 }
0x25b6   : > { %v8358_v17 = vpop.f32.mrf.mxu0 }
0x25b7   : > { %v5808_v18 = vpack.c.bf16 %v5804_v16, %v5804_v16 }
0x25b9   : > { %8377 = vmatmul.mubr.msk.bf16.vlgmr.msra.gmra.mxu0 %vm517_vm4, %v5808_v18 }
0x25ba   : > { %8387 = vmatpush3.bf16.msra.mxu0 %v5913_v26  ;;  %8388 = vmatprep.mubr.msk.bf16.mxu0 %vm8759_vm3, %v8758_v4 }
0x25bb   : > { %8398 = vmatprep.subr.bf16.mxu0 %v8758_v4 }
0x25c0   : > { %v5492_v39 = vpop.xlane.xlu0 %5491 }
0x25c1   : > { %v5648_v28 = vpop.f32.mrf.mxu1  ;;  %8710 = vrcp.f32 %v5492_v39  ;;  %v8599_v39 = vld [vmem:[%s10036_s2 + $0x188] sm:$0xff]  }
0x25c2   : > { %v5805_v37 = vmul.f32 %v8707_v27, %v5648_v28  ;;  %v6103_v27 = vrot.slane %v6035_v25, %v8866_v23 }
0x25c3   : > { %v8363_v38 = vpop.f32.mrf.mxu1 }
0x25c4   : > { %v5860_v30 = vpack.c.bf16 %v5805_v37, %v5805_v37 }
0x25c6   : > { %8383 = vmatmul.mubr.msk.bf16.vlgmr.msra.gmra.mxu1 %vm517_vm4, %v5860_v30 }
0x25c7   : > { %8393 = vmatpush3.bf16.msra.mxu1 %v5961_v34  ;;  %8394 = vmatprep.mubr.msk.bf16.mxu1 %vm8759_vm3, %v8758_v4 }
0x25c8   : > { %8406 = vmatprep.subr.bf16.mxu1 %v8758_v4 }
0x25ce   : > { %v8711_v47 = vpop.eup %8710 }
0x25e9   : > { %v5800_v41 = vpop.f32.mrf.mxu1 }
0x25ea   : > { %v5807_v5 = vmul.f32 %v8709_v40, %v5800_v41 }
0x25eb   : > { %v8373_v42 = vpop.f32.mrf.mxu1 }
0x25ec   : > { %v5956_v43 = vpack.c.bf16 %v5807_v5, %v5807_v5  ;;  %v6005_v42 = vld [vmem:[%s10038_s4 + $0x10] sm:$0x8] }
0x25ee   : > { %8395 = vmatmul.mubr.msk.bf16.vlgmr.msra.gmra.mxu1 %vm517_vm4, %v5956_v43 }
0x25ef   : > { %8407 = vmatpush3.bf16.msra.mxu1 %v8596_v36  ;;  %8410 = vmatprep.mubr.msk.bf16.mxu1 %vm8759_vm3, %v8758_v4  ;;  %v6006_v36 = vunpack.c.l.bf16 %v6005_v42 }
0x25f0   : > { %8408 = vmatprep.subr.bf16.mxu1 %v8758_v4 }
0x25f1   : > { %v6023_v43 = vrot.slane %v6006_v36, %v9043_v20 }
0x25f3   : > { %8409 = vmatpush3.bf16.msra.mxu1 %v8597_v44 }
0x25f4   : > { %8419 = vmatprep.subr.mxu1 %v8758_v4 }
0x25f6   : > { %v5724_v50 = vpop.f32.mrf.mxu0  ;;  %8411 = vmatmul.mubr.msk.bf16.vlgmr.msra.gmra.mxu1 %vm413_vm2, %v9466_v58 }
0x25f7   : > { %v5806_v51 = vmul.f32 %v8711_v47, %v5724_v50  ;;  %8421 = vmatprep.mubr.msk.f32.mxu1 %vm8759_vm3, %v8758_v4  ;;  %v6028_v50 = vrot.slane %v6006_v36, %v9046_v22 }
0x25f8   : > { %v8368_v31 = vpop.f32.mrf.mxu0 }
0x25f9   : > { %v5908_v32 = vpack.c.bf16 %v5806_v51, %v5806_v51 }
0x25fb   : > { %8389 = vmatmul.mubr.msk.bf16.vlgmr.msra.gmra.mxu0 %vm517_vm4, %v5908_v32 }
0x25fc   : > { %8402 = vmatprep.mubr.msk.bf16.mxu0 %vm8759_vm3, %v8758_v4  ;;  %8399 = vmatpush3.bf16.msra.mxu0 %v8598_v35 }
0x25fd   : > { %8400 = vmatprep.subr.bf16.mxu0 %v8758_v4 }
0x2600   : > { %8401 = vmatpush3.bf16.msra.mxu0 %v8599_v39 }
0x2601   : > { %8414 = vmatprep.subr.mxu0 %v8758_v4 }
0x2679   : > { %v5849_v52 = vpop.f32.mrf.mxu0 }
0x267a   : > { %v5859_v7 = vadd.f32 %v5858_v54, %v5849_v52  ;;  %v6040_v52 = vrot.slane %v6035_v25, %v8863_v21 }
0x267b   : > { %v8378_v63 = vpop.f32.mrf.mxu0 }
0x267d   : > { %v5852_v55 = vpop.f32.mrf.mxu0 }
0x267f   : > { %v8379_v53 = vpop.f32.mrf.mxu0 }
0x2686   : > { %v5901_v56 = vpop.f32.mrf.mxu1 }
0x2687   : > { %v5907_v9 = vadd.f32 %v5901_v56, %v5859_v7 }
0x2688   : > { %v8384_v46 = vpop.f32.mrf.mxu1 }
0x268a   : > { %v5904_v61 = vpop.f32.mrf.mxu1 }
0x268c   : > { %v8385_v62 = vpop.f32.mrf.mxu1 }
0x26ae   : > { %v5997_v58 = vpop.f32.mrf.mxu1 }
0x26b0   : > { %v8396_v0 = vpop.f32.mrf.mxu1 }
0x26b2   : > { %v6000_v1 = vpop.f32.mrf.mxu1 }
0x26b4   : > { %v8397_v3 = vpop.f32.mrf.mxu1 }
0x26b6   : > { %v6150_v6 = vpop.f32.mrf.mxu1 }
0x26b7   : > { %v9795_v28 = vadd.f32 %v6150_v6, %v6103_v27 }
0x26b8   : > { %v8412_v8 = vpop.f32.mrf.mxu1 }
0x26ba   : > { %v6153_v10 = vpop.f32.mrf.mxu1 }
0x26bb   : > { %v5949_v33 = vpop.f32.mrf.mxu0 }
0x26bc   : > { %v5955_v12 = vadd.f32 %v5949_v33, %v5907_v9  ;;  %v8413_v2 = vpop.f32.mrf.mxu1 }
0x26bd   : > { %v8390_v14 = vpop.f32.mrf.mxu0 }
0x26be   : > { %v6003_v15 = vadd.f32 %v5997_v58, %v5955_v12 }
0x26bf   : > { %v5952_v16 = vpop.f32.mrf.mxu0 }
0x26c0   : > { %v6004_v17 = vadd.f32 %v6003_v15, %v9667_v57 }
0x26c1   : > { %v8391_v18 = vpop.f32.mrf.mxu0 }
0x26c2   : > { %v6007_v26 = vsel %vm413_vm2, %v6004_v17, 0.0 }
0x26c3   : > { %6008 = vadd.xlane.f32.xlu0 %v6007_v26 }
0x26d9   : > { %6170 = vrot.lane.b32.xlu0 %v9795_v28, %s8761_s14 }
0x26dd   : > { %6174 = vrot.lane.b32.xlu0 %v9795_v28, %s8760_s13 }
0x274c   : > { %v6009_v57 = vpop.xlane.xlu0 %6008 }
0x274d   : > { %v6010_v29 = vmul.f32 0.03125, %v6009_v57 }
0x274f   : > { %v6011_v37 = vsub.f32 %v6004_v17, %v6010_v29 }
0x2750   : > { %v6171_v38 = vpop.permute.xlu0 %6170 }
0x2751   : > { %8420 = vmatpush3.xpose.msk.msra.mxu1 %vm517_vm4, %v6171_v38  ;;  %v6012_v30 = vmul.f32 %v6011_v37, %v6011_v37 }
0x2752   : > { %8429 = vmatprep.subr.mxu1 %v8758_v4 }
0x2753   : > { %v6013_v34 = vsel %vm413_vm2, %v6012_v30, 0.0 }
0x2754   : > { %6014 = vadd.xlane.f32.xlu1 %v6013_v34  ;;  %v6175_v61 = vpop.permute.xlu0 %6174 }
0x27dd   : > { %v6015_v40 = vpop.xlane.xlu1 %6014 }
0x27de   : > { %v6016_v41 = vmul.f32 0.03125, %v6015_v40 }
0x27e0   : > { %v6017_v5 = vadd.f32 1e-12, %v6016_v41 }
0x27e2   : > { %8712 = vrsqrt.f32 %v6017_v5 }
0x27ef   : > { %v8713_v44 = vpop.eup %8712 }
0x27f0   : > { %v6019_v47 = vmul.f32 %v8713_v44, %v6011_v37 }
0x27f2   : > { %v6024_v51 = vmul.f32 %v6023_v43, %v6019_v47 }
0x27f4   : > { %v9817_v31 = vadd.f32 %v6028_v50, %v6024_v51 }
0x27f6   : > { %v6036_v32 = vpack.c.bf16 %v9817_v31, %v9817_v31 }
0x27f8   : > { %8403 = vmatmul.mubr.msk.bf16.vlgmr.msra.gmra.mxu0 %vm413_vm2, %v6036_v32 }
0x27f9   : > { %8415 = vmatpush3.xpose.msk.msra.mxu0 %vm517_vm4, %v9795_v28  ;;  %8416 = vmatprep.mubr.msk.f32.mxu0 %vm8759_vm3, %v8758_v4 }
0x27fa   : > { %8424 = vmatprep.subr.mxu0 %v8758_v4 }
0x28b8   : > { %v6090_v63 = vpop.f32.mrf.mxu0 }
0x28b9   : > { %v6091_v55 = vadd.f32 %v6090_v63, %v6040_v52 }
0x28ba   : > { %v8404_v53 = vpop.f32.mrf.mxu0 }
0x28bb   : > { %6163 = vrot.lane.b32.xlu1 %v6091_v55, %s8761_s14  ;;  %6167 = vrot.lane.b32.xlu0 %v6091_v55, %s8760_s13 }
0x28bc   : > { %8417 = vmatmul.mubr.msk.f32.vlgmr.msra.gmra.mxu0 %vm517_vm4, %v6091_v55  ;;  %v6093_v56 = vpop.f32.mrf.mxu0 }
0x28bd   : > { %8426 = vmatprep.mubr.msk.f32.mxu0 %vm8759_vm3, %v8758_v4  ;;  %v6156_v56 = vld [vmem:[%s10036_s2 + $0x198] sm:$0xf] }
0x28be   : > { %v8405_v46 = vpop.f32.mrf.mxu0 }
0x28bf   : > { %6172 = vrot.lane.b32.xlu1 %v9795_v28, %s8762_s15  ;;  %v6833_v46 = vsel %vm1180_vm6, %v6156_v56, 0 }
0x28c3   : > { %6165 = vrot.lane.b32.xlu1 %v6091_v55, %s8762_s15 }
0x292d   : > { %v6164_v62 = vpop.permute.xlu1 %6163  ;;  %v6168_v58 = vpop.permute.xlu0 %6167 }
0x292e   : > { %8422 = vmatmul.mubr.msk.f32.vlgmr.msra.gmra.mxu1 %vm517_vm4, %v6164_v62 }
0x292f   : > { %8430 = vmatpush3.xpose.msk.msra.mxu1 %vm517_vm4, %v6175_v61  ;;  %8431 = vmatprep.mubr.msk.f32.mxu1 %vm8759_vm3, %v8758_v4 }
0x2930   : > { %8439 = vmatprep.subr.mxu1 %v8758_v4 }
0x2931   : > { %v6173_v0 = vpop.permute.xlu1 %6172 }
0x2932   : > { %8425 = vmatpush3.xpose.msk.msra.mxu0 %vm517_vm4, %v6173_v0  ;;  %8432 = vmatmul.mubr.msk.f32.vlgmr.msra.gmra.mxu1 %vm517_vm4, %v6168_v58 }
0x2933   : > { %8434 = vmatprep.subr.mxu0 %v8758_v4  ;;  %8441 = vmatprep.mubr.msk.f32.mxu1 %vm8759_vm3, %v8758_v4 }
0x2935   : > { %v6166_v1 = vpop.permute.xlu1 %6165 }
0x2936   : > { %8427 = vmatmul.mubr.msk.f32.vlgmr.msra.gmra.mxu0 %vm517_vm4, %v6166_v1 }
0x2937   : > { %8436 = vmatprep.mubr.msk.f32.mxu0 %vm8759_vm3, %v8758_v4 }
0x297c   : > { %v6246_v54 = vpop.f32.mrf.mxu0 }
0x297d   : > { %v6472_v3 = vmul.f32 0.35355338, %v6246_v54 }
0x297e   : > { %v8418_v6 = vpop.f32.mrf.mxu0 }
0x297f   : > { %v6476_v7 = vadd.f32 %v6472_v3, %v8954_v13  ;;  %v6158_v3 = vld [vmem:[%s10036_s2 + $0x1a0] sm:$0xf] }
0x2981   : > { %v6480_v8 = vsel %vm517_vm4, %v6476_v7, -inf }
0x2982   : > { %6481 = vmax.xlane.f32.xlu1 %v6480_v8 }
0x2993   : > { %6596 = vrot.lane.b32.xlu1 %v6171_v38, %s8763_s16 }
0x29ee   : > { %v6320_v9 = vpop.f32.mrf.mxu1 }
0x29ef   : > { %v6473_v10 = vmul.f32 0.35355338, %v6320_v9  ;;  %v6933_v9 = vsel %vm1180_vm6, %v6158_v3, 0 }
0x29f0   : > { %v8423_v33 = vpop.f32.mrf.mxu1 }
0x29f1   : > { %v6477_v12 = vadd.f32 %v6473_v10, %v8954_v13 }
0x29f2   : > { %v6468_v2 = vpop.f32.mrf.mxu1 }
0x29f3   : > { %v6475_v14 = vmul.f32 0.35355338, %v6468_v2  ;;  %v6483_v15 = vsel %vm517_vm4, %v6477_v12, -inf }
0x29f4   : > { %6484 = vmax.xlane.f32.xlu0 %v6483_v15  ;;  %v8433_v16 = vpop.f32.mrf.mxu1 }
0x29f5   : > { %v6479_v17 = vadd.f32 %v6475_v14, %v8954_v13 }
0x29f6   : > { %v6394_v18 = vpop.f32.mrf.mxu0 }
0x29f7   : > { %v6489_v26 = vsel %vm517_vm4, %v6479_v17, -inf  ;;  %v6474_v37 = vmul.f32 0.35355338, %v6394_v18 }
0x29f8   : > { %v8428_v24 = vpop.f32.mrf.mxu0  ;;  %6490 = vmax.xlane.f32.xlu1 %v6489_v26 }
0x29f9   : > { %v6478_v38 = vadd.f32 %v6474_v37, %v8954_v13 }
0x29fb   : > { %v6486_v30 = vsel %vm517_vm4, %v6478_v38, -inf }
0x2a09   : > { %6672 = vrot.lane.b32.xlu1 %v6173_v0, %s8763_s16 }
0x2a0a   : > { %6520 = vrot.lane.b32.xlu0 %v9795_v28, %s8763_s16 }
0x2a0b   : > { %v6482_v25 = vpop.xlane.xlu1 %6481 }
0x2a0c   : > { %v6492_v57 = vsub.f32 %v6476_v7, %v6482_v25 }
0x2a0e   : > { %v6496_v29 = vmul.f32 1.442695, %v6492_v57 }
0x2a0f   : > { %v6597_v27 = vpop.permute.xlu1 %6596 }
0x2a10   : > { %8440 = vmatpush3.msra.mxu1 %v6597_v27  ;;  %8714 = vpow2.f32 %v6496_v29 }
0x2a11   : > { %8449 = vmatprep.subr.mxu1 %v8758_v4 }
0x2a1d   : > { %v8715_v34 = vpop.eup %8714 }
0x2a1e   : > { %v6504_v35 = vsel %vm517_vm4, %v8715_v34, 0.0 }
0x2a29   : > { %6487 = vmax.xlane.f32.xlu0 %v6486_v30 }
0x2a2d   : > { %6505 = vadd.xlane.f32.xlu1 %v6504_v35 }
0x2a3f   : > { %6748 = vrot.lane.b32.xlu0 %v6175_v61, %s8763_s16  ;;  %v6157_v61 = vld [vmem:[%s10036_s2 + $0x19c] sm:$0xf] }
0x2a40   : > { %v6885_v62 = vsel %vm1180_vm6, %v6157_v61, 0 }
0x2a7d   : > { %v6485_v28 = vpop.xlane.xlu0 %6484 }
0x2a7e   : > { %v6493_v39 = vsub.f32 %v6477_v12, %v6485_v28  ;;  %v6159_v12 = vld [vmem:[%s10036_s2 + $0x1a4] sm:$0xf] }
0x2a7f   : > { %v6981_v16 = vsel %vm1180_vm6, %v6159_v12, 0  ;;  %v7025_v12 = vld [vmem:[%s10038_s4 + $0x14] sm:$0x2] }
0x2a80   : > { %v6498_v40 = vmul.f32 1.442695, %v6493_v39 }
0x2a81   : > { %v6521_v41 = vpop.permute.xlu0 %6520  ;;  %v6491_v5 = vpop.xlane.xlu1 %6490 }
0x2a82   : > { %8716 = vpow2.f32 %v6498_v40  ;;  %v6495_v42 = vsub.f32 %v6479_v17, %v6491_v5  ;;  %8435 = vmatpush3.msra.mxu0 %v6521_v41 }
0x2a83   : > { %8437 = vmatmul.mubr.msk.f32.vlgmr.msra.gmra.mxu0 %vm517_vm4, %v8715_v34  ;;  %8444 = vmatprep.subr.mxu0 %v8758_v4 }
0x2a84   : > { %v6502_v13 = vmul.f32 1.442695, %v6495_v42  ;;  %8446 = vmatprep.mubr.msk.f32.mxu0 %vm8759_vm3, %v8758_v4 }
0x2a85   : > { %v6673_v36 = vpop.permute.xlu1 %6672 }
0x2a86   : > { %8718 = vpow2.f32 %v6502_v13  ;;  %8445 = vmatpush3.msra.mxu0 %v6673_v36  ;;  %v6160_v36 = vld [vmem:[%s10038_s4 + $0x14] sm:$0x2] }
0x2a87   : > { %8454 = vmatprep.subr.bf16.mxu0 %v8758_v4 }
0x2a8f   : > { %v8717_v43 = vpop.eup %8716 }
0x2a90   : > { %8442 = vmatmul.mubr.msk.f32.vlgmr.msra.gmra.mxu1 %vm517_vm4, %v8717_v43  ;;  %v6507_v44 = vsel %vm517_vm4, %v8717_v43, 0.0 }
0x2a91   : > { %6508 = vadd.xlane.f32.xlu0 %v6507_v44  ;;  %8451 = vmatprep.mubr.msk.f32.mxu1 %vm8759_vm3, %v8758_v4  ;;  %v6161_v44 = vunpack.c.l.bf16 %v6160_v36 }
0x2a93   : > { %v8719_v47 = vpop.eup %8718 }
0x2a94   : > { %v6513_v50 = vsel %vm517_vm4, %v8719_v47, 0.0 }
0x2a95   : > { %6514 = vadd.xlane.f32.xlu1 %v6513_v50 }
0x2ab2   : > { %v6488_v51 = vpop.xlane.xlu0 %6487 }
0x2ab3   : > { %v6494_v32 = vsub.f32 %v6478_v38, %v6488_v51  ;;  %v6878_v51 = vrot.slane %v6161_v44, %v8898_v48 }
0x2ab5   : > { %v6500_v52 = vmul.f32 1.442695, %v6494_v32 }
0x2ab6   : > { %v6749_v63 = vpop.permute.xlu0 %6748  ;;  %v6506_v58 = vpop.xlane.xlu1 %6505 }
0x2ab7   : > { %8720 = vpow2.f32 %v6500_v52  ;;  %8450 = vmatpush3.msra.mxu1 %v6749_v63 }
0x2ab8   : > { %8452 = vmatmul.mubr.msk.f32.vlgmr.msra.gmra.mxu1 %vm517_vm4, %v8719_v47  ;;  %8460 = vmatprep.subr.bf16.mxu1 %v8758_v4  ;;  %8722 = vrcp.f32 %v6506_v58 }
0x2ab9   : > { %8462 = vmatprep.mubr.msk.bf16.mxu1 %vm8759_vm3, %v8758_v4  ;;  %8461 = vmatpush3.bf16.msra.mxu1 %v6885_v62 }
0x2aba   : > { %8472 = vmatprep.subr.bf16.mxu1 %v8758_v4 }
0x2ac4   : > { %v8721_v55 = vpop.eup %8720 }
0x2ac5   : > { %8447 = vmatmul.mubr.msk.f32.vlgmr.msra.gmra.mxu0 %vm517_vm4, %v8721_v55  ;;  %v6510_v53 = vsel %vm517_vm4, %v8721_v55, 0.0  ;;  %v8723_v1 = vpop.eup %8722 }
0x2ac6   : > { %6511 = vadd.xlane.f32.xlu0 %v6510_v53  ;;  %8456 = vmatprep.mubr.msk.bf16.mxu0 %vm8759_vm3, %v8758_v4 }
0x2ac7   : > { %8455 = vmatpush3.bf16.msra.mxu0 %v6833_v46 }
0x2ac8   : > { %8466 = vmatprep.subr.bf16.mxu0 %v8758_v4 }
0x2b1a   : > { %v6509_v0 = vpop.xlane.xlu0 %6508 }
0x2b1b   : > { %8724 = vrcp.f32 %v6509_v0 }
0x2b1e   : > { %v6515_v17 = vpop.xlane.xlu1 %6514 }
0x2b1f   : > { %8726 = vrcp.f32 %v6515_v17 }
0x2b28   : > { %v8725_v10 = vpop.eup %8724 }
0x2b2c   : > { %v8727_v26 = vpop.eup %8726 }
0x2b43   : > { %v6592_v54 = vpop.f32.mrf.mxu0 }
0x2b44   : > { %v6824_v6 = vmul.f32 %v8723_v1, %v6592_v54 }
0x2b45   : > { %v8438_v7 = vpop.f32.mrf.mxu0 }
0x2b46   : > { %v6828_v8 = vpack.c.bf16 %v6824_v6, %v6824_v6 }
0x2b48   : > { %8457 = vmatmul.mubr.msk.bf16.vlgmr.msra.gmra.mxu0 %vm517_vm4, %v6828_v8  ;;  %v8600_v8 = vld [vmem:[%s10037_s3 + $0x98] sm:$0xff]  }
0x2b49   : > { %8467 = vmatpush3.bf16.msra.mxu0 %v6933_v9  ;;  %8468 = vmatprep.mubr.msk.bf16.mxu0 %vm8759_vm3, %v8758_v4 }
0x2b4a   : > { %8478 = vmatprep.subr.bf16.mxu0 %v8758_v4 }
0x2b4f   : > { %v6512_v18 = vpop.xlane.xlu0 %6511 }
0x2b50   : > { %v6668_v33 = vpop.f32.mrf.mxu1  ;;  %8728 = vrcp.f32 %v6512_v18 }
0x2b51   : > { %v6825_v2 = vmul.f32 %v8725_v10, %v6668_v33 }
0x2b52   : > { %v8443_v14 = vpop.f32.mrf.mxu1 }
0x2b53   : > { %v6880_v15 = vpack.c.bf16 %v6825_v2, %v6825_v2  ;;  %v7027_v2 = vld [vmem:[%s10038_s4 + $0x14] sm:$0x4]  ;;  %v7026_v14 = vunpack.c.l.bf16 %v7025_v12 }
0x2b55   : > { %8463 = vmatmul.mubr.msk.bf16.vlgmr.msra.gmra.mxu1 %vm517_vm4, %v6880_v15  ;;  %v7028_v15 = vunpack.c.l.bf16 %v7027_v2 }
0x2b56   : > { %8473 = vmatpush3.bf16.msra.mxu1 %v6981_v16  ;;  %8474 = vmatprep.mubr.msk.bf16.mxu1 %vm8759_vm3, %v8758_v4  ;;  %v7045_v16 = vrot.slane %v7026_v14, %v8901_v49 }
0x2b57   : > { %8486 = vmatprep.subr.bf16.mxu1 %v8758_v4 }
0x2b5d   : > { %v8729_v29 = vpop.eup %8728 }
0x2b78   : > { %v6820_v24 = vpop.f32.mrf.mxu1 }
0x2b79   : > { %v6827_v25 = vmul.f32 %v8727_v26, %v6820_v24  ;;  %v7050_v26 = vrot.slane %v7028_v15, %v8915_v59 }
0x2b7a   : > { %v8453_v27 = vpop.f32.mrf.mxu1 }
0x2b7b   : > { %v6976_v57 = vpack.c.bf16 %v6827_v25, %v6827_v25 }
0x2b7d   : > { %8475 = vmatmul.mubr.msk.bf16.vlgmr.msra.gmra.mxu1 %vm517_vm4, %v6976_v57  ;;  %v8602_v57 = vld [vmem:[%s10036_s2 + $0x1c0] sm:$0xff]  }
0x2b7e   : > { %8494 = vmatprep.mubr.msk.bf16.mxu1 %vm8759_vm3, %v8758_v4  ;;  %8487 = vmatpush3.bf16.msra.mxu1 %v8602_v57 }
0x2b7f   : > { %8488 = vmatprep.subr.bf16.mxu1 %v8758_v4 }
0x2b85   : > { %v6744_v37 = vpop.f32.mrf.mxu0 }
0x2b86   : > { %v6826_v38 = vmul.f32 %v8729_v29, %v6744_v37  ;;  %v8603_v29 = vld [vmem:[%s10036_s2 + $0x1b8] sm:$0xff]   ;;  %v8604_v37 = vld [vmem:[%s10036_s2 + $0x1b0] sm:$0xff]  }
0x2b87   : > { %v8448_v30 = vpop.f32.mrf.mxu0  ;;  %8489 = vmatpush3.bf16.msra.mxu1 %v8603_v29 }
0x2b88   : > { %v6928_v34 = vpack.c.bf16 %v6826_v38, %v6826_v38  ;;  %8490 = vmatprep.subr.bf16.mxu1 %v8758_v4  ;;  %v8605_v38 = vld [vmem:[%s10036_s2 + $0x1a8] sm:$0xff]   ;;  %v7060_v30 = vrot.slane %v7028_v15, %v9019_v45  ;;  %v7133_v45 = vld [vmem:[%s10038_s4 + $0x14] sm:$0x8] }
0x2b8a   : > { %8469 = vmatmul.mubr.msk.bf16.vlgmr.msra.gmra.mxu0 %vm517_vm4, %v6928_v34 }
0x2b8b   : > { %8482 = vmatprep.mubr.msk.bf16.mxu0 %vm8759_vm3, %v8758_v4  ;;  %8479 = vmatpush3.bf16.msra.mxu0 %v8600_v8 }
0x2b8c   : > { %8480 = vmatprep.subr.bf16.mxu0 %v8758_v4  ;;  %8491 = vmatpush3.bf16.msra.mxu1 %v8604_v37 }
0x2b8d   : > { %8492 = vmatprep.subr.bf16.mxu1 %v8758_v4 }
0x2b90   : > { %8493 = vmatpush3.bf16.msra.mxu1 %v8605_v38 }
0x2c08   : > { %v6869_v35 = vpop.f32.mrf.mxu0 }
0x2c09   : > { %v6879_v52 = vadd.f32 %v6878_v51, %v6869_v35 }
0x2c0a   : > { %v8458_v28 = vpop.f32.mrf.mxu0 }
0x2c0c   : > { %v6872_v39 = vpop.f32.mrf.mxu0 }
0x2c0e   : > { %v8459_v40 = vpop.f32.mrf.mxu0 }
0x2c15   : > { %v6921_v41 = vpop.f32.mrf.mxu1 }
0x2c16   : > { %v6927_v63 = vadd.f32 %v6921_v41, %v6879_v52 }
0x2c17   : > { %v8464_v5 = vpop.f32.mrf.mxu1 }
0x2c19   : > { %v6924_v42 = vpop.f32.mrf.mxu1 }
0x2c1b   : > { %v8465_v13 = vpop.f32.mrf.mxu1 }
0x2c3d   : > { %v7017_v43 = vpop.f32.mrf.mxu1 }
0x2c3f   : > { %v8476_v47 = vpop.f32.mrf.mxu1 }
0x2c41   : > { %v7020_v50 = vpop.f32.mrf.mxu1 }
0x2c43   : > { %v8477_v32 = vpop.f32.mrf.mxu1 }
0x2c44   : > { %v7134_v32 = vunpack.c.l.bf16 %v7133_v45 }
0x2c46   : > { %v7139_v52 = vrot.slane %v7134_v32, %v9043_v20  ;;  %v8606_v20 = vld [vmem:[%s10036_s2 + $0x1d0] sm:$0xff]  }
0x2c4a   : > { %v6969_v55 = vpop.f32.mrf.mxu0 }
0x2c4b   : > { %v6975_v53 = vadd.f32 %v6969_v55, %v6927_v63 }
0x2c4c   : > { %v8470_v56 = vpop.f32.mrf.mxu0 }
0x2c4d   : > { %v7023_v46 = vadd.f32 %v7017_v43, %v6975_v53 }
0x2c4e   : > { %v6972_v61 = vpop.f32.mrf.mxu0 }
0x2c4f   : > { %v7024_v62 = vadd.f32 %v7023_v46, %v9817_v31  ;;  %v8601_v31 = vld [vmem:[%s10037_s3 + $0x90] sm:$0xff]  }
0x2c50   : > { %v8471_v58 = vpop.f32.mrf.mxu0  ;;  %8481 = vmatpush3.bf16.msra.mxu0 %v8601_v31 }
0x2c51   : > { %v7029_v0 = vsel %vm413_vm2, %v7024_v62, 0.0  ;;  %8498 = vmatprep.subr.bf16.mxu0 %v8758_v4 }
0x2c52   : > { %7030 = vadd.xlane.f32.xlu0 %v7029_v0 }
0x2cdb   : > { %v7031_v1 = vpop.xlane.xlu0 %7030 }
0x2cdc   : > { %v7032_v54 = vmul.f32 0.03125, %v7031_v1 }
0x2cde   : > { %v7033_v3 = vsub.f32 %v7024_v62, %v7032_v54 }
0x2ce0   : > { %v7034_v6 = vmul.f32 %v7033_v3, %v7033_v3 }
0x2ce2   : > { %v7035_v7 = vsel %vm413_vm2, %v7034_v6, 0.0  ;;  %v8607_v6 = vld [vmem:[%s10036_s2 + $0x1c8] sm:$0xff]  }
0x2ce3   : > { %7036 = vadd.xlane.f32.xlu1 %v7035_v7 }
0x2d6c   : > { %v7037_v9 = vpop.xlane.xlu1 %7036 }
0x2d6d   : > { %v7038_v10 = vmul.f32 0.03125, %v7037_v9  ;;  %v7208_v9 = vld [vmem:[%s10038_s4 + $0x18] sm:$0x1] }
0x2d6f   : > { %v7039_v33 = vadd.f32 1e-12, %v7038_v10  ;;  %v7209_v10 = vunpack.c.l.bf16 %v7208_v9 }
0x2d71   : > { %8730 = vrsqrt.f32 %v7039_v33  ;;  %v7226_v33 = vrot.slane %v7134_v32, %v9046_v22  ;;  %v7231_v14 = vrot.slane %v7209_v10, %v8863_v21  ;;  %v8765_v32 = vmov 1  }
0x2d72   : > { %8539 = vset.pattern.permute.xlu1 %v8765_v32 }
0x2d7e   : > { %v8731_v17 = vpop.eup %8730 }
0x2d7f   : > { %v7041_v18 = vmul.f32 %v8731_v17, %v7033_v3 }
0x2d81   : > { %v7046_v24 = vmul.f32 %v7045_v16, %v7041_v18  ;;  %v7241_v18 = vrot.slane %v7209_v10, %v8866_v23  ;;  %v8744_v23 = vld [vmem:[%s10036_s2 + $0x11c] sm:$0xff]  }
0x2d83   : > { %v7051_v25 = vadd.f32 %v7050_v26, %v7046_v24 }
0x2d85   : > { %v7056_v27 = vpack.c.bf16 %v7051_v25, %v7051_v25 }
0x2d87   : > { %8483 = vmatmul.mubr.msk.bf16.vlgmr.msra.gmra.mxu0 %vm413_vm2, %v7056_v27 }
0x2d88   : > { %8502 = vmatprep.mubr.msk.bf16.mxu0 %vm8759_vm3, %v8758_v4  ;;  %8499 = vmatpush3.bf16.msra.mxu0 %v8606_v20 }
0x2d89   : > { %8500 = vmatprep.subr.bf16.mxu0 %v8758_v4 }
0x2d8c   : > { %8501 = vmatpush3.bf16.msra.mxu0 %v8607_v6 }
0x2d8d   : > { %8506 = vmatprep.subr.bf16.mxu0 %v8758_v4 }
0x2e47   : > { %v7110_v34 = vpop.f32.mrf.mxu0 }
0x2e48   : > { %v7111_v35 = vadd.f32 %v7110_v34, %v7060_v30 }
0x2e49   : > { %v8484_v28 = vpop.f32.mrf.mxu0 }
0x2e4a   : > { %v7116_v39 = vmul.f32 %v7111_v35, %v7111_v35 }
0x2e4b   : > { %v7113_v40 = vpop.f32.mrf.mxu0 }
0x2e4c   : > { %v7117_v41 = vmul.f32 %v7116_v39, %v7111_v35  ;;  %v7351_v40 = vsel %vm413_vm2, %v8744_v23, 0 }
0x2e4d   : > { %v8485_v5 = vpop.f32.mrf.mxu0 }
0x2e4e   : > { %v7118_v42 = vmul.f32 0.044715, %v7117_v41 }
0x2e50   : > { %v7119_v13 = vadd.f32 %v7118_v42, %v7111_v35 }
0x2e52   : > { %v7120_v36 = vmul.f32 0.7978846, %v7119_v13 }
0x2e54   : > { %8732 = vtanh.f32 %v7120_v36 }
0x2e61   : > { %v8733_v43 = vpop.eup %8732 }
0x2e62   : > { %v7122_v44 = vadd.f32 1.0, %v8733_v43  ;;  %v8745_v43 = vld [vmem:[%s10036_s2 + $0x114] sm:$0xff]  }
0x2e64   : > { %v7123_v47 = vmul.f32 0.5, %v7122_v44  ;;  %v7348_v44 = vsel %vm413_vm2, %v8745_v43, 0 }
0x2e66   : > { %v7124_v50 = vmul.f32 %v7123_v47, %v7111_v35  ;;  %v8746_v47 = vld [vmem:[%s10036_s2 + $0x10c] sm:$0xff]  }
0x2e68   : > { %v7135_v51 = vpack.c.bf16 %v7124_v50, %v7124_v50  ;;  %v7345_v50 = vsel %vm413_vm2, %v8746_v47, 0 }
0x2e6a   : > { %8495 = vmatmul.mubr.msk.bf16.vlgmr.msra.gmra.mxu1 %vm350_vm0, %v7135_v51  ;;  %v8747_v51 = vld [vmem:[%s10036_s2 + $0x104] sm:$0xff]  }
0x2e6b   : > { %v7342_v45 = vsel %vm413_vm2, %v8747_v51, 0 }
0x2f2a   : > { %v7201_v63 = vpop.f32.mrf.mxu1 }
0x2f2b   : > { %v7202_v55 = vadd.f32 %v7201_v63, %v7139_v52 }
0x2f2c   : > { %v8496_v53 = vpop.f32.mrf.mxu1 }
0x2f2d   : > { %v7207_v56 = vadd.f32 %v7202_v55, %v7051_v25  ;;  %v7306_v53 = vld [vmem:[%s10038_s4 + $0x18] sm:$0x2] }
0x2f2e   : > { %v7204_v46 = vpop.f32.mrf.mxu1 }
0x2f2f   : > { %v7210_v61 = vsel %vm413_vm2, %v7207_v56, 0.0 }
0x2f30   : > { %7211 = vadd.xlane.f32.xlu0 %v7210_v61  ;;  %v8497_v62 = vpop.f32.mrf.mxu1 }
0x2fb9   : > { %v7212_v58 = vpop.xlane.xlu0 %7211 }
0x2fba   : > { %v7213_v0 = vmul.f32 0.03125, %v7212_v58 }
0x2fbc   : > { %v7214_v1 = vsub.f32 %v7207_v56, %v7213_v0  ;;  %v7307_v56 = vunpack.c.l.bf16 %v7306_v53 }
0x2fbe   : > { %v7215_v54 = vmul.f32 %v7214_v1, %v7214_v1  ;;  %v7324_v46 = vrot.slane %v7307_v56, %v8898_v48  ;;  %v7329_v58 = vrot.slane %v7307_v56, %v8901_v49 }
0x2fc0   : > { %v7216_v3 = vsel %vm413_vm2, %v7215_v54, 0.0 }
0x2fc1   : > { %7217 = vadd.xlane.f32.xlu1 %v7216_v3 }
0x304a   : > { %v7218_v7 = vpop.xlane.xlu1 %7217 }
0x304b   : > { %v7219_v8 = vmul.f32 0.03125, %v7218_v7 }
0x304d   : > { %v7220_v31 = vadd.f32 1e-12, %v7219_v8 }
0x304f   : > { %8734 = vrsqrt.f32 %v7220_v31 }
0x305c   : > { %v8735_v12 = vpop.eup %8734 }
0x305d   : > { %v7222_v2 = vmul.f32 %v8735_v12, %v7214_v1 }
0x305f   : > { %v7227_v15 = vmul.f32 %v7226_v33, %v7222_v2 }
0x3061   : > { %v7232_v16 = vadd.f32 %v7231_v14, %v7227_v15 }
0x3063   : > { %v7237_v17 = vpack.c.bf16 %v7232_v16, %v7232_v16 }
0x3065   : > { %8503 = vmatmul.mubr.msk.bf16.vlgmr.msra.gmra.mxu0 %vm413_vm2, %v7237_v17 }
0x3066   : > { %8514 = vmatprep.mubr.msk.bf16.mxu0 %vm8759_vm3, %v8758_v4  ;;  %8507 = vmatpush3.bf16.xpose.msra.mxu0 %v7351_v40 }
0x3067   : > { %8508 = vmatprep.subr.bf16.mxu0 %v8758_v4 }
0x306e   : > { %8509 = vmatpush3.bf16.xpose.msra.mxu0 %v7348_v44 }
0x306f   : > { %8510 = vmatprep.subr.bf16.mxu0 %v8758_v4 }
0x3076   : > { %8511 = vmatpush3.bf16.xpose.msra.mxu0 %v7345_v50 }
0x3077   : > { %8512 = vmatprep.subr.bf16.mxu0 %v8758_v4 }
0x307e   : > { %8513 = vmatpush3.bf16.xpose.msra.mxu0 %v7342_v45 }
0x3125   : > { %v7291_v26 = vpop.f32.mrf.mxu0 }
0x3126   : > { %v7292_v24 = vadd.f32 %v7291_v26, %v7241_v18  ;;  %v8748_v18 = vld [vmem:[%s9238_s23] sm:$0xff]  ;;  %s7532_s23 = sshll.u32 %s10041_s19, 3 }
0x3127   : > { %v8504_v25 = vpop.f32.mrf.mxu0  ;;  %v7433_v26 = vsel %vm7425_vm10, %v8748_v18, 0.0  ;;  %s242_s11 = scalar_lea.vmem %s10039_s5, %s7532_s23 }
0x3128   : > { %v7297_v27 = vmul.f32 %v7292_v24, %v7292_v24 }
0x3129   : > { %v7294_v57 = vpop.f32.mrf.mxu0 }
0x312a   : > { %v7298_v22 = vmul.f32 %v7297_v27, %v7292_v24 }
0x312b   : > { %v8505_v29 = vpop.f32.mrf.mxu0 }
0x312c   : > { %v7299_v37 = vmul.f32 0.044715, %v7298_v22 }
0x312e   : > { %v7300_v38 = vadd.f32 %v7299_v37, %v7292_v24 }
0x3130   : > { %v7301_v21 = vmul.f32 0.7978846, %v7300_v38 }
0x3132   : > { %8736 = vtanh.f32 %v7301_v21 }
0x313f   : > { %v8737_v30 = vpop.eup %8736 }
0x3140   : > { %v7303_v34 = vadd.f32 1.0, %v8737_v30 }
0x3142   : > { %v7304_v35 = vmul.f32 0.5, %v7303_v34 }
0x3144   : > { %v7305_v28 = vmul.f32 %v7304_v35, %v7292_v24  ;;  %v7434_v24 = vrot.slane %v7433_v26, 4 }
0x3146   : > { %v7308_v39 = vsel %vm413_vm2, %v7305_v28, 0.0  ;;  %v7435_v25 = vadd.f32 %v7434_v24, %v7433_v26 }
0x3147   : > { %7309 = vadd.xlane.f32.xlu0 %v7308_v39 }
0x3148   : > { %v7436_v27 = vrot.slane %v7435_v25, 2 }
0x314a   : > { %v7437_v57 = vadd.f32 %v7436_v27, %v7435_v25 }
0x314c   : > { %v7438_v22 = vrot.slane %v7437_v57, 1 }
0x314e   : > { %v7439_v29 = vadd.f32 %v7438_v22, %v7437_v57 }
0x31d0   : > { %v7310_v41 = vpop.xlane.xlu0 %7309 }
0x31d1   : > { %v7311_v5 = vmul.f32 0.03125, %v7310_v41 }
0x31d3   : > { %v7312_v42 = vsub.f32 %v7305_v28, %v7311_v5 }
0x31d5   : > { %v7313_v13 = vmul.f32 %v7312_v42, %v7312_v42 }
0x31d7   : > { %v7314_v36 = vsel %vm413_vm2, %v7313_v13, 0.0 }
0x31d8   : > { %7315 = vadd.xlane.f32.xlu1 %v7314_v36 }
0x31e9   : > { %7406 = vperm.xlu1 %8539, %v9241_v60   ;;  %v7332_v60 = vld [vmem:[%s10038_s4 + $0x18] sm:$0x4] }
0x31ea   : > { %v7333_v3 = vunpack.c.l.bf16 %v7332_v60 }
0x31ec   : > { %v7337_v20 = vrot.slane %v7333_v3, %v8915_v59 }
0x3261   : > { %v7316_v52 = vpop.xlane.xlu1 %7315 }
0x3262   : > { %v7317_v63 = vmul.f32 0.03125, %v7316_v52 }
0x3264   : > { %v7318_v55 = vadd.f32 1e-12, %v7317_v63 }
0x3265   : > { %v7407_v12 = vpop.permute.xlu1 %7406 }
0x3266   : > { %8738 = vrsqrt.f32 %v7318_v55  ;;  %vm7408_vm9 = vcmp.eq.s32.totalorder %v8950_v11, %v7407_v12 }
0x3267   : > { %v7716_v2 = vsel %vm7408_vm9, 1.0, %v8758_v4  ;;  %v8766_v4 = vmov 2  }
0x3268   : > { %8540 = vset.pattern.permute.xlu0 %v8766_v4  ;;  %8541 = vset.pattern.permute.xlu1 %v8766_v4 }
0x3269   : > { %7452 = vperm.xlu1 %8541, %v7439_v29  }
0x3273   : > { %v8739_v61 = vpop.eup %8738 }
0x3274   : > { %v7320_v62 = vmul.f32 %v8739_v61, %v7312_v42 }
0x3276   : > { %v7325_v0 = vmul.f32 %v7324_v46, %v7320_v62 }
0x3278   : > { %v7330_v1 = vadd.f32 %v7329_v58, %v7325_v0 }
0x327a   : > { %v7331_v54 = vpack.c.bf16 %v7330_v1, %v7330_v1 }
0x327c   : > { %8515 = vmatmul.mubr.msk.bf16.vlgmr.msra.gmra.mxu0 %vm413_vm2, %v7331_v54 }
0x32e4   : > { %v7453_v51 = vpop.permute.xlu1 %7452 }
0x32e5   : > { %v7455_v45 = vsel %vm7449_vm13, %v7453_v51, 0.0 }
0x333c   : > { %v7387_v6 = vpop.f32.mrf.mxu0 }
0x333d   : > { %v7388_v7 = vadd.f32 %v7387_v6, %v7337_v20 }
0x333e   : > { %v8516_v8 = vpop.f32.mrf.mxu0 }
0x333f   : > { %v7393_v48 = vsel %vm350_vm0, %v7388_v7, -inf  ;;  %v7411_v15 = vmul.f32 %v7716_v2, %v7388_v7  ;;  %v7415_v17 = vsel %vm350_vm0, %v7388_v7, 0.0 }
0x3340   : > { %7394 = vmax.xlane.f32.xlu0 %v7393_v48  ;;  %v7390_v31 = vpop.f32.mrf.mxu0 }
0x3341   : > { %v7412_v16 = vsel %vm350_vm0, %v7411_v15, 0.0 }
0x3342   : > { %v8517_v49 = vpop.f32.mrf.mxu0 }
0x33c9   : > { %v7395_v9 = vpop.xlane.xlu0 %7394 }
0x33ca   : > { %v7396_v10 = vsub.f32 %v7388_v7, %v7395_v9 }
0x33cc   : > { %v7397_v33 = vmul.f32 1.442695, %v7396_v10 }
0x33ce   : > { %8740 = vpow2.f32 %v7397_v33 }
0x33db   : > { %v8741_v14 = vpop.eup %8740 }
0x33dc   : > { %v7399_v59 = vsel %vm350_vm0, %v8741_v14, 0.0 }
0x33dd   : > { %7400 = vadd.xlane.f32.xlu0 %v7399_v59 }
0x33e1   : > { %7413 = vadd.xlane.f32.xlu0 %v7412_v16 }
0x33e5   : > { %7416 = vadd.xlane.f32.xlu0 %v7415_v17 }
0x3466   : > { %v7401_v37 = vpop.xlane.xlu0 %7400 }
0x3467   : > { %8742 = vlog2.f32 %v7401_v37 }
0x346a   : > { %v7414_v38 = vpop.xlane.xlu0 %7413 }
0x346b   : > { %v7420_v39 = vmul.f32 0.9, %v7414_v38 }
0x346e   : > { %v7417_v21 = vpop.xlane.xlu0 %7416 }
0x346f   : > { %v7419_v35 = vmul.f32 0.015625, %v7417_v21 }
0x3471   : > { %v7422_v40 = vmul.f32 0.1, %v7419_v35 }
0x3474   : > { %v8743_v30 = vpop.eup %8742 }
0x3475   : > { %v7403_v34 = vmul.f32 0.6931472, %v8743_v30 }
0x3477   : > { %v7404_v28 = vadd.f32 %v7403_v34, %v7395_v9 }
0x3479   : > { %v7421_v23 = vsub.f32 %v7404_v28, %v7420_v39 }
0x347b   : > { %v7423_v41 = vsub.f32 %v7421_v23, %v7422_v40 }
0x347d   : > { %v7424_v5 = vmul.f32 %v8748_v18, %v7423_v41 }
0x347f   : > { %v7426_v42 = vsel %vm7425_vm10, %v7424_v5, 0.0 }
0x3480   : > { %v7427_v13 = vrot.slane %v7426_v42, 4 }
0x3482   : > { %v7428_v36 = vadd.f32 %v7427_v13, %v7426_v42 }
0x3484   : > { %v7429_v43 = vrot.slane %v7428_v36, 2 }
0x3486   : > { %v7430_v44 = vadd.f32 %v7429_v43, %v7428_v36 }
0x3488   : > { %v7431_v47 = vrot.slane %v7430_v44, 1 }
0x348a   : > { %v7432_v50 = vadd.f32 %v7431_v47, %v7430_v44 }
0x348c   : > { %7444 = vperm.xlu0 %8540, %v7432_v50  }
0x3507   : > { %v7445_v32 = vpop.permute.xlu0 %7444 }
0x3508   : > { %v7447_v52 = vsel %vm7441_vm14, %v7445_v32, 0.0 }
0x3509   : > { %v7456_v63 = vadd.f32 %v7455_v45, %v7447_v52 }
0x350b   : > { %7457 = vst [vmem:[%s242_s11] sm:$0xff] %v7456_v63 }
0x350c PF: > { %s15_s18 = sadd.s32 1, %s8755_s18  }
0x350d   : > { %p12_p4 = scmp.ge.s32.totalorder %s15_s18, 4  }
0x350f   :  { %14 = sbr.rel (!%p12_p4) target bundleno = 1 (0x1), region = 73 }

</bundles_post_ra>
